<compile_context>
chip_gen: v7x
topology: tpu7x:2x2x1
jax: 0.10.0
libtpu: 0.0.40
codegen_flags: <defaults>
</compile_context>

<pallas_src>
import math
import jax
import jax.numpy as jnp
from jax.experimental import pallas as pl
from jax.experimental.pallas import tpu as pltpu


def _round_up(x, m):
    return ((x + m - 1) // m) * m


_TWO_OVER_PI = 0.6366197723675814
_PIO2 = 1.5707963267948966


def _sincos(p):
    """Cheap sin/cos with a shared range reduction.

    j = round(p * 2/pi), r = p - j*pi/2  (r in [-pi/4, pi/4]), quadrant q = j mod 4.
    Degree-7 odd / degree-6 even polynomials give |err| < 4e-6 -- far inside
    the 5e-2 validation tolerance -- at a fraction of XLA's full-range
    sin/cos lowering cost (the saturated VLIW slot here is the vector ALU).
    """
    j = jnp.round(p * _TWO_OVER_PI)
    r = p - j * _PIO2
    q = j.astype(jnp.int32) & 3
    r2 = r * r
    sin_r = r * (1.0 + r2 * (-1.0 / 6.0 + r2 * (1.0 / 120.0 + r2 * (-1.0 / 5040.0))))
    cos_r = 1.0 + r2 * (-0.5 + r2 * (1.0 / 24.0 + r2 * (-1.0 / 720.0)))
    swap = (q & 1) != 0
    sin_base = jnp.where(swap, cos_r, sin_r)
    cos_base = jnp.where(swap, sin_r, cos_r)
    sin_p = jnp.where((q & 2) != 0, -sin_base, sin_base)
    cos_p = jnp.where(((q + 1) & 2) != 0, -cos_base, cos_base)
    return sin_p, cos_p


def selective_phase_kernel(
    mag_ref, ph_ref, filt_ref, imp_ref, shift_ref,
    w1r_ref, w1i_ref, b1_ref, w2_ref, b2_ref, w3_ref, b3_ref,
    out_ref,
):
    """One batch tile of the fused forward (eval mode).

    mag/ph:          [TB, Dp]      f32 (zero-padded rows/lanes; pad MUST be 0)
    filt/imp/shift:  [F, 1, Dp]    f32 (filt pre-scaled by 1/F, imp = sigmoid(mask/temp))
    w1r/w1i:         [Dp, H]       bf16 (input_bn + bn1 folded in)
    w2:              [H, H]        bf16 (bn2 folded in)
    w3:              [H, NCp]      bf16
    b1/b2:           [1, H]        f32 (folded biases)
    b3:              [1, NCp]      f32
    out:             [TB, NCp]     f32
    """
    mag = mag_ref[...]
    ph = ph_ref[...]

    F = filt_ref.shape[0]
    # Unrolled accumulation over the F filters: only two [TB, Dp] f32
    # accumulators stay live (instead of [F, TB, Dp] broadcast temporaries).
    real = jnp.zeros(mag.shape, jnp.float32)
    imag = jnp.zeros(mag.shape, jnp.float32)
    for f in range(F):
        m = mag * filt_ref[f]                      # [TB, Dp] (filt already /F)
        p = (ph + shift_ref[f]) * imp_ref[f]       # [TB, Dp]
        s, c = _sincos(p)
        real = real + m * c
        imag = imag + m * s

    # Split-weight matmul replaces concat([real, imag], axis=1) @ w1.
    h = (jnp.dot(real.astype(jnp.bfloat16), w1r_ref[...],
                 preferred_element_type=jnp.float32)
         + jnp.dot(imag.astype(jnp.bfloat16), w1i_ref[...],
                   preferred_element_type=jnp.float32)
         + b1_ref[...])
    h = jnp.maximum(h, 0.0)
    # TODO(synk): Dropout(0.3) is identity in eval mode; training-mode dropout not implemented.
    h = jnp.dot(h.astype(jnp.bfloat16), w2_ref[...],
                preferred_element_type=jnp.float32) + b2_ref[...]
    h = jnp.maximum(h, 0.0)
    out_ref[...] = jnp.dot(h.astype(jnp.bfloat16), w3_ref[...],
                           preferred_element_type=jnp.float32) + b3_ref[...]


def kaiming_normal(key, shape, fan_in):
    std = math.sqrt(2.0 / fan_in)
    return jax.random.normal(key, shape, dtype=jnp.float32) * std


def make_params(key, input_size=16, num_classes=10, channels=3, hidden_dim=256):
    freq_h = input_size
    freq_w = input_size // 2 + 1
    F = num_classes // 2
    D = channels * freq_h * freq_w
    feature_dim = 2 * D

    ks = jax.random.split(key, 6)
    params = {}
    params["mag_filters"] = kaiming_normal(ks[0], (F, channels, freq_h, freq_w),
                                           channels * freq_h * freq_w)
    params["phase_mask"] = kaiming_normal(ks[1], (F, channels, freq_h, freq_w),
                                          channels * freq_h * freq_w)
    params["phase_temp"] = jnp.float32(1.0)
    params["phase_shifts"] = jnp.zeros((F, channels), jnp.float32)

    # Linear weights stored as [in, out] (PyTorch kaiming fan_in = in_features).
    params["w1"] = kaiming_normal(ks[2], (feature_dim, hidden_dim), feature_dim)
    params["b1"] = jnp.zeros((1, hidden_dim), jnp.float32)
    params["w2"] = kaiming_normal(ks[3], (hidden_dim, hidden_dim), hidden_dim)
    params["b2"] = jnp.zeros((1, hidden_dim), jnp.float32)
    params["w3"] = kaiming_normal(ks[4], (hidden_dim, num_classes), hidden_dim)
    params["b3"] = jnp.zeros((1, num_classes), jnp.float32)

    # BatchNorm1d in eval mode with default buffers (mean=0, var=1, gamma=1, beta=0).
    eps = 1e-5

    def bn_fold(n):
        gamma = jnp.ones((1, n), jnp.float32)
        beta = jnp.zeros((1, n), jnp.float32)
        mean = jnp.zeros((1, n), jnp.float32)
        var = jnp.ones((1, n), jnp.float32)
        scale = gamma / jnp.sqrt(var + eps)
        bias = beta - mean * scale
        return scale, bias

    params["bn0_s"], params["bn0_b"] = bn_fold(feature_dim)
    params["bn1_s"], params["bn1_b"] = bn_fold(hidden_dim)
    params["bn2_s"], params["bn2_b"] = bn_fold(hidden_dim)

    meta = dict(input_size=input_size, num_classes=num_classes, channels=channels,
                freq_h=freq_h, freq_w=freq_w, F=F, D=D, feature_dim=feature_dim,
                hidden_dim=hidden_dim)
    return params, meta


def _const_spec(shape, index_map):
    """BlockSpec for grid-invariant operands: single-buffered (never re-DMA'd)."""
    try:
        return pl.BlockSpec(shape, index_map, pipeline_mode=pl.Buffered(1))
    except Exception:
        return pl.BlockSpec(shape, index_map)


def selective_phase_net(x, params, meta):
    """x: [B, 2, C, H, Wf] float32 -> logits [B, num_classes]."""
    B = x.shape[0]
    C, Hf, Wf = meta["channels"], meta["freq_h"], meta["freq_w"]
    F, D, NC = meta["F"], meta["D"], meta["num_classes"]
    HID = meta["hidden_dim"]

    Dp = _round_up(D, 128)          # 432 -> 512: lane / MXU-aligned K
    NCp = _round_up(NC, 128)        # 10  -> 128: unmasked lane-dense stores
    # Batch tile: <= 256 rows (halves per-tile VMEM vs 512) and, for moderate
    # batches, at least 2 grid tiles so the "parallel" axis can be sharded
    # across both TensorCores on v7x.
    TB = min(256, max(8, _round_up(_round_up(B, 8) // 2, 8)))
    Bp = _round_up(B, TB)
    n_tiles = Bp // TB

    # --- activations: flatten, pad batch rows and lane dim --------------------
    # NOTE: pad value must stay 0 (zero magnitude kills cos(0)=1 on pad lanes).
    # For throughput serving, produce these already padded upstream instead of
    # materializing a second full-size copy here.
    mag = jnp.pad(x[:, 0].reshape(B, D).astype(jnp.float32),
                  ((0, Bp - B), (0, Dp - D)))
    ph = jnp.pad(x[:, 1].reshape(B, D).astype(jnp.float32),
                 ((0, Bp - B), (0, Dp - D)))

    # --- param-only precompute (wrapper side, zero kernel cost) ---------------
    imp = jax.nn.sigmoid(params["phase_mask"] / params["phase_temp"]).reshape(F, D)
    filt = (params["mag_filters"] / F).reshape(F, D)           # fold the 1/F mean
    shifts = jnp.broadcast_to(
        params["phase_shifts"][:, :, None, None], (F, C, Hf, Wf)).reshape(F, D)

    def pad_fd(a):  # [F, D] -> [F, 1, Dp]
        return jnp.pad(a, ((0, 0), (0, Dp - D)))[:, None, :]

    filt_p, imp_p, shifts_p = pad_fd(filt), pad_fd(imp), pad_fd(shifts)

    # Fold eval-mode BatchNorms into the adjacent Linears.
    bn0_s, bn0_b = params["bn0_s"], params["bn0_b"]            # [1, 2D]
    bn1_s, bn1_b = params["bn1_s"], params["bn1_b"]            # [1, HID]
    bn2_s, bn2_b = params["bn2_s"], params["bn2_b"]            # [1, HID]
    w1, b1 = params["w1"], params["b1"]
    w2, b2 = params["w2"], params["b2"]
    w3, b3 = params["w3"], params["b3"]

    w1_eff = bn0_s.reshape(2 * D, 1) * w1 * bn1_s              # [2D, HID]
    b1_eff = (bn0_b @ w1) * bn1_s + b1 * bn1_s + bn1_b         # [1, HID]
    w2_eff = w2 * bn2_s                                        # [HID, HID]
    b2_eff = b2 * bn2_s + bn2_b                                 # [1, HID]

    w1r = jnp.pad(w1_eff[:D], ((0, Dp - D), (0, 0))).astype(jnp.bfloat16)
    w1i = jnp.pad(w1_eff[D:], ((0, Dp - D), (0, 0))).astype(jnp.bfloat16)
    w2_bf = w2_eff.astype(jnp.bfloat16)
    w3_p = jnp.pad(w3, ((0, 0), (0, NCp - NC))).astype(jnp.bfloat16)
    b3_p = jnp.pad(b3, ((0, 0), (0, NCp - NC)))

    batch_map = lambda i: (i, 0)
    const2 = lambda i: (0, 0)
    const3 = lambda i: (0, 0, 0)

    grid_spec = pltpu.PrefetchScalarGridSpec(
        num_scalar_prefetch=0,
        grid=(n_tiles,),
        in_specs=[
            pl.BlockSpec((TB, Dp), batch_map),      # mag (pipelined over batch)
            pl.BlockSpec((TB, Dp), batch_map),      # phase
            _const_spec((F, 1, Dp), const3),        # filt (pre-scaled)
            _const_spec((F, 1, Dp), const3),        # importance
            _const_spec((F, 1, Dp), const3),        # phase shifts
            _const_spec((Dp, HID), const2),         # w1 (real rows)
            _const_spec((Dp, HID), const2),         # w1 (imag rows)
            _const_spec((1, HID), const2),          # b1 folded
            _const_spec((HID, HID), const2),        # w2 folded
            _const_spec((1, HID), const2),          # b2 folded
            _const_spec((HID, NCp), const2),        # w3 padded
            _const_spec((1, NCp), const2),          # b3 padded
        ],
        out_specs=pl.BlockSpec((TB, NCp), batch_map),
    )

    out = pl.pallas_call(
        selective_phase_kernel,
        out_shape=jax.ShapeDtypeStruct((Bp, NCp), jnp.float32),
        grid_spec=grid_spec,
        compiler_params=pltpu.CompilerParams(
            dimension_semantics=("parallel",)),
    )(mag, ph, filt_p, imp_p, shifts_p,
      w1r, w1i, b1_eff, w2_bf, b2_eff, w3_p, b3_p)

    return out[:B, :NC]


def reference(x, params, meta):
    """Pure-JAX mirror of the PyTorch forward (eval mode) for validation."""
    B = x.shape[0]
    C, H, Wf = meta["channels"], meta["freq_h"], meta["freq_w"]
    mag = x[:, 0].reshape(B, C, H, Wf)
    ph = x[:, 1].reshape(B, C, H, Wf)
    mag_out = mag[:, None] * params["mag_filters"][None]
    imp = jax.nn.sigmoid(params["phase_mask"] / params["phase_temp"])
    shifts = params["phase_shifts"].reshape(1, meta["F"], C, 1, 1)
    phase_out = (ph[:, None] + shifts) * imp[None]
    real = mag_out * jnp.cos(phase_out)
    imag = mag_out * jnp.sin(phase_out)
    real_avg = real.mean(axis=1).reshape(B, -1)
    imag_avg = imag.mean(axis=1).reshape(B, -1)
    feat = jnp.concatenate([real_avg, imag_avg], axis=1)
    feat = feat * params["bn0_s"] + params["bn0_b"]
    h = feat @ params["w1"] + params["b1"]
    h = jnp.maximum(h * params["bn1_s"] + params["bn1_b"], 0.0)
    h = h @ params["w2"] + params["b2"]
    h = jnp.maximum(h * params["bn2_s"] + params["bn2_b"], 0.0)
    return h @ params["w3"] + params["b3"]


if __name__ == "__main__":
    key = jax.random.PRNGKey(0)
    pkey, xkey = jax.random.split(key)

    params, meta = make_params(pkey, input_size=16, num_classes=10, channels=3)

    B = 2
    x = jax.random.normal(
        xkey, (B, 2, meta["channels"], meta["freq_h"], meta["freq_w"]),
        dtype=jnp.float32)

    logits = selective_phase_net(x, params, meta)
    logits = jax.block_until_ready(logits)

    ref = jax.block_until_ready(reference(x, params, meta))
    assert logits.shape == (B, meta["num_classes"])
    assert jnp.allclose(logits, ref, rtol=5e-2, atol=5e-2), (
        f"max abs diff {jnp.max(jnp.abs(logits - ref))}")

    print("KERNEL_OK")
</pallas_src>

<mosaic_0001>
module attributes {stable_mosaic.version = 11 : i64} {
  func.func @selective_phase_kernel(%arg0: i32, %arg1: memref<8x512xf32, #tpu.memory_space<vmem>>, %arg2: memref<8x512xf32, #tpu.memory_space<vmem>>, %arg3: memref<5x1x512xf32, #tpu.memory_space<vmem>>, %arg4: memref<5x1x512xf32, #tpu.memory_space<vmem>>, %arg5: memref<5x1x512xf32, #tpu.memory_space<vmem>>, %arg6: memref<512x256xbf16, #tpu.memory_space<vmem>>, %arg7: memref<512x256xbf16, #tpu.memory_space<vmem>>, %arg8: memref<1x256xf32, #tpu.memory_space<vmem>>, %arg9: memref<256x256xbf16, #tpu.memory_space<vmem>>, %arg10: memref<1x256xf32, #tpu.memory_space<vmem>>, %arg11: memref<256x128xbf16, #tpu.memory_space<vmem>>, %arg12: memref<1x128xf32, #tpu.memory_space<vmem>>, %arg13: memref<8x128xf32, #tpu.memory_space<vmem>>) attributes {dimension_semantics = [#tpu.dimension_semantics<parallel>], iteration_bounds = array<i64: 1>, scalar_prefetch = 0 : i64, scratch_operands = 0 : i64, tpu.core_type = #tpu.core_type<tc>, window_params = [{transform_indices = @transform_0, window_bounds = array<i64: 8, 512>}, {transform_indices = @transform_1, window_bounds = array<i64: 8, 512>}, {pipeline_mode = #tpu.pipeline_mode<synchronous>, transform_indices = @transform_2, window_bounds = array<i64: 5, 1, 512>}, {pipeline_mode = #tpu.pipeline_mode<synchronous>, transform_indices = @transform_3, window_bounds = array<i64: 5, 1, 512>}, {pipeline_mode = #tpu.pipeline_mode<synchronous>, transform_indices = @transform_4, window_bounds = array<i64: 5, 1, 512>}, {pipeline_mode = #tpu.pipeline_mode<synchronous>, transform_indices = @transform_5, window_bounds = array<i64: 512, 256>}, {pipeline_mode = #tpu.pipeline_mode<synchronous>, transform_indices = @transform_6, window_bounds = array<i64: 512, 256>}, {pipeline_mode = #tpu.pipeline_mode<synchronous>, transform_indices = @transform_7, window_bounds = array<i64: 1, 256>}, {pipeline_mode = #tpu.pipeline_mode<synchronous>, transform_indices = @transform_8, window_bounds = array<i64: 256, 256>}, {pipeline_mode = #tpu.pipeline_mode<synchronous>, transform_indices = @transform_9, window_bounds = array<i64: 1, 256>}, {pipeline_mode = #tpu.pipeline_mode<synchronous>, transform_indices = @transform_10, window_bounds = array<i64: 256, 128>}, {pipeline_mode = #tpu.pipeline_mode<synchronous>, transform_indices = @transform_11, window_bounds = array<i64: 1, 128>}, {transform_indices = @transform_12, window_bounds = array<i64: 8, 128>}]} {
    %c0 = arith.constant 0 : index
    %c0_0 = arith.constant 0 : index
    %0 = vector.load %arg1[%c0, %c0_0] : memref<8x512xf32, #tpu.memory_space<vmem>>, vector<8x512xf32>
    %c0_1 = arith.constant 0 : index
    %c0_2 = arith.constant 0 : index
    %1 = vector.load %arg2[%c0_1, %c0_2] : memref<8x512xf32, #tpu.memory_space<vmem>>, vector<8x512xf32>
    %cst = arith.constant 0.000000e+00 : f32
    %2 = vector.broadcast %cst : f32 to vector<8x512xf32>
    %cst_3 = arith.constant 0.000000e+00 : f32
    %3 = vector.broadcast %cst_3 : f32 to vector<8x512xf32>
    %c0_4 = arith.constant 0 : index
    %c0_5 = arith.constant 0 : index
    %c0_6 = arith.constant 0 : index
    %4 = vector.load %arg3[%c0_4, %c0_5, %c0_6] : memref<5x1x512xf32, #tpu.memory_space<vmem>>, vector<1x1x512xf32>
    %5 = vector.shape_cast %4 : vector<1x1x512xf32> to vector<1x512xf32>
    %6 = vector.broadcast %5 : vector<1x512xf32> to vector<8x512xf32>
    %7 = arith.mulf %0, %6 : vector<8x512xf32>
    %c0_7 = arith.constant 0 : index
    %c0_8 = arith.constant 0 : index
    %c0_9 = arith.constant 0 : index
    %8 = vector.load %arg5[%c0_7, %c0_8, %c0_9] : memref<5x1x512xf32, #tpu.memory_space<vmem>>, vector<1x1x512xf32>
    %9 = vector.shape_cast %8 : vector<1x1x512xf32> to vector<1x512xf32>
    %10 = vector.broadcast %9 : vector<1x512xf32> to vector<8x512xf32>
    %11 = arith.addf %1, %10 : vector<8x512xf32>
    %c0_10 = arith.constant 0 : index
    %c0_11 = arith.constant 0 : index
    %c0_12 = arith.constant 0 : index
    %12 = vector.load %arg4[%c0_10, %c0_11, %c0_12] : memref<5x1x512xf32, #tpu.memory_space<vmem>>, vector<1x1x512xf32>
    %13 = vector.shape_cast %12 : vector<1x1x512xf32> to vector<1x512xf32>
    %14 = vector.broadcast %13 : vector<1x512xf32> to vector<8x512xf32>
    %15 = arith.mulf %11, %14 : vector<8x512xf32>
    %cst_13 = arith.constant 0.636619746 : f32
    %16 = vector.broadcast %cst_13 : f32 to vector<8x512xf32>
    %17 = arith.mulf %15, %16 : vector<8x512xf32>
    %18 = math.roundeven %17 : vector<8x512xf32>
    %cst_14 = arith.constant 1.57079637 : f32
    %19 = vector.broadcast %cst_14 : f32 to vector<8x512xf32>
    %20 = arith.mulf %18, %19 : vector<8x512xf32>
    %21 = arith.subf %15, %20 : vector<8x512xf32>
    %22 = arith.fptosi %18 : vector<8x512xf32> to vector<8x512xi32>
    %c3_i32 = arith.constant 3 : i32
    %23 = vector.broadcast %c3_i32 : i32 to vector<8x512xi32>
    %24 = arith.andi %22, %23 : vector<8x512xi32>
    %25 = arith.mulf %21, %21 : vector<8x512xf32>
    %cst_15 = arith.constant -1.98412701E-4 : f32
    %26 = vector.broadcast %cst_15 : f32 to vector<8x512xf32>
    %27 = arith.mulf %25, %26 : vector<8x512xf32>
    %cst_16 = arith.constant 0.00833333377 : f32
    %28 = vector.broadcast %cst_16 : f32 to vector<8x512xf32>
    %29 = arith.addf %28, %27 : vector<8x512xf32>
    %30 = arith.mulf %25, %29 : vector<8x512xf32>
    %cst_17 = arith.constant -0.166666672 : f32
    %31 = vector.broadcast %cst_17 : f32 to vector<8x512xf32>
    %32 = arith.addf %31, %30 : vector<8x512xf32>
    %33 = arith.mulf %25, %32 : vector<8x512xf32>
    %cst_18 = arith.constant 1.000000e+00 : f32
    %34 = vector.broadcast %cst_18 : f32 to vector<8x512xf32>
    %35 = arith.addf %34, %33 : vector<8x512xf32>
    %36 = arith.mulf %21, %35 : vector<8x512xf32>
    %cst_19 = arith.constant -0.00138888892 : f32
    %37 = vector.broadcast %cst_19 : f32 to vector<8x512xf32>
    %38 = arith.mulf %25, %37 : vector<8x512xf32>
    %cst_20 = arith.constant 0.0416666679 : f32
    %39 = vector.broadcast %cst_20 : f32 to vector<8x512xf32>
    %40 = arith.addf %39, %38 : vector<8x512xf32>
    %41 = arith.mulf %25, %40 : vector<8x512xf32>
    %cst_21 = arith.constant -5.000000e-01 : f32
    %42 = vector.broadcast %cst_21 : f32 to vector<8x512xf32>
    %43 = arith.addf %42, %41 : vector<8x512xf32>
    %44 = arith.mulf %25, %43 : vector<8x512xf32>
    %cst_22 = arith.constant 1.000000e+00 : f32
    %45 = vector.broadcast %cst_22 : f32 to vector<8x512xf32>
    %46 = arith.addf %45, %44 : vector<8x512xf32>
    %c1_i32 = arith.constant 1 : i32
    %47 = vector.broadcast %c1_i32 : i32 to vector<8x512xi32>
    %48 = arith.andi %24, %47 : vector<8x512xi32>
    %c0_i32 = arith.constant 0 : i32
    %49 = vector.broadcast %c0_i32 : i32 to vector<8x512xi32>
    %50 = arith.cmpi ne, %48, %49 : vector<8x512xi32>
    %51 = arith.select %50, %46, %36 : vector<8x512xi1>, vector<8x512xf32>
    %52 = arith.select %50, %36, %46 : vector<8x512xi1>, vector<8x512xf32>
    %c2_i32 = arith.constant 2 : i32
    %53 = vector.broadcast %c2_i32 : i32 to vector<8x512xi32>
    %54 = arith.andi %24, %53 : vector<8x512xi32>
    %c0_i32_23 = arith.constant 0 : i32
    %55 = vector.broadcast %c0_i32_23 : i32 to vector<8x512xi32>
    %56 = arith.cmpi ne, %54, %55 : vector<8x512xi32>
    %cst_24 = arith.constant 0.000000e+00 : f32
    %57 = vector.broadcast %cst_24 : f32 to vector<8x512xf32>
    %58 = arith.subf %57, %51 : vector<8x512xf32>
    %59 = arith.select %56, %58, %51 : vector<8x512xi1>, vector<8x512xf32>
    %c1_i32_25 = arith.constant 1 : i32
    %60 = vector.broadcast %c1_i32_25 : i32 to vector<8x512xi32>
    %61 = arith.addi %24, %60 : vector<8x512xi32>
    %c2_i32_26 = arith.constant 2 : i32
    %62 = vector.broadcast %c2_i32_26 : i32 to vector<8x512xi32>
    %63 = arith.andi %61, %62 : vector<8x512xi32>
    %c0_i32_27 = arith.constant 0 : i32
    %64 = vector.broadcast %c0_i32_27 : i32 to vector<8x512xi32>
    %65 = arith.cmpi ne, %63, %64 : vector<8x512xi32>
    %cst_28 = arith.constant 0.000000e+00 : f32
    %66 = vector.broadcast %cst_28 : f32 to vector<8x512xf32>
    %67 = arith.subf %66, %52 : vector<8x512xf32>
    %68 = arith.select %65, %67, %52 : vector<8x512xi1>, vector<8x512xf32>
    %69 = arith.mulf %7, %68 : vector<8x512xf32>
    %70 = arith.addf %2, %69 : vector<8x512xf32>
    %71 = arith.mulf %7, %59 : vector<8x512xf32>
    %72 = arith.addf %3, %71 : vector<8x512xf32>
    %c1 = arith.constant 1 : index
    %c0_29 = arith.constant 0 : index
    %c0_30 = arith.constant 0 : index
    %73 = vector.load %arg3[%c1, %c0_29, %c0_30] : memref<5x1x512xf32, #tpu.memory_space<vmem>>, vector<1x1x512xf32>
    %74 = vector.shape_cast %73 : vector<1x1x512xf32> to vector<1x512xf32>
    %75 = vector.broadcast %74 : vector<1x512xf32> to vector<8x512xf32>
    %76 = arith.mulf %0, %75 : vector<8x512xf32>
    %c1_31 = arith.constant 1 : index
    %c0_32 = arith.constant 0 : index
    %c0_33 = arith.constant 0 : index
    %77 = vector.load %arg5[%c1_31, %c0_32, %c0_33] : memref<5x1x512xf32, #tpu.memory_space<vmem>>, vector<1x1x512xf32>
    %78 = vector.shape_cast %77 : vector<1x1x512xf32> to vector<1x512xf32>
    %79 = vector.broadcast %78 : vector<1x512xf32> to vector<8x512xf32>
    %80 = arith.addf %1, %79 : vector<8x512xf32>
    %c1_34 = arith.constant 1 : index
    %c0_35 = arith.constant 0 : index
    %c0_36 = arith.constant 0 : index
    %81 = vector.load %arg4[%c1_34, %c0_35, %c0_36] : memref<5x1x512xf32, #tpu.memory_space<vmem>>, vector<1x1x512xf32>
    %82 = vector.shape_cast %81 : vector<1x1x512xf32> to vector<1x512xf32>
    %83 = vector.broadcast %82 : vector<1x512xf32> to vector<8x512xf32>
    %84 = arith.mulf %80, %83 : vector<8x512xf32>
    %cst_37 = arith.constant 0.636619746 : f32
    %85 = vector.broadcast %cst_37 : f32 to vector<8x512xf32>
    %86 = arith.mulf %84, %85 : vector<8x512xf32>
    %87 = math.roundeven %86 : vector<8x512xf32>
    %cst_38 = arith.constant 1.57079637 : f32
    %88 = vector.broadcast %cst_38 : f32 to vector<8x512xf32>
    %89 = arith.mulf %87, %88 : vector<8x512xf32>
    %90 = arith.subf %84, %89 : vector<8x512xf32>
    %91 = arith.fptosi %87 : vector<8x512xf32> to vector<8x512xi32>
    %c3_i32_39 = arith.constant 3 : i32
    %92 = vector.broadcast %c3_i32_39 : i32 to vector<8x512xi32>
    %93 = arith.andi %91, %92 : vector<8x512xi32>
    %94 = arith.mulf %90, %90 : vector<8x512xf32>
    %cst_40 = arith.constant -1.98412701E-4 : f32
    %95 = vector.broadcast %cst_40 : f32 to vector<8x512xf32>
    %96 = arith.mulf %94, %95 : vector<8x512xf32>
    %cst_41 = arith.constant 0.00833333377 : f32
    %97 = vector.broadcast %cst_41 : f32 to vector<8x512xf32>
    %98 = arith.addf %97, %96 : vector<8x512xf32>
    %99 = arith.mulf %94, %98 : vector<8x512xf32>
    %cst_42 = arith.constant -0.166666672 : f32
    %100 = vector.broadcast %cst_42 : f32 to vector<8x512xf32>
    %101 = arith.addf %100, %99 : vector<8x512xf32>
    %102 = arith.mulf %94, %101 : vector<8x512xf32>
    %cst_43 = arith.constant 1.000000e+00 : f32
    %103 = vector.broadcast %cst_43 : f32 to vector<8x512xf32>
    %104 = arith.addf %103, %102 : vector<8x512xf32>
    %105 = arith.mulf %90, %104 : vector<8x512xf32>
    %cst_44 = arith.constant -0.00138888892 : f32
    %106 = vector.broadcast %cst_44 : f32 to vector<8x512xf32>
    %107 = arith.mulf %94, %106 : vector<8x512xf32>
    %cst_45 = arith.constant 0.0416666679 : f32
    %108 = vector.broadcast %cst_45 : f32 to vector<8x512xf32>
    %109 = arith.addf %108, %107 : vector<8x512xf32>
    %110 = arith.mulf %94, %109 : vector<8x512xf32>
    %cst_46 = arith.constant -5.000000e-01 : f32
    %111 = vector.broadcast %cst_46 : f32 to vector<8x512xf32>
    %112 = arith.addf %111, %110 : vector<8x512xf32>
    %113 = arith.mulf %94, %112 : vector<8x512xf32>
    %cst_47 = arith.constant 1.000000e+00 : f32
    %114 = vector.broadcast %cst_47 : f32 to vector<8x512xf32>
    %115 = arith.addf %114, %113 : vector<8x512xf32>
    %c1_i32_48 = arith.constant 1 : i32
    %116 = vector.broadcast %c1_i32_48 : i32 to vector<8x512xi32>
    %117 = arith.andi %93, %116 : vector<8x512xi32>
    %c0_i32_49 = arith.constant 0 : i32
    %118 = vector.broadcast %c0_i32_49 : i32 to vector<8x512xi32>
    %119 = arith.cmpi ne, %117, %118 : vector<8x512xi32>
    %120 = arith.select %119, %115, %105 : vector<8x512xi1>, vector<8x512xf32>
    %121 = arith.select %119, %105, %115 : vector<8x512xi1>, vector<8x512xf32>
    %c2_i32_50 = arith.constant 2 : i32
    %122 = vector.broadcast %c2_i32_50 : i32 to vector<8x512xi32>
    %123 = arith.andi %93, %122 : vector<8x512xi32>
    %c0_i32_51 = arith.constant 0 : i32
    %124 = vector.broadcast %c0_i32_51 : i32 to vector<8x512xi32>
    %125 = arith.cmpi ne, %123, %124 : vector<8x512xi32>
    %cst_52 = arith.constant 0.000000e+00 : f32
    %126 = vector.broadcast %cst_52 : f32 to vector<8x512xf32>
    %127 = arith.subf %126, %120 : vector<8x512xf32>
    %128 = arith.select %125, %127, %120 : vector<8x512xi1>, vector<8x512xf32>
    %c1_i32_53 = arith.constant 1 : i32
    %129 = vector.broadcast %c1_i32_53 : i32 to vector<8x512xi32>
    %130 = arith.addi %93, %129 : vector<8x512xi32>
    %c2_i32_54 = arith.constant 2 : i32
    %131 = vector.broadcast %c2_i32_54 : i32 to vector<8x512xi32>
    %132 = arith.andi %130, %131 : vector<8x512xi32>
    %c0_i32_55 = arith.constant 0 : i32
    %133 = vector.broadcast %c0_i32_55 : i32 to vector<8x512xi32>
    %134 = arith.cmpi ne, %132, %133 : vector<8x512xi32>
    %cst_56 = arith.constant 0.000000e+00 : f32
    %135 = vector.broadcast %cst_56 : f32 to vector<8x512xf32>
    %136 = arith.subf %135, %121 : vector<8x512xf32>
    %137 = arith.select %134, %136, %121 : vector<8x512xi1>, vector<8x512xf32>
    %138 = arith.mulf %76, %137 : vector<8x512xf32>
    %139 = arith.addf %70, %138 : vector<8x512xf32>
    %140 = arith.mulf %76, %128 : vector<8x512xf32>
    %141 = arith.addf %72, %140 : vector<8x512xf32>
    %c2 = arith.constant 2 : index
    %c0_57 = arith.constant 0 : index
    %c0_58 = arith.constant 0 : index
    %142 = vector.load %arg3[%c2, %c0_57, %c0_58] : memref<5x1x512xf32, #tpu.memory_space<vmem>>, vector<1x1x512xf32>
    %143 = vector.shape_cast %142 : vector<1x1x512xf32> to vector<1x512xf32>
    %144 = vector.broadcast %143 : vector<1x512xf32> to vector<8x512xf32>
    %145 = arith.mulf %0, %144 : vector<8x512xf32>
    %c2_59 = arith.constant 2 : index
    %c0_60 = arith.constant 0 : index
    %c0_61 = arith.constant 0 : index
    %146 = vector.load %arg5[%c2_59, %c0_60, %c0_61] : memref<5x1x512xf32, #tpu.memory_space<vmem>>, vector<1x1x512xf32>
    %147 = vector.shape_cast %146 : vector<1x1x512xf32> to vector<1x512xf32>
    %148 = vector.broadcast %147 : vector<1x512xf32> to vector<8x512xf32>
    %149 = arith.addf %1, %148 : vector<8x512xf32>
    %c2_62 = arith.constant 2 : index
    %c0_63 = arith.constant 0 : index
    %c0_64 = arith.constant 0 : index
    %150 = vector.load %arg4[%c2_62, %c0_63, %c0_64] : memref<5x1x512xf32, #tpu.memory_space<vmem>>, vector<1x1x512xf32>
    %151 = vector.shape_cast %150 : vector<1x1x512xf32> to vector<1x512xf32>
    %152 = vector.broadcast %151 : vector<1x512xf32> to vector<8x512xf32>
    %153 = arith.mulf %149, %152 : vector<8x512xf32>
    %cst_65 = arith.constant 0.636619746 : f32
    %154 = vector.broadcast %cst_65 : f32 to vector<8x512xf32>
    %155 = arith.mulf %153, %154 : vector<8x512xf32>
    %156 = math.roundeven %155 : vector<8x512xf32>
    %cst_66 = arith.constant 1.57079637 : f32
    %157 = vector.broadcast %cst_66 : f32 to vector<8x512xf32>
    %158 = arith.mulf %156, %157 : vector<8x512xf32>
    %159 = arith.subf %153, %158 : vector<8x512xf32>
    %160 = arith.fptosi %156 : vector<8x512xf32> to vector<8x512xi32>
    %c3_i32_67 = arith.constant 3 : i32
    %161 = vector.broadcast %c3_i32_67 : i32 to vector<8x512xi32>
    %162 = arith.andi %160, %161 : vector<8x512xi32>
    %163 = arith.mulf %159, %159 : vector<8x512xf32>
    %cst_68 = arith.constant -1.98412701E-4 : f32
    %164 = vector.broadcast %cst_68 : f32 to vector<8x512xf32>
    %165 = arith.mulf %163, %164 : vector<8x512xf32>
    %cst_69 = arith.constant 0.00833333377 : f32
    %166 = vector.broadcast %cst_69 : f32 to vector<8x512xf32>
    %167 = arith.addf %166, %165 : vector<8x512xf32>
    %168 = arith.mulf %163, %167 : vector<8x512xf32>
    %cst_70 = arith.constant -0.166666672 : f32
    %169 = vector.broadcast %cst_70 : f32 to vector<8x512xf32>
    %170 = arith.addf %169, %168 : vector<8x512xf32>
    %171 = arith.mulf %163, %170 : vector<8x512xf32>
    %cst_71 = arith.constant 1.000000e+00 : f32
    %172 = vector.broadcast %cst_71 : f32 to vector<8x512xf32>
    %173 = arith.addf %172, %171 : vector<8x512xf32>
    %174 = arith.mulf %159, %173 : vector<8x512xf32>
    %cst_72 = arith.constant -0.00138888892 : f32
    %175 = vector.broadcast %cst_72 : f32 to vector<8x512xf32>
    %176 = arith.mulf %163, %175 : vector<8x512xf32>
    %cst_73 = arith.constant 0.0416666679 : f32
    %177 = vector.broadcast %cst_73 : f32 to vector<8x512xf32>
    %178 = arith.addf %177, %176 : vector<8x512xf32>
    %179 = arith.mulf %163, %178 : vector<8x512xf32>
    %cst_74 = arith.constant -5.000000e-01 : f32
    %180 = vector.broadcast %cst_74 : f32 to vector<8x512xf32>
    %181 = arith.addf %180, %179 : vector<8x512xf32>
    %182 = arith.mulf %163, %181 : vector<8x512xf32>
    %cst_75 = arith.constant 1.000000e+00 : f32
    %183 = vector.broadcast %cst_75 : f32 to vector<8x512xf32>
    %184 = arith.addf %183, %182 : vector<8x512xf32>
    %c1_i32_76 = arith.constant 1 : i32
    %185 = vector.broadcast %c1_i32_76 : i32 to vector<8x512xi32>
    %186 = arith.andi %162, %185 : vector<8x512xi32>
    %c0_i32_77 = arith.constant 0 : i32
    %187 = vector.broadcast %c0_i32_77 : i32 to vector<8x512xi32>
    %188 = arith.cmpi ne, %186, %187 : vector<8x512xi32>
    %189 = arith.select %188, %184, %174 : vector<8x512xi1>, vector<8x512xf32>
    %190 = arith.select %188, %174, %184 : vector<8x512xi1>, vector<8x512xf32>
    %c2_i32_78 = arith.constant 2 : i32
    %191 = vector.broadcast %c2_i32_78 : i32 to vector<8x512xi32>
    %192 = arith.andi %162, %191 : vector<8x512xi32>
    %c0_i32_79 = arith.constant 0 : i32
    %193 = vector.broadcast %c0_i32_79 : i32 to vector<8x512xi32>
    %194 = arith.cmpi ne, %192, %193 : vector<8x512xi32>
    %cst_80 = arith.constant 0.000000e+00 : f32
    %195 = vector.broadcast %cst_80 : f32 to vector<8x512xf32>
    %196 = arith.subf %195, %189 : vector<8x512xf32>
    %197 = arith.select %194, %196, %189 : vector<8x512xi1>, vector<8x512xf32>
    %c1_i32_81 = arith.constant 1 : i32
    %198 = vector.broadcast %c1_i32_81 : i32 to vector<8x512xi32>
    %199 = arith.addi %162, %198 : vector<8x512xi32>
    %c2_i32_82 = arith.constant 2 : i32
    %200 = vector.broadcast %c2_i32_82 : i32 to vector<8x512xi32>
    %201 = arith.andi %199, %200 : vector<8x512xi32>
    %c0_i32_83 = arith.constant 0 : i32
    %202 = vector.broadcast %c0_i32_83 : i32 to vector<8x512xi32>
    %203 = arith.cmpi ne, %201, %202 : vector<8x512xi32>
    %cst_84 = arith.constant 0.000000e+00 : f32
    %204 = vector.broadcast %cst_84 : f32 to vector<8x512xf32>
    %205 = arith.subf %204, %190 : vector<8x512xf32>
    %206 = arith.select %203, %205, %190 : vector<8x512xi1>, vector<8x512xf32>
    %207 = arith.mulf %145, %206 : vector<8x512xf32>
    %208 = arith.addf %139, %207 : vector<8x512xf32>
    %209 = arith.mulf %145, %197 : vector<8x512xf32>
    %210 = arith.addf %141, %209 : vector<8x512xf32>
    %c3 = arith.constant 3 : index
    %c0_85 = arith.constant 0 : index
    %c0_86 = arith.constant 0 : index
    %211 = vector.load %arg3[%c3, %c0_85, %c0_86] : memref<5x1x512xf32, #tpu.memory_space<vmem>>, vector<1x1x512xf32>
    %212 = vector.shape_cast %211 : vector<1x1x512xf32> to vector<1x512xf32>
    %213 = vector.broadcast %212 : vector<1x512xf32> to vector<8x512xf32>
    %214 = arith.mulf %0, %213 : vector<8x512xf32>
    %c3_87 = arith.constant 3 : index
    %c0_88 = arith.constant 0 : index
    %c0_89 = arith.constant 0 : index
    %215 = vector.load %arg5[%c3_87, %c0_88, %c0_89] : memref<5x1x512xf32, #tpu.memory_space<vmem>>, vector<1x1x512xf32>
    %216 = vector.shape_cast %215 : vector<1x1x512xf32> to vector<1x512xf32>
    %217 = vector.broadcast %216 : vector<1x512xf32> to vector<8x512xf32>
    %218 = arith.addf %1, %217 : vector<8x512xf32>
    %c3_90 = arith.constant 3 : index
    %c0_91 = arith.constant 0 : index
    %c0_92 = arith.constant 0 : index
    %219 = vector.load %arg4[%c3_90, %c0_91, %c0_92] : memref<5x1x512xf32, #tpu.memory_space<vmem>>, vector<1x1x512xf32>
    %220 = vector.shape_cast %219 : vector<1x1x512xf32> to vector<1x512xf32>
    %221 = vector.broadcast %220 : vector<1x512xf32> to vector<8x512xf32>
    %222 = arith.mulf %218, %221 : vector<8x512xf32>
    %cst_93 = arith.constant 0.636619746 : f32
    %223 = vector.broadcast %cst_93 : f32 to vector<8x512xf32>
    %224 = arith.mulf %222, %223 : vector<8x512xf32>
    %225 = math.roundeven %224 : vector<8x512xf32>
    %cst_94 = arith.constant 1.57079637 : f32
    %226 = vector.broadcast %cst_94 : f32 to vector<8x512xf32>
    %227 = arith.mulf %225, %226 : vector<8x512xf32>
    %228 = arith.subf %222, %227 : vector<8x512xf32>
    %229 = arith.fptosi %225 : vector<8x512xf32> to vector<8x512xi32>
    %c3_i32_95 = arith.constant 3 : i32
    %230 = vector.broadcast %c3_i32_95 : i32 to vector<8x512xi32>
    %231 = arith.andi %229, %230 : vector<8x512xi32>
    %232 = arith.mulf %228, %228 : vector<8x512xf32>
    %cst_96 = arith.constant -1.98412701E-4 : f32
    %233 = vector.broadcast %cst_96 : f32 to vector<8x512xf32>
    %234 = arith.mulf %232, %233 : vector<8x512xf32>
    %cst_97 = arith.constant 0.00833333377 : f32
    %235 = vector.broadcast %cst_97 : f32 to vector<8x512xf32>
    %236 = arith.addf %235, %234 : vector<8x512xf32>
    %237 = arith.mulf %232, %236 : vector<8x512xf32>
    %cst_98 = arith.constant -0.166666672 : f32
    %238 = vector.broadcast %cst_98 : f32 to vector<8x512xf32>
    %239 = arith.addf %238, %237 : vector<8x512xf32>
    %240 = arith.mulf %232, %239 : vector<8x512xf32>
    %cst_99 = arith.constant 1.000000e+00 : f32
    %241 = vector.broadcast %cst_99 : f32 to vector<8x512xf32>
    %242 = arith.addf %241, %240 : vector<8x512xf32>
    %243 = arith.mulf %228, %242 : vector<8x512xf32>
    %cst_100 = arith.constant -0.00138888892 : f32
    %244 = vector.broadcast %cst_100 : f32 to vector<8x512xf32>
    %245 = arith.mulf %232, %244 : vector<8x512xf32>
    %cst_101 = arith.constant 0.0416666679 : f32
    %246 = vector.broadcast %cst_101 : f32 to vector<8x512xf32>
    %247 = arith.addf %246, %245 : vector<8x512xf32>
    %248 = arith.mulf %232, %247 : vector<8x512xf32>
    %cst_102 = arith.constant -5.000000e-01 : f32
    %249 = vector.broadcast %cst_102 : f32 to vector<8x512xf32>
    %250 = arith.addf %249, %248 : vector<8x512xf32>
    %251 = arith.mulf %232, %250 : vector<8x512xf32>
    %cst_103 = arith.constant 1.000000e+00 : f32
    %252 = vector.broadcast %cst_103 : f32 to vector<8x512xf32>
    %253 = arith.addf %252, %251 : vector<8x512xf32>
    %c1_i32_104 = arith.constant 1 : i32
    %254 = vector.broadcast %c1_i32_104 : i32 to vector<8x512xi32>
    %255 = arith.andi %231, %254 : vector<8x512xi32>
    %c0_i32_105 = arith.constant 0 : i32
    %256 = vector.broadcast %c0_i32_105 : i32 to vector<8x512xi32>
    %257 = arith.cmpi ne, %255, %256 : vector<8x512xi32>
    %258 = arith.select %257, %253, %243 : vector<8x512xi1>, vector<8x512xf32>
    %259 = arith.select %257, %243, %253 : vector<8x512xi1>, vector<8x512xf32>
    %c2_i32_106 = arith.constant 2 : i32
    %260 = vector.broadcast %c2_i32_106 : i32 to vector<8x512xi32>
    %261 = arith.andi %231, %260 : vector<8x512xi32>
    %c0_i32_107 = arith.constant 0 : i32
    %262 = vector.broadcast %c0_i32_107 : i32 to vector<8x512xi32>
    %263 = arith.cmpi ne, %261, %262 : vector<8x512xi32>
    %cst_108 = arith.constant 0.000000e+00 : f32
    %264 = vector.broadcast %cst_108 : f32 to vector<8x512xf32>
    %265 = arith.subf %264, %258 : vector<8x512xf32>
    %266 = arith.select %263, %265, %258 : vector<8x512xi1>, vector<8x512xf32>
    %c1_i32_109 = arith.constant 1 : i32
    %267 = vector.broadcast %c1_i32_109 : i32 to vector<8x512xi32>
    %268 = arith.addi %231, %267 : vector<8x512xi32>
    %c2_i32_110 = arith.constant 2 : i32
    %269 = vector.broadcast %c2_i32_110 : i32 to vector<8x512xi32>
    %270 = arith.andi %268, %269 : vector<8x512xi32>
    %c0_i32_111 = arith.constant 0 : i32
    %271 = vector.broadcast %c0_i32_111 : i32 to vector<8x512xi32>
    %272 = arith.cmpi ne, %270, %271 : vector<8x512xi32>
    %cst_112 = arith.constant 0.000000e+00 : f32
    %273 = vector.broadcast %cst_112 : f32 to vector<8x512xf32>
    %274 = arith.subf %273, %259 : vector<8x512xf32>
    %275 = arith.select %272, %274, %259 : vector<8x512xi1>, vector<8x512xf32>
    %276 = arith.mulf %214, %275 : vector<8x512xf32>
    %277 = arith.addf %208, %276 : vector<8x512xf32>
    %278 = arith.mulf %214, %266 : vector<8x512xf32>
    %279 = arith.addf %210, %278 : vector<8x512xf32>
    %c4 = arith.constant 4 : index
    %c0_113 = arith.constant 0 : index
    %c0_114 = arith.constant 0 : index
    %280 = vector.load %arg3[%c4, %c0_113, %c0_114] : memref<5x1x512xf32, #tpu.memory_space<vmem>>, vector<1x1x512xf32>
    %281 = vector.shape_cast %280 : vector<1x1x512xf32> to vector<1x512xf32>
    %282 = vector.broadcast %281 : vector<1x512xf32> to vector<8x512xf32>
    %283 = arith.mulf %0, %282 : vector<8x512xf32>
    %c4_115 = arith.constant 4 : index
    %c0_116 = arith.constant 0 : index
    %c0_117 = arith.constant 0 : index
    %284 = vector.load %arg5[%c4_115, %c0_116, %c0_117] : memref<5x1x512xf32, #tpu.memory_space<vmem>>, vector<1x1x512xf32>
    %285 = vector.shape_cast %284 : vector<1x1x512xf32> to vector<1x512xf32>
    %286 = vector.broadcast %285 : vector<1x512xf32> to vector<8x512xf32>
    %287 = arith.addf %1, %286 : vector<8x512xf32>
    %c4_118 = arith.constant 4 : index
    %c0_119 = arith.constant 0 : index
    %c0_120 = arith.constant 0 : index
    %288 = vector.load %arg4[%c4_118, %c0_119, %c0_120] : memref<5x1x512xf32, #tpu.memory_space<vmem>>, vector<1x1x512xf32>
    %289 = vector.shape_cast %288 : vector<1x1x512xf32> to vector<1x512xf32>
    %290 = vector.broadcast %289 : vector<1x512xf32> to vector<8x512xf32>
    %291 = arith.mulf %287, %290 : vector<8x512xf32>
    %cst_121 = arith.constant 0.636619746 : f32
    %292 = vector.broadcast %cst_121 : f32 to vector<8x512xf32>
    %293 = arith.mulf %291, %292 : vector<8x512xf32>
    %294 = math.roundeven %293 : vector<8x512xf32>
    %cst_122 = arith.constant 1.57079637 : f32
    %295 = vector.broadcast %cst_122 : f32 to vector<8x512xf32>
    %296 = arith.mulf %294, %295 : vector<8x512xf32>
    %297 = arith.subf %291, %296 : vector<8x512xf32>
    %298 = arith.fptosi %294 : vector<8x512xf32> to vector<8x512xi32>
    %c3_i32_123 = arith.constant 3 : i32
    %299 = vector.broadcast %c3_i32_123 : i32 to vector<8x512xi32>
    %300 = arith.andi %298, %299 : vector<8x512xi32>
    %301 = arith.mulf %297, %297 : vector<8x512xf32>
    %cst_124 = arith.constant -1.98412701E-4 : f32
    %302 = vector.broadcast %cst_124 : f32 to vector<8x512xf32>
    %303 = arith.mulf %301, %302 : vector<8x512xf32>
    %cst_125 = arith.constant 0.00833333377 : f32
    %304 = vector.broadcast %cst_125 : f32 to vector<8x512xf32>
    %305 = arith.addf %304, %303 : vector<8x512xf32>
    %306 = arith.mulf %301, %305 : vector<8x512xf32>
    %cst_126 = arith.constant -0.166666672 : f32
    %307 = vector.broadcast %cst_126 : f32 to vector<8x512xf32>
    %308 = arith.addf %307, %306 : vector<8x512xf32>
    %309 = arith.mulf %301, %308 : vector<8x512xf32>
    %cst_127 = arith.constant 1.000000e+00 : f32
    %310 = vector.broadcast %cst_127 : f32 to vector<8x512xf32>
    %311 = arith.addf %310, %309 : vector<8x512xf32>
    %312 = arith.mulf %297, %311 : vector<8x512xf32>
    %cst_128 = arith.constant -0.00138888892 : f32
    %313 = vector.broadcast %cst_128 : f32 to vector<8x512xf32>
    %314 = arith.mulf %301, %313 : vector<8x512xf32>
    %cst_129 = arith.constant 0.0416666679 : f32
    %315 = vector.broadcast %cst_129 : f32 to vector<8x512xf32>
    %316 = arith.addf %315, %314 : vector<8x512xf32>
    %317 = arith.mulf %301, %316 : vector<8x512xf32>
    %cst_130 = arith.constant -5.000000e-01 : f32
    %318 = vector.broadcast %cst_130 : f32 to vector<8x512xf32>
    %319 = arith.addf %318, %317 : vector<8x512xf32>
    %320 = arith.mulf %301, %319 : vector<8x512xf32>
    %cst_131 = arith.constant 1.000000e+00 : f32
    %321 = vector.broadcast %cst_131 : f32 to vector<8x512xf32>
    %322 = arith.addf %321, %320 : vector<8x512xf32>
    %c1_i32_132 = arith.constant 1 : i32
    %323 = vector.broadcast %c1_i32_132 : i32 to vector<8x512xi32>
    %324 = arith.andi %300, %323 : vector<8x512xi32>
    %c0_i32_133 = arith.constant 0 : i32
    %325 = vector.broadcast %c0_i32_133 : i32 to vector<8x512xi32>
    %326 = arith.cmpi ne, %324, %325 : vector<8x512xi32>
    %327 = arith.select %326, %322, %312 : vector<8x512xi1>, vector<8x512xf32>
    %328 = arith.select %326, %312, %322 : vector<8x512xi1>, vector<8x512xf32>
    %c2_i32_134 = arith.constant 2 : i32
    %329 = vector.broadcast %c2_i32_134 : i32 to vector<8x512xi32>
    %330 = arith.andi %300, %329 : vector<8x512xi32>
    %c0_i32_135 = arith.constant 0 : i32
    %331 = vector.broadcast %c0_i32_135 : i32 to vector<8x512xi32>
    %332 = arith.cmpi ne, %330, %331 : vector<8x512xi32>
    %cst_136 = arith.constant 0.000000e+00 : f32
    %333 = vector.broadcast %cst_136 : f32 to vector<8x512xf32>
    %334 = arith.subf %333, %327 : vector<8x512xf32>
    %335 = arith.select %332, %334, %327 : vector<8x512xi1>, vector<8x512xf32>
    %c1_i32_137 = arith.constant 1 : i32
    %336 = vector.broadcast %c1_i32_137 : i32 to vector<8x512xi32>
    %337 = arith.addi %300, %336 : vector<8x512xi32>
    %c2_i32_138 = arith.constant 2 : i32
    %338 = vector.broadcast %c2_i32_138 : i32 to vector<8x512xi32>
    %339 = arith.andi %337, %338 : vector<8x512xi32>
    %c0_i32_139 = arith.constant 0 : i32
    %340 = vector.broadcast %c0_i32_139 : i32 to vector<8x512xi32>
    %341 = arith.cmpi ne, %339, %340 : vector<8x512xi32>
    %cst_140 = arith.constant 0.000000e+00 : f32
    %342 = vector.broadcast %cst_140 : f32 to vector<8x512xf32>
    %343 = arith.subf %342, %328 : vector<8x512xf32>
    %344 = arith.select %341, %343, %328 : vector<8x512xi1>, vector<8x512xf32>
    %345 = arith.mulf %283, %344 : vector<8x512xf32>
    %346 = arith.addf %277, %345 : vector<8x512xf32>
    %347 = arith.mulf %283, %335 : vector<8x512xf32>
    %348 = arith.addf %279, %347 : vector<8x512xf32>
    %349 = arith.truncf %346 : vector<8x512xf32> to vector<8x512xbf16>
    %c0_141 = arith.constant 0 : index
    %c0_142 = arith.constant 0 : index
    %350 = vector.load %arg6[%c0_141, %c0_142] : memref<512x256xbf16, #tpu.memory_space<vmem>>, vector<512x256xbf16>
    %cst_143 = arith.constant dense<0.000000e+00> : vector<8x256xf32>
    %351 = tpu.matmul %349, %350, %cst_143 {dimension_numbers = #tpu.dot_dimension_numbers<[1], [0], [0], [1], [0, 0, 1, 1], [], []>} : vector<8x512xbf16>, vector<512x256xbf16>, vector<8x256xf32> -> vector<8x256xf32>
    %352 = arith.truncf %348 : vector<8x512xf32> to vector<8x512xbf16>
    %c0_144 = arith.constant 0 : index
    %c0_145 = arith.constant 0 : index
    %353 = vector.load %arg7[%c0_144, %c0_145] : memref<512x256xbf16, #tpu.memory_space<vmem>>, vector<512x256xbf16>
    %cst_146 = arith.constant dense<0.000000e+00> : vector<8x256xf32>
    %354 = tpu.matmul %352, %353, %cst_146 {dimension_numbers = #tpu.dot_dimension_numbers<[1], [0], [0], [1], [0, 0, 1, 1], [], []>} : vector<8x512xbf16>, vector<512x256xbf16>, vector<8x256xf32> -> vector<8x256xf32>
    %355 = arith.addf %351, %354 : vector<8x256xf32>
    %c0_147 = arith.constant 0 : index
    %c0_148 = arith.constant 0 : index
    %356 = vector.load %arg8[%c0_147, %c0_148] : memref<1x256xf32, #tpu.memory_space<vmem>>, vector<1x256xf32>
    %357 = vector.broadcast %356 : vector<1x256xf32> to vector<8x256xf32>
    %358 = arith.addf %355, %357 : vector<8x256xf32>
    %cst_149 = arith.constant 0.000000e+00 : f32
    %359 = vector.broadcast %cst_149 : f32 to vector<8x256xf32>
    %360 = arith.maximumf %358, %359 : vector<8x256xf32>
    %361 = arith.truncf %360 : vector<8x256xf32> to vector<8x256xbf16>
    %c0_150 = arith.constant 0 : index
    %c0_151 = arith.constant 0 : index
    %362 = vector.load %arg9[%c0_150, %c0_151] : memref<256x256xbf16, #tpu.memory_space<vmem>>, vector<256x256xbf16>
    %cst_152 = arith.constant dense<0.000000e+00> : vector<8x256xf32>
    %363 = tpu.matmul %361, %362, %cst_152 {dimension_numbers = #tpu.dot_dimension_numbers<[1], [0], [0], [1], [0, 0, 1, 1], [], []>} : vector<8x256xbf16>, vector<256x256xbf16>, vector<8x256xf32> -> vector<8x256xf32>
    %c0_153 = arith.constant 0 : index
    %c0_154 = arith.constant 0 : index
    %364 = vector.load %arg10[%c0_153, %c0_154] : memref<1x256xf32, #tpu.memory_space<vmem>>, vector<1x256xf32>
    %365 = vector.broadcast %364 : vector<1x256xf32> to vector<8x256xf32>
    %366 = arith.addf %363, %365 : vector<8x256xf32>
    %cst_155 = arith.constant 0.000000e+00 : f32
    %367 = vector.broadcast %cst_155 : f32 to vector<8x256xf32>
    %368 = arith.maximumf %366, %367 : vector<8x256xf32>
    %369 = arith.truncf %368 : vector<8x256xf32> to vector<8x256xbf16>
    %c0_156 = arith.constant 0 : index
    %c0_157 = arith.constant 0 : index
    %370 = vector.load %arg11[%c0_156, %c0_157] : memref<256x128xbf16, #tpu.memory_space<vmem>>, vector<256x128xbf16>
    %cst_158 = arith.constant dense<0.000000e+00> : vector<8x128xf32>
    %371 = tpu.matmul %369, %370, %cst_158 {dimension_numbers = #tpu.dot_dimension_numbers<[1], [0], [0], [1], [0, 0, 1, 1], [], []>} : vector<8x256xbf16>, vector<256x128xbf16>, vector<8x128xf32> -> vector<8x128xf32>
    %c0_159 = arith.constant 0 : index
    %c0_160 = arith.constant 0 : index
    %372 = vector.load %arg12[%c0_159, %c0_160] : memref<1x128xf32, #tpu.memory_space<vmem>>, vector<1x128xf32>
    %373 = vector.broadcast %372 : vector<1x128xf32> to vector<8x128xf32>
    %374 = arith.addf %371, %373 : vector<8x128xf32>
    %c0_161 = arith.constant 0 : index
    %c0_162 = arith.constant 0 : index
    %375 = vector.load %arg13[%c0_161, %c0_162] : memref<8x128xf32, #tpu.memory_space<vmem>>, vector<8x128xf32>
    tpu.vector_store %arg13[%c0_161, %c0_162], %374 {strides = array<i32>} : memref<8x128xf32, #tpu.memory_space<vmem>>, vector<8x128xf32>,
    return
  }
  func.func @transform_0(%arg0: i32) -> (i32, i32) {
    %c0_i32 = arith.constant 0 : i32
    %c0_i32_0 = arith.constant 0 : i32
    return %arg0, %c0_i32 : i32, i32
  }
  func.func @transform_1(%arg0: i32) -> (i32, i32) {
    %c0_i32 = arith.constant 0 : i32
    %c0_i32_0 = arith.constant 0 : i32
    return %arg0, %c0_i32 : i32, i32
  }
  func.func @transform_2(%arg0: i32) -> (i32, i32, i32) {
    %c0_i32 = arith.constant 0 : i32
    %c0_i32_0 = arith.constant 0 : i32
    %c0_i32_1 = arith.constant 0 : i32
    %c0_i32_2 = arith.constant 0 : i32
    return %c0_i32, %c0_i32_0, %c0_i32_1 : i32, i32, i32
  }
  func.func @transform_3(%arg0: i32) -> (i32, i32, i32) {
    %c0_i32 = arith.constant 0 : i32
    %c0_i32_0 = arith.constant 0 : i32
    %c0_i32_1 = arith.constant 0 : i32
    %c0_i32_2 = arith.constant 0 : i32
    return %c0_i32, %c0_i32_0, %c0_i32_1 : i32, i32, i32
  }
  func.func @transform_4(%arg0: i32) -> (i32, i32, i32) {
    %c0_i32 = arith.constant 0 : i32
    %c0_i32_0 = arith.constant 0 : i32
    %c0_i32_1 = arith.constant 0 : i32
    %c0_i32_2 = arith.constant 0 : i32
    return %c0_i32, %c0_i32_0, %c0_i32_1 : i32, i32, i32
  }
  func.func @transform_5(%arg0: i32) -> (i32, i32) {
    %c0_i32 = arith.constant 0 : i32
    %c0_i32_0 = arith.constant 0 : i32
    %c0_i32_1 = arith.constant 0 : i32
    return %c0_i32, %c0_i32_0 : i32, i32
  }
  func.func @transform_6(%arg0: i32) -> (i32, i32) {
    %c0_i32 = arith.constant 0 : i32
    %c0_i32_0 = arith.constant 0 : i32
    %c0_i32_1 = arith.constant 0 : i32
    return %c0_i32, %c0_i32_0 : i32, i32
  }
  func.func @transform_7(%arg0: i32) -> (i32, i32) {
    %c0_i32 = arith.constant 0 : i32
    %c0_i32_0 = arith.constant 0 : i32
    %c0_i32_1 = arith.constant 0 : i32
    return %c0_i32, %c0_i32_0 : i32, i32
  }
  func.func @transform_8(%arg0: i32) -> (i32, i32) {
    %c0_i32 = arith.constant 0 : i32
    %c0_i32_0 = arith.constant 0 : i32
    %c0_i32_1 = arith.constant 0 : i32
    return %c0_i32, %c0_i32_0 : i32, i32
  }
  func.func @transform_9(%arg0: i32) -> (i32, i32) {
    %c0_i32 = arith.constant 0 : i32
    %c0_i32_0 = arith.constant 0 : i32
    %c0_i32_1 = arith.constant 0 : i32
    return %c0_i32, %c0_i32_0 : i32, i32
  }
  func.func @transform_10(%arg0: i32) -> (i32, i32) {
    %c0_i32 = arith.constant 0 : i32
    %c0_i32_0 = arith.constant 0 : i32
    %c0_i32_1 = arith.constant 0 : i32
    return %c0_i32, %c0_i32_0 : i32, i32
  }
  func.func @transform_11(%arg0: i32) -> (i32, i32) {
    %c0_i32 = arith.constant 0 : i32
    %c0_i32_0 = arith.constant 0 : i32
    %c0_i32_1 = arith.constant 0 : i32
    return %c0_i32, %c0_i32_0 : i32, i32
  }
  func.func @transform_12(%arg0: i32) -> (i32, i32) {
    %c0_i32 = arith.constant 0 : i32
    %c0_i32_0 = arith.constant 0 : i32
    return %arg0, %c0_i32 : i32, i32
  }
}

</mosaic_0001>

<bundles_post_ra>
// kernel: tpu_custom_call.1
= control target key start
LH: loop header
LB: loop body
LE: loop exit
PB: predicated region body
PF: predicated region fallthrough
CT: control target
= control target key end

     0   :  { %17 = vsyncpa [#allocation3], 0  ;;  %s4728_s0 = inlined_call_operand.hbm [shape: f32[8,512], index: 0, kind: input, shape index: {}]   ;;  %s4729_s1 = inlined_call_operand.hbm [shape: f32[8,512], index: 1, kind: input, shape index: {}]   ;;  %s4730_s2 = inlined_call_operand.hbm [shape: f32[5,1,512], index: 2, kind: input, shape index: {}]   ;;  %s4731_s3 = inlined_call_operand.hbm [shape: f32[5,1,512], index: 3, kind: input, shape index: {}]   ;;  %s4732_s4 = inlined_call_operand.hbm [shape: f32[5,1,512], index: 4, kind: input, shape index: {}]   ;;  %s4733_s5 = inlined_call_operand.hbm [shape: bf16[512,256], index: 5, kind: input, shape index: {}]   ;;  %s4734_s6 = inlined_call_operand.hbm [shape: bf16[512,256], index: 6, kind: input, shape index: {}]   ;;  %s4735_s7 = inlined_call_operand.vmem [shape: f32[1,256], index: 7, kind: input, shape index: {}]   ;;  %s4736_s8 = inlined_call_operand.hbm [shape: bf16[256,256], index: 8, kind: input, shape index: {}]   ;;  %s4737_s9 = inlined_call_operand.vmem [shape: f32[1,256], index: 9, kind: input, shape index: {}]   ;;  %s4738_s10 = inlined_call_operand.hbm [shape: bf16[256,128], index: 10, kind: input, shape index: {}]   ;;  %s4739_s11 = inlined_call_operand.vmem [shape: f32[1,128], index: 11, kind: input, shape index: {}]   ;;  %s4740_s12 = inlined_call_operand.hbm [shape: f32[8,128], index: 12, kind: output, shape index: {}]  }
   0x1   :  { %18 = vsyncpa [#allocation6], 0 }
   0x2   :  { %19 = vsyncpa [#allocation9], 0 }
   0x3   :  { %20 = vsyncpa [#allocation12], 0 }
   0x4   :  { %21 = vsyncpa [#allocation15], 0 }
   0x5   :  { %22 = vsyncpa [#allocation4], 0  ;;  %s3509_s21 = smov [#allocation5]   ;;  %s3277_s25 = scalar_lea.hbm %s4729_s1, 512 }
   0x6   :  { %s39_s22 = sshll.u32 %s3509_s21, 4  ;;  %p3278_p0 = scmp.ne.s32.totalorder %s4729_s1, %s3277_s25  ;;  %s40_s22 = int_to_ptr.vmem [resolvable:$true] %s39_s22 }
   0x7   :  { %p3281_p1 = scmp.lt.u32.totalorder %s3277_s25, %s4729_s1 }
   0x9   :  { %p3283_p2 = pnand %p3281_p1, %p3278_p0 }
   0xb   :  { %3286 = shalt.err (!%p3283_p2)
}
   0xc   :  { %s3287_s30 = scalar_lea.vmem %s40_s22, 512  ;;  %p3292_p4 = scmp.lt.s32.totalorder %s40_s22, %s40_s22 }
   0xd   :  { %p3288_p3 = scmp.ne.s32.totalorder %s40_s22, %s3287_s30  ;;  %p3293_p5 = scmp.lt.s32.totalorder %s3287_s30, %s3287_s30 }
   0xf   :  { %p3294_p6 = por %p3293_p5, %p3292_p4 }
  0x11   :  { %p3295_p7 = pnand %p3294_p6, %p3288_p3 }
  0x13   :  { %3298 = shalt.err (!%p3295_p7)
}
  0x14   :  { %42 = dma.hbm_to_vmem [thread:$0]  %s4729_s1, 512, %s40_s22, [#allocation6]  }
  0x15   :  { %s3510_s15 = smov [#allocation8]   ;;  %s3511_s17 = smov [#allocation11]  }
  0x16   :  { %s60_s16 = sshll.u32 %s3510_s15, 4  ;;  %s84_s18 = sshll.u32 %s3511_s17, 4  ;;  %s61_s16 = int_to_ptr.vmem [resolvable:$true] %s60_s16  ;;  %s85_s18 = int_to_ptr.vmem [resolvable:$true] %s84_s18 }
  0x17   :  { %s3299_s21 = scalar_lea.hbm %s4731_s3, 320 }
  0x18   :  { %p3300_p8 = scmp.ne.s32.totalorder %s4731_s3, %s3299_s21  ;;  %p3303_p9 = scmp.lt.u32.totalorder %s3299_s21, %s4731_s3 }
  0x1a   :  { %p3305_p10 = pnand %p3303_p9, %p3300_p8 }
  0x1c   :  { %3308 = shalt.err (!%p3305_p10)
}
  0x1d   :  { %s3309_s1 = scalar_lea.vmem %s61_s16, 320  ;;  %p3314_p12 = scmp.lt.s32.totalorder %s61_s16, %s61_s16 }
  0x1e   :  { %p3310_p11 = scmp.ne.s32.totalorder %s61_s16, %s3309_s1  ;;  %p3315_p13 = scmp.lt.s32.totalorder %s3309_s1, %s3309_s1 }
  0x20   :  { %p3316_p0 = por %p3315_p13, %p3314_p12 }
  0x22   :  { %p3317_p1 = pnand %p3316_p0, %p3310_p11 }
  0x24   :  { %3320 = shalt.err (!%p3317_p1)
}
  0x25   :  { %s3512_s22 = smov 64   ;;  %s3513_s27 = smov 4  }
  0x26   :  { %66 = dma.hbm_to_vmem [thread:$0]  %s4731_s3, 320, %s61_s16, [#allocation9], %s3512_s22, %s3512_s22, %s3513_s27  }
  0x27   :  { %s3321_s14 = scalar_lea.hbm %s4733_s5, 8192 }
  0x28   :  { %p3322_p2 = scmp.ne.s32.totalorder %s4733_s5, %s3321_s14  ;;  %p3325_p3 = scmp.lt.u32.totalorder %s3321_s14, %s4733_s5 }
  0x2a   :  { %p3327_p4 = pnand %p3325_p3, %p3322_p2 }
  0x2c   :  { %3330 = shalt.err (!%p3327_p4)
}
  0x2d   :  { %s3331_s21 = scalar_lea.vmem %s85_s18, 8192  ;;  %p3336_p6 = scmp.lt.s32.totalorder %s85_s18, %s85_s18 }
  0x2e   :  { %p3332_p5 = scmp.ne.s32.totalorder %s85_s18, %s3331_s21  ;;  %p3337_p7 = scmp.lt.s32.totalorder %s3331_s21, %s3331_s21 }
  0x30   :  { %p3338_p8 = por %p3337_p7, %p3336_p6 }
  0x32   :  { %p3339_p9 = pnand %p3338_p8, %p3332_p5 }
  0x34   :  { %3342 = shalt.err (!%p3339_p9)
}
  0x35   :  { %s3514_s3 = smov 128   ;;  %s3515_s16 = smov 8  }
  0x36   :  { %90 = dma.hbm_to_vmem [thread:$0]  %s4733_s5, 8192, %s85_s18, [#allocation12], %s3514_s3, %s3514_s3, %s3515_s16  }
  0x37   :  { %s3516_s25 = smov [#allocation14]   ;;  %s3517_s1 = smov [#allocation2]  }
  0x38   :  { %s110_s26 = sshll.u32 %s3516_s25, 4  ;;  %s29_s28 = sshll.u32 %s3517_s1, 4  ;;  %s111_s26 = int_to_ptr.vmem [resolvable:$true] %s110_s26  ;;  %s30_s28 = int_to_ptr.vmem [resolvable:$true] %s29_s28 }
  0x39   :  { %s3343_s13 = scalar_lea.hbm %s4736_s8, 4096 }
  0x3a   :  { %p3344_p10 = scmp.ne.s32.totalorder %s4736_s8, %s3343_s13  ;;  %p3347_p11 = scmp.lt.u32.totalorder %s3343_s13, %s4736_s8 }
  0x3c   :  { %p3349_p12 = pnand %p3347_p11, %p3344_p10 }
  0x3e   :  { %3352 = shalt.err (!%p3349_p12)
}
  0x3f   :  { %s3353_s5 = scalar_lea.vmem %s111_s26, 4096  ;;  %p3358_p0 = scmp.lt.s32.totalorder %s111_s26, %s111_s26 }
  0x40   :  { %p3354_p13 = scmp.ne.s32.totalorder %s111_s26, %s3353_s5  ;;  %p3359_p1 = scmp.lt.s32.totalorder %s3353_s5, %s3353_s5 }
  0x42   :  { %p3360_p2 = por %p3359_p1, %p3358_p0 }
  0x44   :  { %p3361_p3 = pnand %p3360_p2, %p3354_p13 }
  0x46   :  { %3364 = shalt.err (!%p3361_p3)
}
  0x47   :  { %116 = dma.hbm_to_vmem [thread:$0]  %s4736_s8, 4096, %s111_s26, [#allocation15], %s3514_s3, %s3514_s3, %s3515_s16  }
  0x48   :  { %s3365_s24 = scalar_lea.hbm %s4728_s0, 512 }
  0x49   :  { %p3366_p4 = scmp.ne.s32.totalorder %s4728_s0, %s3365_s24  ;;  %p3369_p5 = scmp.lt.u32.totalorder %s3365_s24, %s4728_s0 }
  0x4b   :  { %p3371_p6 = pnand %p3369_p5, %p3366_p4 }
  0x4d   :  { %3374 = shalt.err (!%p3371_p6)
}
  0x4e   :  { %s3375_s13 = scalar_lea.vmem %s30_s28, 512  ;;  %p3380_p8 = scmp.lt.s32.totalorder %s30_s28, %s30_s28 }
  0x4f   :  { %p3376_p7 = scmp.ne.s32.totalorder %s30_s28, %s3375_s13  ;;  %p3381_p9 = scmp.lt.s32.totalorder %s3375_s13, %s3375_s13 }
  0x51   :  { %p3382_p10 = por %p3381_p9, %p3380_p8 }
  0x53   :  { %p3383_p11 = pnand %p3382_p10, %p3376_p7 }
  0x55   :  { %3386 = shalt.err (!%p3383_p11)
}
  0x56   :  { %32 = dma.hbm_to_vmem [thread:$0]  %s4728_s0, 512, %s30_s28, [#allocation3]  }
  0x57   :  { %s3518_s14 = smov [#allocation7]   ;;  %s3519_s17 = smov [#allocation10]  }
  0x58   :  { %s48_s15 = sshll.u32 %s3518_s14, 4  ;;  %s72_s19 = sshll.u32 %s3519_s17, 4  ;;  %s49_s15 = int_to_ptr.vmem [resolvable:$true] %s48_s15  ;;  %s73_s19 = int_to_ptr.vmem [resolvable:$true] %s72_s19 }
  0x59   :  { %s3387_s20 = scalar_lea.hbm %s4730_s2, 320 }
  0x5a   :  { %p3388_p12 = scmp.ne.s32.totalorder %s4730_s2, %s3387_s20  ;;  %p3391_p13 = scmp.lt.u32.totalorder %s3387_s20, %s4730_s2 }
  0x5c   :  { %p3393_p0 = pnand %p3391_p13, %p3388_p12 }
  0x5e   :  { %3396 = shalt.err (!%p3393_p0)
}
  0x5f   :  { %s3397_s0 = scalar_lea.vmem %s49_s15, 320  ;;  %p3402_p2 = scmp.lt.s32.totalorder %s49_s15, %s49_s15 }
  0x60   :  { %p3398_p1 = scmp.ne.s32.totalorder %s49_s15, %s3397_s0  ;;  %p3403_p3 = scmp.lt.s32.totalorder %s3397_s0, %s3397_s0 }
  0x62   :  { %p3404_p4 = por %p3403_p3, %p3402_p2 }
  0x64   :  { %p3405_p5 = pnand %p3404_p4, %p3398_p1 }
  0x66   :  { %3408 = shalt.err (!%p3405_p5)
}
  0x67   :  { %54 = dma.hbm_to_vmem [thread:$0]  %s4730_s2, 320, %s49_s15, [#allocation6], %s3512_s22, %s3512_s22, %s3513_s27  }
  0x68   :  { %s3409_s13 = scalar_lea.hbm %s4732_s4, 320 }
  0x69   :  { %p3410_p6 = scmp.ne.s32.totalorder %s4732_s4, %s3409_s13  ;;  %p3413_p7 = scmp.lt.u32.totalorder %s3409_s13, %s4732_s4 }
  0x6b   :  { %p3415_p8 = pnand %p3413_p7, %p3410_p6 }
  0x6d   :  { %3418 = shalt.err (!%p3415_p8)
}
  0x6e   :  { %s3419_s5 = scalar_lea.vmem %s73_s19, 320  ;;  %p3424_p10 = scmp.lt.s32.totalorder %s73_s19, %s73_s19 }
  0x6f   :  { %p3420_p9 = scmp.ne.s32.totalorder %s73_s19, %s3419_s5  ;;  %p3425_p11 = scmp.lt.s32.totalorder %s3419_s5, %s3419_s5 }
  0x71   :  { %p3426_p12 = por %p3425_p11, %p3424_p10 }
  0x73   :  { %p3427_p13 = pnand %p3426_p12, %p3420_p9 }
  0x75   :  { %3430 = shalt.err (!%p3427_p13)
}
  0x76   :  { %78 = dma.hbm_to_vmem [thread:$0]  %s4732_s4, 320, %s73_s19, [#allocation9], %s3512_s22, %s3512_s22, %s3513_s27  }
  0x77   :  { %s3520_s18 = smov [#allocation13]   ;;  %s3521_s21 = smov [#allocation16]  }
  0x78   :  { %s96_s20 = sshll.u32 %s3520_s18, 4  ;;  %s124_s23 = sshll.u32 %s3521_s21, 4  ;;  %s97_s20 = int_to_ptr.vmem [resolvable:$true] %s96_s20  ;;  %s125_s23 = int_to_ptr.vmem [resolvable:$true] %s124_s23 }
  0x79   :  { %s3431_s0 = scalar_lea.hbm %s4734_s6, 8192 }
  0x7a   :  { %p3432_p0 = scmp.ne.s32.totalorder %s4734_s6, %s3431_s0  ;;  %p3435_p1 = scmp.lt.u32.totalorder %s3431_s0, %s4734_s6 }
  0x7c   :  { %p3437_p2 = pnand %p3435_p1, %p3432_p0 }
  0x7e   :  { %3440 = shalt.err (!%p3437_p2)
}
  0x7f   :  { %s3441_s4 = scalar_lea.vmem %s97_s20, 8192  ;;  %p3446_p4 = scmp.lt.s32.totalorder %s97_s20, %s97_s20 }
  0x80   :  { %p3442_p3 = scmp.ne.s32.totalorder %s97_s20, %s3441_s4  ;;  %p3447_p5 = scmp.lt.s32.totalorder %s3441_s4, %s3441_s4 }
  0x82   :  { %p3448_p6 = por %p3447_p5, %p3446_p4 }
  0x84   :  { %p3449_p7 = pnand %p3448_p6, %p3442_p3 }
  0x86   :  { %3452 = shalt.err (!%p3449_p7)
}
  0x87   :  { %102 = dma.hbm_to_vmem [thread:$0]  %s4734_s6, 8192, %s97_s20, [#allocation12], %s3514_s3, %s3514_s3, %s3515_s16  }
  0x88   :  { %s3453_s14 = scalar_lea.hbm %s4738_s10, 2048 }
  0x89   :  { %p3454_p8 = scmp.ne.s32.totalorder %s4738_s10, %s3453_s14  ;;  %p3457_p9 = scmp.lt.u32.totalorder %s3453_s14, %s4738_s10 }
  0x8b   :  { %p3459_p10 = pnand %p3457_p9, %p3454_p8 }
  0x8d   :  { %3462 = shalt.err (!%p3459_p10)
}
  0x8e   :  { %s3463_s18 = scalar_lea.vmem %s125_s23, 2048  ;;  %p3468_p12 = scmp.lt.s32.totalorder %s125_s23, %s125_s23 }
  0x8f   :  { %p3464_p11 = scmp.ne.s32.totalorder %s125_s23, %s3463_s18  ;;  %p3469_p13 = scmp.lt.s32.totalorder %s3463_s18, %s3463_s18 }
  0x91   :  { %p3470_p0 = por %p3469_p13, %p3468_p12 }
  0x93   :  { %p3471_p1 = pnand %p3470_p0, %p3464_p11 }
  0x95   :  { %3474 = shalt.err (!%p3471_p1)
}
  0x96   :  { %130 = dma.hbm_to_vmem [thread:$0]  %s4738_s10, 2048, %s125_s23, [#allocation15], %s3512_s22, %s3512_s22, %s3513_s27  }
  0x97   :  { %3497 = dma.done.wait [#allocation3], 512  }
  0x98   :  { %3498 = vsyncadd [#allocation3], 4294966784 }
  0x99   :  { %3499 = dma.done.wait [#allocation6], 832  }
  0x9a   :  { %3500 = vsyncadd [#allocation6], 4294966464 }
  0x9b   :  { %3501 = dma.done.wait [#allocation9], 640  }
  0x9c   :  { %3502 = vsyncadd [#allocation9], 4294966656 }
  0x9d   :  { %3503 = dma.done.wait [#allocation12], 16384  }
  0x9e   :  { %3504 = vsyncadd [#allocation12], 4294950912 }
  0x9f   :  { %3505 = dma.done.wait [#allocation15], 6144  }
  0xa0   :  { %3506 = vsyncadd [#allocation15], 4294961152  ;;  %v3006_v0 = vld [vmem:[#allocation13 + $0x4] ss:$8 sps:$4 sm:$0xff]   ;;  %v3010_v2 = vld [vmem:[#allocation13] ss:$8 sps:$4 sm:$0xff]   ;;  %v171_v37 = vlaneseq }
  0xa1   :  { %v3008_v1 = vld [vmem:[#allocation13 + $0x104] ss:$8 sps:$4 sm:$0xff]   ;;  %1767 = vmatprep.subr.bf16.mxu0 %v3006_v0  ;;  %v3011_v3 = vld [vmem:[#allocation13 + $0x100] ss:$8 sps:$4 sm:$0xff]   ;;  %v3012_v4 = vld [vmem:[#allocation13 + $0x14] ss:$8 sps:$4 sm:$0xff]  }
  0xa2   :  { %1808 = vmatprep.subr.bf16.mxu1 %v3008_v1  ;;  %1768 = vmatpush1.bf16.msra.mxu0 %v3010_v2  ;;  %v3014_v5 = vld [vmem:[#allocation13 + $0x114] ss:$8 sps:$4 sm:$0xff]   ;;  %v3016_v6 = vld [vmem:[#allocation13 + $0x10] ss:$8 sps:$4 sm:$0xff]   ;;  %v3018_v8 = vld [vmem:[#allocation13 + $0x24] ss:$8 sps:$4 sm:$0xff]  }
  0xa3   :  { %1809 = vmatpush1.bf16.msra.mxu1 %v3011_v3  ;;  %1769 = vmatprep.subr.bf16.mxu0 %v3012_v4  ;;  %v3017_v7 = vld [vmem:[#allocation13 + $0x110] ss:$8 sps:$4 sm:$0xff]   ;;  %v3020_v9 = vld [vmem:[#allocation13 + $0x124] ss:$8 sps:$4 sm:$0xff]   ;;  %v3022_v10 = vld [vmem:[#allocation13 + $0x20] ss:$8 sps:$4 sm:$0xff]  }
  0xa4   :  { %1810 = vmatprep.subr.bf16.mxu1 %v3014_v5  ;;  %v3023_v11 = vld [vmem:[#allocation13 + $0x120] ss:$8 sps:$4 sm:$0xff]   ;;  %v3024_v12 = vld [vmem:[#allocation13 + $0x34] ss:$8 sps:$4 sm:$0xff]   ;;  %v3028_v14 = vld [vmem:[#allocation13 + $0x30] ss:$8 sps:$4 sm:$0xff]  }
  0xa5   :  { %v3026_v13 = vld [vmem:[#allocation13 + $0x134] ss:$8 sps:$4 sm:$0xff]   ;;  %v3029_v15 = vld [vmem:[#allocation13 + $0x130] ss:$8 sps:$4 sm:$0xff]   ;;  %v3030_v16 = vld [vmem:[#allocation13 + $0x44] ss:$8 sps:$4 sm:$0xff]  }
  0xa6   :  { %1770 = vmatpush1.bf16.msra.mxu0 %v3016_v6  ;;  %v3032_v17 = vld [vmem:[#allocation13 + $0x144] ss:$8 sps:$4 sm:$0xff]   ;;  %v3034_v18 = vld [vmem:[#allocation13 + $0x40] ss:$8 sps:$4 sm:$0xff]   ;;  %v3036_v20 = vld [vmem:[#allocation13 + $0x54] ss:$8 sps:$4 sm:$0xff]  }
  0xa7   :  { %1811 = vmatpush1.bf16.msra.mxu1 %v3017_v7  ;;  %1771 = vmatprep.subr.bf16.mxu0 %v3018_v8  ;;  %v3035_v19 = vld [vmem:[#allocation13 + $0x140] ss:$8 sps:$4 sm:$0xff]   ;;  %v3038_v21 = vld [vmem:[#allocation13 + $0x154] ss:$8 sps:$4 sm:$0xff]   ;;  %v3040_v22 = vld [vmem:[#allocation13 + $0x50] ss:$8 sps:$4 sm:$0xff]  }
  0xa8   :  { %1812 = vmatprep.subr.bf16.mxu1 %v3020_v9  ;;  %v3041_v23 = vld [vmem:[#allocation13 + $0x150] ss:$8 sps:$4 sm:$0xff]   ;;  %v3042_v24 = vld [vmem:[#allocation13 + $0x64] ss:$8 sps:$4 sm:$0xff]   ;;  %v3046_v26 = vld [vmem:[#allocation13 + $0x60] ss:$8 sps:$4 sm:$0xff]  }
  0xa9   :  { %v3044_v25 = vld [vmem:[#allocation13 + $0x164] ss:$8 sps:$4 sm:$0xff]   ;;  %v3047_v27 = vld [vmem:[#allocation13 + $0x160] ss:$8 sps:$4 sm:$0xff]   ;;  %v3048_v28 = vld [vmem:[#allocation13 + $0x74] ss:$8 sps:$4 sm:$0xff]  }
  0xaa   :  { %1772 = vmatpush1.bf16.msra.mxu0 %v3022_v10  ;;  %v3050_v29 = vld [vmem:[#allocation13 + $0x174] ss:$8 sps:$4 sm:$0xff]   ;;  %v3052_v30 = vld [vmem:[#allocation13 + $0x70] ss:$8 sps:$4 sm:$0xff]   ;;  %v3054_v32 = vld [vmem:[#allocation13 + $0x84] ss:$8 sps:$4 sm:$0xff]  }
  0xab   :  { %1813 = vmatpush1.bf16.msra.mxu1 %v3023_v11  ;;  %1773 = vmatprep.subr.bf16.mxu0 %v3024_v12  ;;  %v3053_v31 = vld [vmem:[#allocation13 + $0x170] ss:$8 sps:$4 sm:$0xff]   ;;  %v3056_v33 = vld [vmem:[#allocation13 + $0x184] ss:$8 sps:$4 sm:$0xff]   ;;  %v3058_v34 = vld [vmem:[#allocation13 + $0x80] ss:$8 sps:$4 sm:$0xff]  }
  0xac   :  { %1814 = vmatprep.subr.bf16.mxu1 %v3026_v13  ;;  %v3059_v35 = vld [vmem:[#allocation13 + $0x180] ss:$8 sps:$4 sm:$0xff]   ;;  %v3060_v36 = vld [vmem:[#allocation13 + $0x94] ss:$8 sps:$4 sm:$0xff]   ;;  %v3064_v39 = vld [vmem:[#allocation13 + $0x90] ss:$8 sps:$4 sm:$0xff]  }
  0xad   :  { %v3062_v38 = vld [vmem:[#allocation13 + $0x194] ss:$8 sps:$4 sm:$0xff]   ;;  %v3065_v40 = vld [vmem:[#allocation13 + $0x190] ss:$8 sps:$4 sm:$0xff]   ;;  %v3066_v41 = vld [vmem:[#allocation13 + $0xa4] ss:$8 sps:$4 sm:$0xff]  }
  0xae   :  { %1774 = vmatpush1.bf16.msra.mxu0 %v3028_v14  ;;  %v3717_v42 = vshrl.u32 %v171_v37, 7  ;;  %v3068_v43 = vld [vmem:[#allocation13 + $0x1a4] ss:$8 sps:$4 sm:$0xff]   ;;  %v3070_v44 = vld [vmem:[#allocation13 + $0xa0] ss:$8 sps:$4 sm:$0xff]  }
  0xaf   :  { %1815 = vmatpush1.bf16.msra.mxu1 %v3029_v15  ;;  %1775 = vmatprep.subr.bf16.mxu0 %v3030_v16  ;;  %v3071_v45 = vld [vmem:[#allocation13 + $0x1a0] ss:$8 sps:$4 sm:$0xff]   ;;  %v3072_v46 = vld [vmem:[#allocation13 + $0xb4] ss:$8 sps:$4 sm:$0xff]   ;;  %v3076_v49 = vld [vmem:[#allocation13 + $0xb0] ss:$8 sps:$4 sm:$0xff]  }
  0xb0   :  { %1816 = vmatprep.subr.bf16.mxu1 %v3032_v17  ;;  %v3720_v47 = vsub.s32 1, %v3717_v42  ;;  %v3074_v48 = vld [vmem:[#allocation13 + $0x1b4] ss:$8 sps:$4 sm:$0xff]   ;;  %v3077_v50 = vld [vmem:[#allocation13 + $0x1b0] ss:$8 sps:$4 sm:$0xff]  }
  0xb1   :  { %v3722_v51 = vld [vmem:[#allocation5 + $0x8] sm:$0xff]  ;;  %v3728_v55 = vld [vmem:[#allocation8] sm:$0xf]  ;;  %v3736_v60 = vld [vmem:[#allocation8 + $0x4] sm:$0xf] }
  0xb2   :  { %1776 = vmatpush1.bf16.msra.mxu0 %v3034_v18  ;;  %4808 = vst [vmem:[#allocation24_spill] sm:$0xff] %v3720_v47  ;;  %v3724_v52 = vld [vmem:[#allocation10] sm:$0xf]  ;;  %v3730_v56 = vld [vmem:[#allocation10 + $0x4] sm:$0xf]  ;;  %v230_v58 = vrot.slane %v3728_v55, %v3720_v47  ;;  %v459_v63 = vrot.slane %v3736_v60, %v3720_v47 }
  0xb3   :  { %1817 = vmatpush1.bf16.msra.mxu1 %v3035_v19  ;;  %1777 = vmatprep.subr.bf16.mxu0 %v3036_v20  ;;  %v3078_v53 = vld [vmem:[#allocation13 + $0xc4] ss:$8 sps:$4 sm:$0xff]   ;;  %v204_v54 = vrot.slane %v3724_v52, %v3720_v47  ;;  %v432_v59 = vrot.slane %v3730_v56, %v3720_v47  ;;  %v3738_v61 = vld [vmem:[#allocation10 + $0x8] sm:$0xf]  ;;  %v3743_v0 = vld [vmem:[#allocation8 + $0x8] sm:$0xf] }
  0xb4   :  { %1818 = vmatprep.subr.bf16.mxu1 %v3038_v21  ;;  %v3080_v57 = vld [vmem:[#allocation13 + $0x1c4] ss:$8 sps:$4 sm:$0xff]   ;;  %v3745_v1 = vld [vmem:[#allocation10 + $0xc] sm:$0xf]  ;;  %v661_v3 = vrot.slane %v3738_v61, %v3720_v47  ;;  %v688_v4 = vrot.slane %v3743_v0, %v3720_v47  ;;  %v3082_v6 = vld [vmem:[#allocation13 + $0xc0] ss:$8 sps:$4 sm:$0xff]  }
  0xb5   :  { %v218_v62 = vadd.f32 %v204_v54, %v3722_v51  ;;  %v446_v2 = vadd.f32 %v432_v59, %v3722_v51  ;;  %v3752_v5 = vld [vmem:[#allocation8 + $0xc] sm:$0xf]  ;;  %v3083_v7 = vld [vmem:[#allocation13 + $0x1c0] ss:$8 sps:$4 sm:$0xff]   ;;  %v3084_v9 = vld [vmem:[#allocation13 + $0xd4] ss:$8 sps:$4 sm:$0xff]   ;;  %v890_v14 = vrot.slane %v3745_v1, %v3720_v47 }
  0xb6   :  { %1778 = vmatpush1.bf16.msra.mxu0 %v3040_v22  ;;  %v3086_v10 = vld [vmem:[#allocation13 + $0x1d4] ss:$8 sps:$4 sm:$0xff]   ;;  %v3754_v11 = vld [vmem:[#allocation7] sm:$0xf]  ;;  %v675_v13 = vadd.f32 %v661_v3, %v3722_v51  ;;  %v3088_v15 = vld [vmem:[#allocation13 + $0xd0] ss:$8 sps:$4 sm:$0xff]   ;;  %v917_v18 = vrot.slane %v3752_v5, %v3720_v47 }
  0xb7   :  { %1819 = vmatpush1.bf16.msra.mxu1 %v3041_v23  ;;  %1779 = vmatprep.subr.bf16.mxu0 %v3042_v24  ;;  %v244_v8 = vmul.f32 %v230_v58, %v218_v62  ;;  %v473_v12 = vmul.f32 %v459_v63, %v446_v2  ;;  %v3089_v16 = vld [vmem:[#allocation13 + $0x1d0] ss:$8 sps:$4 sm:$0xff]   ;;  %v3762_v19 = vsub.s32 3, %v3717_v42  ;;  %v3090_v20 = vld [vmem:[#allocation13 + $0xe4] ss:$8 sps:$4 sm:$0xff]  }
  0xb8   :  { %1820 = vmatprep.subr.bf16.mxu1 %v3044_v25  ;;  %v3092_v21 = vld [vmem:[#allocation13 + $0x1e4] ss:$8 sps:$4 sm:$0xff]   ;;  %v3764_v22 = vld [vmem:[#allocation7 + $0x4] sm:$0xf]  ;;  %v702_v24 = vmul.f32 %v688_v4, %v675_v13  ;;  %v904_v25 = vadd.f32 %v890_v14, %v3722_v51  ;;  %v3100_v63 = vld [vmem:[#allocation13 + $0xf0] ss:$8 sps:$4 sm:$0xff]  }
  0xb9   :  { %v248_v17 = vmul.f32 0.63661975, %v244_v8  ;;  %v477_v23 = vmul.f32 0.63661975, %v473_v12  ;;  %v3094_v37 = vld [vmem:[#allocation13 + $0xe0] ss:$8 sps:$4 sm:$0xff]  }
  0xba   :  { %1780 = vmatpush1.bf16.msra.mxu0 %v3046_v26  ;;  %v3767_v26 = vld [vmem:[#allocation2 + $0x8] sm:$0xff]  ;;  %v3791_v54 = vld [vmem:[#allocation8 + $0x10] sm:$0xf] }
  0xbb   :  { %1821 = vmatpush1.bf16.msra.mxu1 %v3047_v27  ;;  %1781 = vmatprep.subr.bf16.mxu0 %v3048_v28  ;;  %v178_v27 = vrot.slane %v3754_v11, %v3720_v47  ;;  %v2913_v28 = vround.rtne.f32 %v248_v17  ;;  %v3101_v2 = vld [vmem:[#allocation13 + $0x1f0] ss:$8 sps:$4 sm:$0xff]  }
  0xbc   :  { %1822 = vmatprep.subr.bf16.mxu1 %v3050_v29  ;;  %v2921_v29 = vcvt.f32.s32 %v248_v17 }
  0xbe   :  { %1782 = vmatpush1.bf16.msra.mxu0 %v3052_v30  ;;  %v3772_v30 = vsub.s32 0, %v3717_v42 }
  0xbf   :  { %1823 = vmatpush1.bf16.msra.mxu1 %v3053_v31  ;;  %1783 = vmatprep.subr.bf16.mxu0 %v3054_v32  ;;  %v2929_v31 = vround.rtne.f32 %v477_v23  ;;  %v2937_v32 = vcvt.f32.s32 %v477_v23 }
  0xc0   :  { %1824 = vmatprep.subr.bf16.mxu1 %v3056_v33  ;;  %4809 = vst [vmem:[#allocation25_spill] sm:$0xff] %v3772_v30  ;;  %v3774_v33 = vld [vmem:[#allocation7 + $0x8] sm:$0xf] }
  0xc1   :  { %v634_v4 = vrot.slane %v3774_v33, %v3720_v47 }
  0xc2   :  { %1784 = vmatpush1.bf16.msra.mxu0 %v3058_v34  ;;  %v706_v34 = vmul.f32 0.63661975, %v702_v24 }
  0xc3   :  { %1825 = vmatpush1.bf16.msra.mxu1 %v3059_v35  ;;  %1785 = vmatprep.subr.bf16.mxu0 %v3060_v36  ;;  %v3776_v35 = vmul.f32 %v917_v18, %v904_v25  ;;  %v3778_v36 = vld [vmem:[#allocation10 + $0x10] sm:$0xf] }
  0xc4   :  { %1826 = vmatprep.subr.bf16.mxu1 %v3062_v38  ;;  %v3095_v38 = vld [vmem:[#allocation13 + $0x1e0] ss:$8 sps:$4 sm:$0xff]  }
  0xc5   :  { %v935_v62 = vmul.f32 0.63661975, %v3776_v35 }
  0xc6   :  { %1786 = vmatpush1.bf16.msra.mxu0 %v3064_v39  ;;  %v256_v39 = vmul.f32 1.5707964, %v2913_v28 }
  0xc7   :  { %1827 = vmatpush1.bf16.msra.mxu1 %v3065_v40  ;;  %1787 = vmatprep.subr.bf16.mxu0 %v3066_v41  ;;  %v3781_v40 = vsub.s32 2, %v3717_v42  ;;  %v3096_v41 = vld [vmem:[#allocation13 + $0xf4] ss:$8 sps:$4 sm:$0xff]  }
  0xc8   :  { %1828 = vmatprep.subr.bf16.mxu1 %v3068_v43  ;;  %v3098_v43 = vld [vmem:[#allocation13 + $0x1f4] ss:$8 sps:$4 sm:$0xff]  }
  0xca   :  { %1788 = vmatpush1.bf16.msra.mxu0 %v3070_v44  ;;  %v3783_v44 = vand.u32 3, %v2921_v29 }
  0xcb   :  { %1829 = vmatpush1.bf16.msra.mxu1 %v3071_v45  ;;  %1789 = vmatprep.subr.bf16.mxu0 %v3072_v46  ;;  %v485_v45 = vmul.f32 1.5707964, %v2929_v31  ;;  %v2945_v46 = vround.rtne.f32 %v706_v34 }
  0xcc   :  { %1830 = vmatprep.subr.bf16.mxu1 %v3074_v48  ;;  %v2953_v48 = vcvt.f32.s32 %v706_v34 }
  0xcd   :  { %v3798_v58 = vsub.f32 %v473_v12, %v485_v45  ;;  %v714_v59 = vmul.f32 1.5707964, %v2945_v46  ;;  %v1146_v12 = vrot.slane %v3791_v54, %v3720_v47 }
  0xce   :  { %1790 = vmatpush1.bf16.msra.mxu0 %v3076_v49  ;;  %v3785_v49 = vsub.f32 %v244_v8, %v256_v39  ;;  %v328_v8 = vand.u32 1, %v3783_v44 }
  0xcf   :  { %1831 = vmatpush1.bf16.msra.mxu1 %v3077_v50  ;;  %1791 = vmatprep.subr.bf16.mxu0 %v3078_v53  ;;  %v405_v50 = vrot.slane %v3764_v22, %v3720_v47  ;;  %v3789_v53 = vand.u32 3, %v2937_v32 }
  0xd0   :  { %1832 = vmatprep.subr.bf16.mxu1 %v3080_v57  ;;  %v3796_v57 = vmul.f32 %v178_v27, %v3767_v26  ;;  %v272_v3 = vmul.f32 %v3785_v49, %v3785_v49  ;;  %vm3822_vm0 = vcmp.ne.s32.totalorder %v328_v8, 0 }
  0xd1   :  { %v573_v25 = vand.u32 2, %v3789_v53 }
  0xd2   :  { %1792 = vmatpush1.bf16.msra.mxu0 %v3082_v6  ;;  %v3805_v6 = vand.u32 3, %v2953_v48  ;;  %v276_v13 = vmul.f32 -0.0001984127, %v272_v3  ;;  %v304_v14 = vmul.f32 -0.0013888889, %v272_v3 }
  0xd3   :  { %1833 = vmatpush1.bf16.msra.mxu1 %v3083_v7  ;;  %1793 = vmatprep.subr.bf16.mxu0 %v3084_v9  ;;  %v1119_v7 = vrot.slane %v3778_v36, %v3720_v47  ;;  %v501_v9 = vmul.f32 %v3798_v58, %v3798_v58  ;;  %vm3839_vm3 = vcmp.ne.s32.totalorder %v573_v25, 0 }
  0xd4   :  { %1834 = vmatprep.subr.bf16.mxu1 %v3086_v10  ;;  %4810 = vst [vmem:[#allocation26_spill] sm:$0xff] %v3805_v6  ;;  %v3812_v10 = vsub.f32 %v702_v24, %v714_v59  ;;  %v280_v23 = vadd.f32 0.008333334, %v276_v13  ;;  %v308_v24 = vadd.f32 0.041666668, %v304_v14  ;;  %v786_v27 = vand.u32 1, %v3805_v6 }
  0xd5   :  { %v505_v17 = vmul.f32 -0.0001984127, %v501_v9  ;;  %v533_v18 = vmul.f32 -0.0013888889, %v501_v9  ;;  %v1133_v34 = vadd.f32 %v1119_v7, %v3722_v51  ;;  %v2969_v59 = vcvt.f32.s32 %v935_v62 }
  0xd6   :  { %1794 = vmatpush1.bf16.msra.mxu0 %v3088_v15  ;;  %v344_v15 = vand.u32 2, %v3783_v44  ;;  %vm3854_vm4 = vcmp.ne.s32.totalorder %v786_v27, 0 }
  0xd7   :  { %1835 = vmatpush1.bf16.msra.mxu1 %v3089_v16  ;;  %1795 = vmatprep.subr.bf16.mxu0 %v3090_v20  ;;  %v557_v16 = vand.u32 1, %v3789_v53  ;;  %v730_v20 = vmul.f32 %v3812_v10, %v3812_v10  ;;  %v509_v29 = vadd.f32 0.008333334, %v505_v17  ;;  %v537_v31 = vadd.f32 0.041666668, %v533_v18 }
  0xd8   :  { %1836 = vmatprep.subr.bf16.mxu1 %v3092_v21  ;;  %v2961_v21 = vround.rtne.f32 %v935_v62  ;;  %vm3834_vm2 = vcmp.ne.s32.totalorder %v344_v15, 0 }
  0xd9   :  { %v734_v32 = vmul.f32 -0.0001984127, %v730_v20  ;;  %vm3827_vm1 = vcmp.ne.s32.totalorder %v557_v16, 0  ;;  %v513_v45 = vmul.f32 %v509_v29, %v501_v9  ;;  %v541_v46 = vmul.f32 %v537_v31, %v501_v9 }
  0xda   :  { %1796 = vmatpush1.bf16.msra.mxu0 %v3094_v37  ;;  %v284_v37 = vmul.f32 %v280_v23, %v272_v3  ;;  %v802_v16 = vand.u32 2, %v3805_v6  ;;  %v3845_v31 = vand.u32 3, %v2969_v59 }
  0xdb   :  { %1837 = vmatpush1.bf16.msra.mxu1 %v3095_v38  ;;  %1797 = vmatprep.subr.bf16.mxu0 %v3096_v41  ;;  %v312_v38 = vmul.f32 %v308_v24, %v272_v3  ;;  %v762_v41 = vmul.f32 -0.0013888889, %v730_v20  ;;  %v738_v48 = vadd.f32 0.008333334, %v734_v32 }
  0xdc   :  { %1838 = vmatprep.subr.bf16.mxu1 %v3098_v43  ;;  %v943_v43 = vmul.f32 1.5707964, %v2961_v21  ;;  %v288_v8 = vadd.f32 -0.16666667, %v284_v37  ;;  %4819 = vst [vmem:[#allocation27_spill] sm:$0xff] %v3845_v31  ;;  %vm3892_vm5 = vcmp.ne.s32.totalorder %v802_v16, 0 }
  0xdd   :  { %v316_v13 = vadd.f32 -0.5, %v312_v38  ;;  %v766_v14 = vadd.f32 0.041666668, %v762_v41  ;;  %v742_v7 = vmul.f32 %v738_v48, %v730_v20 }
  0xde   :  { %1798 = vmatpush1.bf16.msra.mxu0 %v3100_v63  ;;  %v3832_v17 = vsub.f32 %v3776_v35, %v943_v43  ;;  %v517_v63 = vadd.f32 -0.16666667, %v513_v45  ;;  %v292_v18 = vmul.f32 %v288_v8, %v272_v3 }
  0xdf   :  { %1839 = vmatpush1.bf16.msra.mxu1 %v3101_v2  ;;  %v545_v2 = vadd.f32 -0.5, %v541_v46  ;;  %v320_v21 = vmul.f32 %v316_v13, %v272_v3  ;;  %v770_v62 = vmul.f32 %v766_v14, %v730_v20  ;;  %v746_v29 = vadd.f32 -0.16666667, %v742_v7 }
  0xe0   :  { %v959_v35 = vmul.f32 %v3832_v17, %v3832_v17  ;;  %v521_v24 = vmul.f32 %v517_v63, %v501_v9  ;;  %v296_v32 = vadd.f32 1.0, %v292_v18  ;;  %v1160_v63 = vmul.f32 %v1146_v12, %v1133_v34  ;;  %v3878_v34 = vld [vmem:[#allocation5 + $0x18] sm:$0xff] }
  0xe1   :  { %v549_v15 = vmul.f32 %v545_v2, %v501_v9  ;;  %v3847_v37 = vadd.f32 1.0, %v320_v21  ;;  %v774_v38 = vadd.f32 -0.5, %v770_v62  ;;  %v750_v25 = vmul.f32 %v746_v29, %v730_v20 }
  0xe2   :  { %v963_v41 = vmul.f32 -0.0001984127, %v959_v35  ;;  %v525_v43 = vadd.f32 1.0, %v521_v24  ;;  %v991_v45 = vmul.f32 -0.0013888889, %v959_v35  ;;  %v3852_v46 = vmul.f32 %v296_v32, %v3785_v49 }
  0xe3   :  { %v3849_v3 = vadd.f32 1.0, %v549_v15  ;;  %v778_v48 = vmul.f32 %v774_v38, %v730_v20  ;;  %v754_v13 = vadd.f32 1.0, %v750_v25  ;;  %v1015_v2 = vand.u32 1, %v3845_v31 }
  0xe4   :  { %v967_v9 = vadd.f32 0.008333334, %v963_v41  ;;  %v3859_v59 = vmul.f32 %v525_v43, %v3798_v58  ;;  %v995_v14 = vadd.f32 0.041666668, %v991_v45  ;;  %v336_v49 = vsel %vm3822_vm0, %v3847_v37, %v3852_v46  ;;  %v3898_v43 = vld [vmem:[#allocation7 + $0xc] sm:$0xf] }
  0xe5   :  { %v3868_v20 = vadd.f32 1.0, %v778_v48  ;;  %v352_v7 = vsub.f32 0.0, %v336_v49  ;;  %v3876_v18 = vmul.f32 %v754_v13, %v3812_v10  ;;  %v1164_v24 = vmul.f32 0.63661975, %v1160_v63 }
  0xe6   :  { %v971_v27 = vmul.f32 %v967_v9, %v959_v35  ;;  %v565_v58 = vsel %vm3827_vm1, %v3849_v3, %v3859_v59  ;;  %v999_v12 = vmul.f32 %v995_v14, %v959_v35  ;;  %v212_v15 = vrot.slane %v3724_v52, %v3762_v19  ;;  %v3908_v9 = vld [vmem:[#allocation7 + $0x10] sm:$0xf] }
  0xe7   :  { %v581_v21 = vsub.f32 0.0, %v565_v58  ;;  %v3886_v29 = vmul.f32 %v405_v50, %v3767_v26  ;;  %v794_v10 = vsel %vm3854_vm4, %v3868_v20, %v3876_v18  ;;  %v356_v41 = vsel %vm3834_vm2, %v352_v7, %v336_v49 }
  0xe8   :  { %v975_v62 = vadd.f32 -0.16666667, %v971_v27  ;;  %v1003_v38 = vadd.f32 -0.5, %v999_v12  ;;  %vm3900_vm6 = vcmp.ne.s32.totalorder %v1015_v2, 0  ;;  %v4825_v45 = vmov 0 }
  0xe9   :  { %4822 = vst [vmem:[#allocation28_spill] sm:$0xff] %v3886_v29  ;;  %v4826_v45 = vsel %vm3900_vm6, 4294967295, %v4825_v45  ;;  %v238_v50 = vrot.slane %v3728_v55, %v3762_v19  ;;  %v585_v16 = vsel %vm3839_vm3, %v581_v21, %v565_v58  ;;  %v2977_v13 = vround.rtne.f32 %v1164_v24 }
  0xea   :  { %v979_v25 = vmul.f32 %v975_v62, %v959_v35  ;;  %4827 = vst [vmem:[#allocation29_spill] sm:$0xff] %v4826_v45  ;;  %v1007_v48 = vmul.f32 %v1003_v38, %v959_v35  ;;  %v2985_v14 = vcvt.f32.s32 %v1164_v24  ;;  %v810_v51 = vsub.f32 0.0, %v794_v10 }
  0xeb   :  { %v1031_v27 = vand.u32 2, %v3845_v31  ;;  %v220_v2 = vadd.f32 %v212_v15, %v3878_v34  ;;  %v388_v7 = vmul.f32 %v356_v41, %v3796_v57  ;;  %v3917_v12 = vmul.f32 %v634_v4, %v3767_v26 }
  0xec   :  { %v983_v49 = vadd.f32 1.0, %v979_v25  ;;  %v3919_v23 = vadd.f32 1.0, %v1007_v48  ;;  %v1172_v35 = vmul.f32 1.5707964, %v2977_v13  ;;  %v617_v58 = vmul.f32 %v585_v16, %v3886_v29 }
  0xed   :  { %4828 = vst [vmem:[#allocation30_spill] sm:$0xff] %v3917_v12  ;;  %v3925_v62 = vand.u32 3, %v2985_v14  ;;  %v246_v24 = vmul.f32 %v238_v50, %v220_v2  ;;  %v863_v15 = vrot.slane %v3898_v43, %v3720_v47  ;;  %v440_v4 = vrot.slane %v3730_v56, %v3762_v19 }
  0xee   :  { %4829 = vst [vmem:[#allocation31_spill] sm:$0xff] %v3919_v23  ;;  %v3923_v21 = vmul.f32 %v983_v49, %v3832_v17  ;;  %v3929_v38 = vsub.f32 %v1160_v63, %v1172_v35  ;;  %v467_v41 = vrot.slane %v3736_v60, %v3762_v19  ;;  %v814_v25 = vsel %vm3892_vm5, %v810_v51, %v794_v10  ;;  %v3949_v60 = vld [vmem:[#allocation2 + $0x18] sm:$0xff] }
  0xef   :  { %4831 = vst [vmem:[#allocation33_spill] sm:$0xff] %v3925_v62  ;;  %vm3937_vm7 = vcmp.ne.s32.totalorder %v1031_v27, 0  ;;  %v1092_v50 = vrot.slane %v3908_v9, %v3720_v47  ;;  %v250_v16 = vmul.f32 0.63661975, %v246_v24  ;;  %v413_v10 = vrot.slane %v3764_v22, %v3762_v19 }
  0xf0   :  { %4830 = vst [vmem:[#allocation32_spill] sm:$0xff] %v3923_v21  ;;  %v1023_v63 = vsel %vm3900_vm6, %v3919_v23, %v3923_v21  ;;  %v1188_v56 = vmul.f32 %v3929_v38, %v3929_v38  ;;  %v448_v32 = vadd.f32 %v440_v4, %v3878_v34  ;;  %v621_v48 = vadd.f32 %v617_v58, %v388_v7 }
  0xf1   :  { %v1244_v13 = vand.u32 1, %v3925_v62  ;;  %v1260_v14 = vand.u32 2, %v3925_v62  ;;  %v2915_v51 = vround.rtne.f32 %v250_v16  ;;  %v846_v49 = vmul.f32 %v814_v25, %v3917_v12 }
  0xf2   :  { %v1192_v27 = vmul.f32 -0.0001984127, %v1188_v56  ;;  %v1220_v2 = vmul.f32 -0.0013888889, %v1188_v56  ;;  %v475_v35 = vmul.f32 %v467_v41, %v448_v32  ;;  %v3958_v42 = vmul.f32 %v863_v15, %v3767_v26 }
  0xf3   :  { %v1039_v47 = vsub.f32 0.0, %v1023_v63  ;;  %v258_v31 = vmul.f32 1.5707964, %v2915_v51  ;;  %v2927_v45 = vcvt.f32.s32 %v250_v16  ;;  %v669_v7 = vrot.slane %v3738_v61, %v3762_v19 }
  0xf4   :  { %4834 = vst [vmem:[#allocation34_spill] sm:$0xff] %v3958_v42  ;;  %v1196_v21 = vadd.f32 0.008333334, %v1192_v27  ;;  %v1224_v23 = vadd.f32 0.041666668, %v1220_v2  ;;  %v3963_v58 = vmul.f32 %v1092_v50, %v3767_v26  ;;  %v4836_v25 = vrot.slane %v3754_v11, %v3762_v19 }
  0xf5   :  { %v479_v4 = vmul.f32 0.63661975, %v475_v35  ;;  %v3971_v15 = vsub.f32 %v246_v24, %v258_v31  ;;  %v3974_v32 = vmul.f32 %v413_v10, %v3949_v60  ;;  %v850_v16 = vadd.f32 %v846_v49, %v621_v48 }
  0xf6   :  { %4835 = vst [vmem:[#allocation35_spill] sm:$0xff] %v3963_v58  ;;  %v3969_v41 = vmul.f32 %v4836_v25, %v3949_v60  ;;  %v1200_v51 = vmul.f32 %v1196_v21, %v1188_v56  ;;  %v1228_v27 = vmul.f32 %v1224_v23, %v1188_v56  ;;  %v1043_v61 = vsel %vm3937_vm7, %v1039_v47, %v1023_v63 }
  0xf7   :  { %4838 = vst [vmem:[#allocation37_spill] sm:$0xff] %v3974_v32  ;;  %v2931_v2 = vround.rtne.f32 %v479_v4  ;;  %vm3978_vm8 = vcmp.ne.s32.totalorder %v1244_v13, 0  ;;  %v4839_v26 = vmov 0  ;;  %v274_v50 = vmul.f32 %v3971_v15, %v3971_v15 }
  0xf8   :  { %4837 = vst [vmem:[#allocation36_spill] sm:$0xff] %v3969_v41  ;;  %v4840_v26 = vsel %vm3978_vm8, 4294967295, %v4839_v26  ;;  %v677_v31 = vadd.f32 %v669_v7, %v3878_v34  ;;  %v1204_v24 = vadd.f32 -0.16666667, %v1200_v51  ;;  %v1232_v25 = vadd.f32 -0.5, %v1228_v27 }
  0xf9   :  { %4841 = vst [vmem:[#allocation38_spill] sm:$0xff] %v4840_v26  ;;  %vm3985_vm9 = vcmp.ne.s32.totalorder %v1260_v14, 0  ;;  %v3989_v23 = vand.u32 3, %v2927_v45  ;;  %v487_v21 = vmul.f32 1.5707964, %v2931_v2  ;;  %v696_v48 = vrot.slane %v3743_v0, %v3762_v19 }
  0xfa   :  { %v278_v17 = vmul.f32 -0.0001984127, %v274_v50  ;;  %v306_v47 = vmul.f32 -0.0013888889, %v274_v50  ;;  %v1075_v13 = vmul.f32 %v1043_v61, %v3958_v42  ;;  %v1208_v49 = vmul.f32 %v1204_v24, %v1188_v56 }
  0xfb   :  { %4844 = vst [vmem:[#allocation39_spill] sm:$0xff] %v3989_v23  ;;  %v1236_v7 = vmul.f32 %v1232_v25, %v1188_v56  ;;  %v3996_v51 = vsub.f32 %v475_v35, %v487_v21  ;;  %v2943_v12 = vcvt.f32.s32 %v479_v4  ;;  %v704_v45 = vmul.f32 %v696_v48, %v677_v31 }
  0xfc   :  { %v282_v14 = vadd.f32 0.008333334, %v278_v17  ;;  %v310_v27 = vadd.f32 0.041666668, %v306_v47  ;;  %v1212_v62 = vadd.f32 1.0, %v1208_v49  ;;  %v330_v29 = vand.u32 1, %v3989_v23 }
  0xfd   :  { %v3998_v2 = vadd.f32 1.0, %v1236_v7  ;;  %v503_v63 = vmul.f32 %v3996_v51, %v3996_v51  ;;  %v346_v61 = vand.u32 2, %v3989_v23  ;;  %v708_v24 = vmul.f32 0.63661975, %v704_v45 }
  0xfe   :  { %v286_v6 = vmul.f32 %v282_v14, %v274_v50  ;;  %v314_v0 = vmul.f32 %v310_v27, %v274_v50  ;;  %v1079_v56 = vadd.f32 %v1075_v13, %v850_v16  ;;  %v4005_v35 = vmul.f32 %v1212_v62, %v3929_v38 }
  0xff   :  { %v507_v25 = vmul.f32 -0.0001984127, %v503_v63  ;;  %v535_v4 = vmul.f32 -0.0013888889, %v503_v63  ;;  %v4007_v17 = vand.u32 3, %v2943_v12  ;;  %v2947_v47 = vround.rtne.f32 %v708_v24 }
 0x100   :  { %v290_v31 = vadd.f32 -0.16666667, %v286_v6  ;;  %v318_v21 = vadd.f32 -0.5, %v314_v0  ;;  %v1252_v48 = vsel %vm3978_vm8, %v3998_v2, %v4005_v35  ;;  %v898_v16 = vrot.slane %v3745_v1, %v3762_v19 }
 0x101   :  { %4845 = vst [vmem:[#allocation40_spill] sm:$0xff] %v4007_v17  ;;  %v511_v49 = vadd.f32 0.008333334, %v507_v25  ;;  %v539_v7 = vadd.f32 0.041666668, %v535_v4  ;;  %v1268_v13 = vsub.f32 0.0, %v1252_v48  ;;  %v871_v0 = vrot.slane %v3898_v43, %v3762_v19 }
 0x102   :  { %v294_v62 = vmul.f32 %v290_v31, %v274_v50  ;;  %v322_v38 = vmul.f32 %v318_v21, %v274_v50  ;;  %v716_v14 = vmul.f32 1.5707964, %v2947_v47  ;;  %vm4015_vm10 = vcmp.ne.s32.totalorder %v330_v29, 0 }
 0x103   :  { %v4846_v6 = vmov 0  ;;  %v515_v12 = vmul.f32 %v511_v49, %v503_v63  ;;  %v543_v27 = vmul.f32 %v539_v7, %v503_v63  ;;  %v1272_v25 = vsel %vm3985_vm9, %v1268_v13, %v1252_v48 }
 0x104   :  { %v4847_v6 = vsel %vm4015_vm10, 4294967295, %v4846_v6  ;;  %v298_v4 = vadd.f32 1.0, %v294_v62  ;;  %v559_v42 = vand.u32 1, %v4007_v17  ;;  %v4024_v1 = vsub.f32 %v704_v45, %v716_v14 }
 0x105   :  { %4848 = vst [vmem:[#allocation41_spill] sm:$0xff] %v4847_v6  ;;  %v1304_v50 = vmul.f32 %v1272_v25, %v3963_v58  ;;  %v4027_v31 = vadd.f32 1.0, %v322_v38  ;;  %vm4029_vm11 = vcmp.ne.s32.totalorder %v346_v61, 0  ;;  %v519_v21 = vadd.f32 -0.16666667, %v515_v12 }
 0x106   :  { %v547_v47 = vadd.f32 -0.5, %v543_v27  ;;  %v4034_v49 = vmul.f32 %v298_v4, %v3971_v15  ;;  %v732_v10 = vmul.f32 %v4024_v1, %v4024_v1  ;;  %v906_v48 = vadd.f32 %v898_v16, %v3878_v34 }
 0x107   :  { %4849 = vst [vmem:[#allocation42_spill] sm:$0xff] %v4027_v31  ;;  %v925_v45 = vrot.slane %v3752_v5, %v3762_v19  ;;  %v1308_v7 = vadd.f32 %v1304_v50, %v1079_v56  ;;  %v523_v13 = vmul.f32 %v519_v21, %v503_v63  ;;  %v2959_v61 = vcvt.f32.s32 %v708_v24  ;;  %v3104_v50 = vld [vmem:[#allocation11 + $0x4] ss:$8 sps:$4 sm:$0xff]  }
 0x108   :  { %4852 = vst [vmem:[#allocation43_spill] sm:$0xff] %v4034_v49  ;;  %v551_v62 = vmul.f32 %v547_v47, %v503_v63  ;;  %vm4041_vm12 = vcmp.ne.s32.totalorder %v559_v42, 0  ;;  %v4853_v38 = vmov 0  ;;  %v575_v14 = vand.u32 2, %v4007_v17  ;;  %2169 = vmatprep.subr.bf16.mxu0 %v3104_v50 }
 0x109   :  { %v4854_v38 = vsel %vm4041_vm12, 4294967295, %v4853_v38  ;;  %v736_v15 = vmul.f32 -0.0001984127, %v732_v10  ;;  %v764_v12 = vmul.f32 -0.0013888889, %v732_v10  ;;  %v1380_v27 = vpack.c.bf16 %v1308_v7, %v1308_v7 }
 0x10a   :  { %4855 = vst [vmem:[#allocation44_spill] sm:$0xff] %v4854_v38  ;;  %v338_v16 = vsel %vm4015_vm10, %v4027_v31, %v4034_v49  ;;  %v527_v25 = vadd.f32 1.0, %v523_v13  ;;  %v4050_v5 = vadd.f32 1.0, %v551_v62  ;;  %v4857_v42 = vrot.slane %v3774_v33, %v3762_v19  ;;  %v3107_v62 = vld [vmem:[#allocation11 + $0x104] ss:$8 sps:$4 sm:$0xff]  }
 0x10b   :  { %v740_v24 = vadd.f32 0.008333334, %v736_v15  ;;  %v768_v56 = vadd.f32 0.041666668, %v764_v12  ;;  %v933_v4 = vmul.f32 %v925_v45, %v906_v48  ;;  %1799 = vmatprep.mubr.bf16.mxu0 %v1380_v27  ;;  %v4061_v47 = vand.u32 3, %v2959_v61  ;;  %v4079_v45 = vld [vmem:[#allocation5] sm:$0xff]  ;;  %2210 = vmatprep.subr.bf16.mxu1 %v3107_v62 }
 0x10c   :  { %4856 = vst [vmem:[#allocation45_spill] sm:$0xff] %v4050_v5  ;;  %v4056_v63 = vmul.f32 %v4857_v42, %v3949_v60  ;;  %v4059_v21 = vmul.f32 %v527_v25, %v3996_v51  ;;  %v1127_v7 = vrot.slane %v3778_v36, %v3762_v19  ;;  %v1154_v13 = vrot.slane %v3791_v54, %v3762_v19 }
 0x10d   :  { %4860 = vst [vmem:[#allocation48_spill] sm:$0xff] %v4061_v47  ;;  %v354_v33 = vsub.f32 0.0, %v338_v16  ;;  %v744_v42 = vmul.f32 %v740_v24, %v732_v10  ;;  %v772_v17 = vmul.f32 %v768_v56, %v732_v10  ;;  %v937_v15 = vmul.f32 0.63661975, %v933_v4 }
 0x10e   :  { %4858 = vst [vmem:[#allocation46_spill] sm:$0xff] %v4056_v63  ;;  %4859 = vst [vmem:[#allocation47_spill] sm:$0xff] %v4059_v21  ;;  %v567_v51 = vsel %vm4041_vm12, %v4050_v5, %v4059_v21  ;;  %vm4071_vm13 = vcmp.ne.s32.totalorder %v575_v14, 0  ;;  %v4076_v36 = vmul.f32 %v871_v0, %v3949_v60  ;;  %v1135_v54 = vadd.f32 %v1127_v7, %v3878_v34 }
 0x10f   :  { %v583_v61 = vsub.f32 0.0, %v567_v51  ;;  %v748_v12 = vadd.f32 -0.16666667, %v744_v42  ;;  %v776_v27 = vadd.f32 -0.5, %v772_v17  ;;  %v2963_v25 = vround.rtne.f32 %v937_v15 }
 0x110   :  { %4863 = vst [vmem:[#allocation49_spill] sm:$0xff] %v4076_v36  ;;  %v788_v24 = vand.u32 1, %v4061_v47  ;;  %v2975_v56 = vcvt.f32.s32 %v937_v15  ;;  %v1162_v50 = vmul.f32 %v1154_v13, %v1135_v54  ;;  %v200_v14 = vrot.slane %v3724_v52, %v3772_v30 }
 0x111   :  { %v358_v0 = vsel %vm4029_vm11, %v354_v33, %v338_v16  ;;  %v752_v58 = vmul.f32 %v748_v12, %v732_v10  ;;  %v780_v38 = vmul.f32 %v776_v27, %v732_v10  ;;  %v945_v34 = vmul.f32 1.5707964, %v2963_v25  ;;  %v4118_v27 = vld [vmem:[#allocation2] sm:$0xff] }
 0x112   :  { %v587_v7 = vsel %vm4071_vm13, %v583_v61, %v567_v51  ;;  %v4088_v62 = vand.u32 3, %v2975_v56  ;;  %v1166_v17 = vmul.f32 0.63661975, %v1162_v50  ;;  %v217_v42 = vadd.f32 %v200_v14, %v4079_v45 }
 0x113   :  { %v756_v21 = vadd.f32 1.0, %v752_v58  ;;  %v4091_v15 = vadd.f32 1.0, %v780_v38  ;;  %v4093_v13 = vsub.f32 %v933_v4, %v945_v34  ;;  %v226_v52 = vrot.slane %v3728_v55, %v3772_v30 }
 0x114   :  { %4864 = vst [vmem:[#allocation50_spill] sm:$0xff] %v4088_v62  ;;  %vm4097_vm14 = vcmp.ne.s32.totalorder %v788_v24, 0  ;;  %v4866_v29 = vmov 0  ;;  %v804_v10 = vand.u32 2, %v4061_v47  ;;  %v1100_v16 = vrot.slane %v3908_v9, %v3762_v19 }
 0x115   :  { %4865 = vst [vmem:[#allocation51_spill] sm:$0xff] %v4091_v15  ;;  %v4867_v29 = vsel %vm4097_vm14, 4294967295, %v4866_v29  ;;  %v2979_v33 = vround.rtne.f32 %v1166_v17  ;;  %v4105_v51 = vmul.f32 %v756_v21, %v4024_v1  ;;  %v961_v58 = vmul.f32 %v4093_v13, %v4093_v13 }
 0x116   :  { %4868 = vst [vmem:[#allocation52_spill] sm:$0xff] %v4867_v29  ;;  %v2991_v38 = vcvt.f32.s32 %v1166_v17  ;;  %v243_v4 = vmul.f32 %v226_v52, %v217_v42  ;;  %v390_v55 = vmul.f32 %v358_v0, %v3969_v41  ;;  %v619_v48 = vmul.f32 %v587_v7, %v3974_v32 }
 0x117   :  { %4869 = vst [vmem:[#allocation53_spill] sm:$0xff] %v4105_v51  ;;  %v1174_v54 = vmul.f32 1.5707964, %v2979_v33  ;;  %v174_v61 = vrot.slane %v3754_v11, %v3772_v30  ;;  %v796_v19 = vsel %vm4097_vm14, %v4091_v15, %v4105_v51  ;;  %v965_v1 = vmul.f32 -0.0001984127, %v961_v58 }
 0x118   :  { %v993_v21 = vmul.f32 -0.0013888889, %v961_v58  ;;  %v1017_v12 = vand.u32 1, %v4088_v62  ;;  %vm4120_vm15 = vcmp.ne.s32.totalorder %v804_v10, 0  ;;  %v4126_v56 = vand.u32 3, %v2991_v38 }
 0x119   :  { %v4124_v24 = vsub.f32 %v1162_v50, %v1174_v54  ;;  %v247_v11 = vmul.f32 0.63661975, %v243_v4  ;;  %v812_v14 = vsub.f32 0.0, %v796_v19  ;;  %v969_v0 = vadd.f32 0.008333334, %v965_v1 }
 0x11a   :  { %4872 = vst [vmem:[#allocation54_spill] sm:$0xff] %v4126_v56  ;;  %v997_v34 = vadd.f32 0.041666668, %v993_v21  ;;  %v1033_v7 = vand.u32 2, %v4088_v62  ;;  %v4130_v17 = vmul.f32 %v1100_v16, %v3949_v60  ;;  %v4135_v52 = vmul.f32 %v174_v61, %v4118_v27  ;;  %v4153_v60 = vld [vmem:[#allocation10 + $0x4] sm:$0xf] }
 0x11b   :  { %v1190_v42 = vmul.f32 %v4124_v24, %v4124_v24  ;;  %v2912_v10 = vround.rtne.f32 %v247_v11  ;;  %v623_v50 = vadd.f32 %v619_v48, %v390_v55  ;;  %v973_v33 = vmul.f32 %v969_v0, %v961_v58 }
 0x11c   :  { %4873 = vst [vmem:[#allocation55_spill] sm:$0xff] %v4130_v17  ;;  %4874 = vst [vmem:[#allocation56_spill] sm:$0xff] %v4135_v52  ;;  %v1001_v38 = vmul.f32 %v997_v34, %v961_v58  ;;  %vm4137_vm2 = vcmp.ne.s32.totalorder %v1017_v12, 0  ;;  %v4875_v54 = vmov 0  ;;  %v1246_v32 = vand.u32 1, %v4126_v56 }
 0x11d   :  { %v4876_v54 = vsel %vm4137_vm2, 4294967295, %v4875_v54  ;;  %v1194_v1 = vmul.f32 -0.0001984127, %v1190_v42  ;;  %v1222_v21 = vmul.f32 -0.0013888889, %v1190_v42  ;;  %v816_v16 = vsel %vm4120_vm15, %v812_v14, %v796_v19 }
 0x11e   :  { %4877 = vst [vmem:[#allocation57_spill] sm:$0xff] %v4876_v54  ;;  %v977_v61 = vadd.f32 -0.16666667, %v973_v33  ;;  %v1005_v62 = vadd.f32 -0.5, %v1001_v38  ;;  %vm4146_vm3 = vcmp.ne.s32.totalorder %v1033_v7, 0  ;;  %v1262_v34 = vand.u32 2, %v4126_v56 }
 0x11f   :  { %v255_v48 = vmul.f32 1.5707964, %v2912_v10  ;;  %v1198_v12 = vadd.f32 0.008333334, %v1194_v1  ;;  %v1226_v0 = vadd.f32 0.041666668, %v1222_v21  ;;  %v2918_v41 = vcvt.f32.s32 %v247_v11 }
 0x120   :  { %v981_v47 = vmul.f32 %v977_v61, %v961_v58  ;;  %v1009_v29 = vmul.f32 %v1005_v62, %v961_v58  ;;  %v428_v19 = vrot.slane %v4153_v60, %v3772_v30  ;;  %v848_v25 = vmul.f32 %v816_v16, %v4056_v63 }
 0x121   :  { %v4151_v51 = vsub.f32 %v243_v4, %v255_v48  ;;  %v1202_v14 = vmul.f32 %v1198_v12, %v1190_v42  ;;  %v1230_v7 = vmul.f32 %v1226_v0, %v1190_v42  ;;  %vm4158_vm5 = vcmp.ne.s32.totalorder %v1246_v32, 0  ;;  %v4173_v32 = vld [vmem:[#allocation8 + $0x4] sm:$0xf]  ;;  %v4180_v48 = vld [vmem:[#allocation10 + $0x8] sm:$0xf] }
 0x122   :  { %v4880_v10 = vmov 0  ;;  %v985_v33 = vadd.f32 1.0, %v981_v47  ;;  %v4162_v38 = vadd.f32 1.0, %v1009_v29  ;;  %v445_v58 = vadd.f32 %v428_v19, %v4079_v45 }
 0x123   :  { %v4881_v10 = vsel %vm4158_vm5, 4294967295, %v4880_v10  ;;  %v271_v62 = vmul.f32 %v4151_v51, %v4151_v51  ;;  %v1206_v4 = vadd.f32 -0.16666667, %v1202_v14  ;;  %v1234_v11 = vadd.f32 -0.5, %v1230_v7 }
 0x124   :  { %4882 = vst [vmem:[#allocation58_spill] sm:$0xff] %v4881_v10  ;;  %4883 = vst [vmem:[#allocation59_spill] sm:$0xff] %v4162_v38  ;;  %vm4167_vm7 = vcmp.ne.s32.totalorder %v1262_v34, 0  ;;  %v4171_v21 = vand.u32 3, %v2918_v41  ;;  %v455_v47 = vrot.slane %v4173_v32, %v3772_v30  ;;  %v4178_v29 = vmul.f32 %v985_v33, %v4093_v13 }
 0x125   :  { %v275_v16 = vmul.f32 -0.0001984127, %v271_v62  ;;  %v303_v61 = vmul.f32 -0.0013888889, %v271_v62  ;;  %v657_v12 = vrot.slane %v4180_v48, %v3772_v30  ;;  %v852_v0 = vadd.f32 %v848_v25, %v623_v50 }
 0x126   :  { %4886 = vst [vmem:[#allocation60_spill] sm:$0xff] %v4171_v21  ;;  %4887 = vst [vmem:[#allocation61_spill] sm:$0xff] %v4178_v29  ;;  %v1210_v34 = vmul.f32 %v1206_v4, %v1190_v42  ;;  %v1238_v19 = vmul.f32 %v1234_v11, %v1190_v42  ;;  %v472_v41 = vmul.f32 %v455_v47, %v445_v58  ;;  %v327_v50 = vand.u32 1, %v4171_v21  ;;  %v4192_v42 = vld [vmem:[#allocation8 + $0x8] sm:$0xf] }
 0x127   :  { %v1025_v14 = vsel %vm4137_vm2, %v4162_v38, %v4178_v29  ;;  %v279_v7 = vadd.f32 0.008333334, %v275_v16  ;;  %v307_v56 = vadd.f32 0.041666668, %v303_v61  ;;  %v674_v13 = vadd.f32 %v657_v12, %v4079_v45 }
 0x128   :  { %v1041_v33 = vsub.f32 0.0, %v1025_v14  ;;  %v1214_v63 = vadd.f32 1.0, %v1210_v34  ;;  %v4189_v15 = vadd.f32 1.0, %v1238_v19  ;;  %v476_v5 = vmul.f32 0.63661975, %v472_v41 }
 0x129   :  { %v283_v23 = vmul.f32 %v279_v7, %v271_v62  ;;  %v311_v6 = vmul.f32 %v307_v56, %v271_v62  ;;  %v684_v25 = vrot.slane %v4192_v42, %v3772_v30  ;;  %v343_v19 = vand.u32 2, %v4171_v21 }
 0x12a   :  { %4888 = vst [vmem:[#allocation62_spill] sm:$0xff] %v4189_v15  ;;  %v1045_v58 = vsel %vm4146_vm3, %v1041_v33, %v1025_v14  ;;  %v4199_v4 = vmul.f32 %v1214_v63, %v4124_v24  ;;  %v2928_v11 = vround.rtne.f32 %v476_v5  ;;  %v2934_v47 = vcvt.f32.s32 %v476_v5 }
 0x12b   :  { %v1077_v16 = vmul.f32 %v1045_v58, %v4076_v36  ;;  %v287_v61 = vadd.f32 -0.16666667, %v283_v23  ;;  %v315_v12 = vadd.f32 -0.5, %v311_v6  ;;  %v701_v56 = vmul.f32 %v684_v25, %v674_v13  ;;  %v4215_v13 = vld [vmem:[#allocation7 + $0x8] sm:$0xf] }
 0x12c   :  { %4889 = vst [vmem:[#allocation63_spill] sm:$0xff] %v4199_v4  ;;  %v1254_v34 = vsel %vm4158_vm5, %v4189_v15, %v4199_v4  ;;  %v484_v7 = vmul.f32 1.5707964, %v2928_v11  ;;  %v4207_v55 = vand.u32 3, %v2934_v47  ;;  %vm4209_vm9 = vcmp.ne.s32.totalorder %v327_v50, 0 }
 0x12d   :  { %v1270_v14 = vsub.f32 0.0, %v1254_v34  ;;  %v291_v63 = vmul.f32 %v287_v61, %v271_v62  ;;  %v319_v24 = vmul.f32 %v315_v12, %v271_v62  ;;  %v4891_v5 = vmov 0  ;;  %v4223_v50 = vld [vmem:[#allocation10 + $0xc] sm:$0xf]  ;;  %v4237_v36 = vld [vmem:[#allocation8 + $0xc] sm:$0xf] }
 0x12e   :  { %4890 = vst [vmem:[#allocation64_spill] sm:$0xff] %v4207_v55  ;;  %v4892_v5 = vsel %vm4209_vm9, 4294967295, %v4891_v5  ;;  %v1081_v23 = vadd.f32 %v1077_v16, %v852_v0  ;;  %v4213_v6 = vsub.f32 %v472_v41, %v484_v7  ;;  %v630_v33 = vrot.slane %v4215_v13, %v3772_v30 }
 0x12f   :  { %4893 = vst [vmem:[#allocation65_spill] sm:$0xff] %v4892_v5  ;;  %v705_v25 = vmul.f32 0.63661975, %v701_v56  ;;  %v1274_v58 = vsel %vm4167_vm7, %v1270_v14, %v1254_v34  ;;  %v295_v11 = vadd.f32 1.0, %v291_v63  ;;  %v859_v62 = vrot.slane %v3898_v43, %v3772_v30  ;;  %v4284_v5 = vld [vmem:[#allocation8 + $0x10] sm:$0xf] }
 0x130   :  { %v886_v0 = vrot.slane %v4223_v50, %v3772_v30  ;;  %v1306_v41 = vmul.f32 %v1274_v58, %v4130_v17  ;;  %v4228_v47 = vadd.f32 1.0, %v319_v24  ;;  %v500_v16 = vmul.f32 %v4213_v6, %v4213_v6 }
 0x131   :  { %v556_v61 = vand.u32 1, %v4207_v55  ;;  %v4234_v1 = vmul.f32 %v295_v11, %v4151_v51  ;;  %v2944_v12 = vround.rtne.f32 %v705_v25  ;;  %v2950_v34 = vcvt.f32.s32 %v705_v25 }
 0x132   :  { %4894 = vst [vmem:[#allocation66_spill] sm:$0xff] %v4228_v47  ;;  %v903_v43 = vadd.f32 %v886_v0, %v4079_v45  ;;  %v1310_v7 = vadd.f32 %v1306_v41, %v1081_v23  ;;  %v504_v14 = vmul.f32 -0.0001984127, %v500_v16  ;;  %v532_v63 = vmul.f32 -0.0013888889, %v500_v16 }
 0x133   :  { %4895 = vst [vmem:[#allocation67_spill] sm:$0xff] %v4234_v1  ;;  %v913_v24 = vrot.slane %v4237_v36, %v3772_v30  ;;  %vm4241_vm11 = vcmp.ne.s32.totalorder %v343_v19, 0  ;;  %v4898_v51 = vrot.slane %v3764_v22, %v3772_v30  ;;  %v713_v25 = vmul.f32 1.5707964, %v2944_v12 }
 0x134   :  { %v4251_v0 = vand.u32 3, %v2950_v34  ;;  %v1382_v23 = vpack.c.bf16 %v1310_v7, %v1310_v7  ;;  %v335_v41 = vsel %vm4209_vm9, %v4228_v47, %v4234_v1  ;;  %v508_v17 = vadd.f32 0.008333334, %v504_v14 }
 0x135   :  { %v4249_v11 = vmul.f32 %v4898_v51, %v4118_v27  ;;  %v536_v19 = vadd.f32 0.041666668, %v532_v63  ;;  %v572_v21 = vand.u32 2, %v4207_v55  ;;  %v4259_v10 = vmul.f32 %v630_v33, %v4118_v27 }
 0x136   :  { %4900 = vst [vmem:[#allocation69_spill] sm:$0xff] %v4251_v0  ;;  %v4261_v4 = vsub.f32 %v701_v56, %v713_v25  ;;  %v930_v22 = vmul.f32 %v913_v24, %v903_v43  ;;  %1840 = vmatprep.mubr.bf16.mxu1 %v1382_v23  ;;  %v512_v12 = vmul.f32 %v508_v17, %v500_v16  ;;  %vm4263_vm13 = vcmp.ne.s32.totalorder %v556_v61, 0  ;;  %v4275_v25 = vld [vmem:[#allocation10 + $0x10] sm:$0xf] }
 0x137   :  { %4899 = vst [vmem:[#allocation68_spill] sm:$0xff] %v4249_v11  ;;  %v540_v34 = vmul.f32 %v536_v19, %v500_v16  ;;  %v4901_v7 = vmov 0  ;;  %v4268_v51 = vmul.f32 %v859_v62, %v4118_v27  ;;  %v351_v14 = vsub.f32 0.0, %v335_v41 }
 0x138   :  { %v4902_v7 = vsel %vm4263_vm13, 4294967295, %v4901_v7  ;;  %v729_v63 = vmul.f32 %v4261_v4, %v4261_v4  ;;  %v785_v33 = vand.u32 1, %v4251_v0  ;;  %v1088_v56 = vrot.slane %v3908_v9, %v3772_v30 }
 0x139   :  { %4903 = vst [vmem:[#allocation70_spill] sm:$0xff] %v4902_v7  ;;  %4904 = vst [vmem:[#allocation71_spill] sm:$0xff] %v4268_v51  ;;  %v516_v43 = vadd.f32 -0.16666667, %v512_v12  ;;  %v544_v24 = vadd.f32 -0.5, %v540_v34  ;;  %v1115_v61 = vrot.slane %v4275_v25, %v3772_v30  ;;  %vm4279_vm15 = vcmp.ne.s32.totalorder %v572_v21, 0 }
 0x13a   :  { %v934_v17 = vmul.f32 0.63661975, %v930_v22  ;;  %v733_v23 = vmul.f32 -0.0001984127, %v729_v63  ;;  %v761_v19 = vmul.f32 -0.0013888889, %v729_v63  ;;  %v1142_v9 = vrot.slane %v4284_v5, %v3772_v30 }
 0x13b   :  { %v801_v55 = vand.u32 2, %v4251_v0  ;;  %v520_v12 = vmul.f32 %v516_v43, %v500_v16  ;;  %v548_v34 = vmul.f32 %v544_v24, %v500_v16  ;;  %v355_v15 = vsel %vm4241_vm11, %v351_v14, %v335_v41  ;;  %v4296_v16 = vld [vmem:[#allocation5 + $0x10] sm:$0xff]  ;;  %v3271_v24 = vld [vmem:[#allocation10] sm:$0xf] }
 0x13c   :  { %v2960_v1 = vround.rtne.f32 %v934_v17  ;;  %v2966_v47 = vcvt.f32.s32 %v934_v17  ;;  %v737_v21 = vadd.f32 0.008333334, %v733_v23  ;;  %v765_v54 = vadd.f32 0.041666668, %v761_v19  ;;  %v3273_v19 = vld [vmem:[#allocation8] sm:$0xf] }
 0x13d   :  { %v1132_v29 = vadd.f32 %v1115_v61, %v4079_v45  ;;  %v524_v38 = vadd.f32 1.0, %v520_v12  ;;  %v4291_v49 = vadd.f32 1.0, %v548_v34  ;;  %v4294_v31 = vmul.f32 %v1088_v56, %v4118_v27 }
 0x13e   :  { %v942_v0 = vmul.f32 1.5707964, %v2960_v1  ;;  %v741_v26 = vmul.f32 %v737_v21, %v729_v63  ;;  %v769_v30 = vmul.f32 %v765_v54, %v729_v63  ;;  %v208_v58 = vrot.slane %v3271_v24, %v3781_v40  ;;  %v3274_v21 = vld [vmem:[#allocation7 + $0x4] sm:$0xf] }
 0x13f   :  { %4907 = vst [vmem:[#allocation72_spill] sm:$0xff] %v4291_v49  ;;  %4908 = vst [vmem:[#allocation73_spill] sm:$0xff] %v4294_v31  ;;  %v1159_v43 = vmul.f32 %v1142_v9, %v1132_v29  ;;  %v387_v41 = vmul.f32 %v355_v15, %v4135_v52  ;;  %v4301_v14 = vmul.f32 %v524_v38, %v4213_v6  ;;  %v4305_v17 = vand.u32 3, %v2966_v47  ;;  %v3272_v38 = vld [vmem:[#allocation7] sm:$0xf] }
 0x140   :  { %v4303_v45 = vsub.f32 %v930_v22, %v942_v0  ;;  %v745_v1 = vadd.f32 -0.16666667, %v741_v26  ;;  %v773_v27 = vadd.f32 -0.5, %v769_v30  ;;  %vm4307_vm3 = vcmp.ne.s32.totalorder %v785_v33, 0 }
 0x141   :  { %4909 = vst [vmem:[#allocation74_spill] sm:$0xff] %v4301_v14  ;;  %4910 = vst [vmem:[#allocation75_spill] sm:$0xff] %v4305_v17  ;;  %v4911_v56 = vmov 0  ;;  %v1163_v54 = vmul.f32 0.63661975, %v1159_v43  ;;  %v564_v29 = vsel %vm4263_vm13, %v4291_v49, %v4301_v14  ;;  %v182_v6 = vrot.slane %v3272_v38, %v3781_v40 }
 0x142   :  { %v4912_v56 = vsel %vm4307_vm3, 4294967295, %v4911_v56  ;;  %v958_v15 = vmul.f32 %v4303_v45, %v4303_v45  ;;  %v219_v47 = vadd.f32 %v208_v58, %v4296_v16  ;;  %v580_v26 = vsub.f32 0.0, %v564_v29  ;;  %v4327_v58 = vld [vmem:[#allocation2 + $0x10] sm:$0xff] }
 0x143   :  { %4913 = vst [vmem:[#allocation76_spill] sm:$0xff] %v4912_v56  ;;  %v749_v30 = vmul.f32 %v745_v1, %v729_v63  ;;  %v777_v0 = vmul.f32 %v773_v27, %v729_v63  ;;  %v2976_v22 = vround.rtne.f32 %v1163_v54  ;;  %v1014_v23 = vand.u32 1, %v4305_v17 }
 0x144   :  { %v962_v33 = vmul.f32 -0.0001984127, %v958_v15  ;;  %v990_v61 = vmul.f32 -0.0013888889, %v958_v15  ;;  %v234_v9 = vrot.slane %v3273_v19, %v3781_v40  ;;  %vm4323_vm7 = vcmp.ne.s32.totalorder %v801_v55, 0 }
 0x145   :  { %v753_v12 = vadd.f32 1.0, %v749_v30  ;;  %v4321_v34 = vadd.f32 1.0, %v777_v0  ;;  %v1171_v24 = vmul.f32 1.5707964, %v2976_v22  ;;  %v584_v63 = vsel %vm4279_vm15, %v580_v26, %v564_v29 }
 0x146   :  { %v966_v1 = vadd.f32 0.008333334, %v962_v33  ;;  %v994_v27 = vadd.f32 0.041666668, %v990_v61  ;;  %v2982_v38 = vcvt.f32.s32 %v1163_v54  ;;  %v1030_v30 = vand.u32 2, %v4305_v17 }
 0x147   :  { %4914 = vst [vmem:[#allocation77_spill] sm:$0xff] %v4321_v34  ;;  %v4332_v52 = vmul.f32 %v753_v12, %v4261_v4  ;;  %v4335_v0 = vsub.f32 %v1159_v43, %v1171_v24  ;;  %v245_v55 = vmul.f32 %v234_v9, %v219_v47  ;;  %vm4337_vm11 = vcmp.ne.s32.totalorder %v1014_v23, 0 }
 0x148   :  { %v970_v19 = vmul.f32 %v966_v1, %v958_v15  ;;  %v998_v7 = vmul.f32 %v994_v27, %v958_v15  ;;  %v4918_v22 = vmov 0  ;;  %v4342_v62 = vmul.f32 %v182_v6, %v4327_v58 }
 0x149   :  { %4917 = vst [vmem:[#allocation78_spill] sm:$0xff] %v4332_v52  ;;  %v4919_v22 = vsel %vm4337_vm11, 4294967295, %v4918_v22  ;;  %v616_v29 = vmul.f32 %v584_v63, %v4249_v11  ;;  %v793_v4 = vsel %vm4307_vm3, %v4321_v34, %v4332_v52  ;;  %v1187_v43 = vmul.f32 %v4335_v0, %v4335_v0 }
 0x14a   :  { %v249_v54 = vmul.f32 0.63661975, %v245_v55  ;;  %v809_v47 = vsub.f32 0.0, %v793_v4  ;;  %v974_v26 = vadd.f32 -0.16666667, %v970_v19  ;;  %v1002_v33 = vadd.f32 -0.5, %v998_v7 }
 0x14b   :  { %v4351_v61 = vand.u32 3, %v2982_v38  ;;  %vm4353_vm15 = vcmp.ne.s32.totalorder %v1030_v30, 0  ;;  %v1191_v6 = vmul.f32 -0.0001984127, %v1187_v43  ;;  %v1219_v9 = vmul.f32 -0.0013888889, %v1187_v43 }
 0x14c   :  { %v2914_v12 = vround.rtne.f32 %v249_v54  ;;  %v813_v24 = vsel %vm4323_vm7, %v809_v47, %v793_v4  ;;  %v978_v63 = vmul.f32 %v974_v26, %v958_v15  ;;  %v1006_v1 = vmul.f32 %v1002_v33, %v958_v15 }
 0x14d   :  { %v2924_v27 = vcvt.f32.s32 %v249_v54  ;;  %v620_v11 = vadd.f32 %v616_v29, %v387_v41  ;;  %v1195_v17 = vadd.f32 0.008333334, %v1191_v6  ;;  %v1223_v56 = vadd.f32 0.041666668, %v1219_v9 }
 0x14e   :  { %v257_v19 = vmul.f32 1.5707964, %v2914_v12  ;;  %v845_v7 = vmul.f32 %v813_v24, %v4259_v10  ;;  %v982_v38 = vadd.f32 1.0, %v978_v63  ;;  %v4360_v30 = vadd.f32 1.0, %v1006_v1 }
 0x14f   :  { %v1243_v52 = vand.u32 1, %v4351_v61  ;;  %v1199_v34 = vmul.f32 %v1195_v17, %v1187_v43  ;;  %v1227_v14 = vmul.f32 %v1223_v56, %v1187_v43  ;;  %v409_v4 = vrot.slane %v3274_v21, %v3781_v40 }
 0x150   :  { %v4363_v49 = vsub.f32 %v245_v55, %v257_v19  ;;  %v4367_v15 = vmul.f32 %v982_v38, %v4303_v45  ;;  %v1259_v41 = vand.u32 2, %v4351_v61  ;;  %v4370_v29 = vand.u32 3, %v2924_v27 }
 0x151   :  { %v436_v54 = vrot.slane %v4153_v60, %v3781_v40  ;;  %v1203_v47 = vadd.f32 -0.16666667, %v1199_v34  ;;  %v1231_v26 = vadd.f32 -0.5, %v1227_v14  ;;  %v463_v56 = vrot.slane %v4173_v32, %v3781_v40 }
 0x152   :  { %4922 = vst [vmem:[#allocation79_spill] sm:$0xff] %v4370_v29  ;;  %v273_v17 = vmul.f32 %v4363_v49, %v4363_v49  ;;  %v849_v55 = vadd.f32 %v845_v7, %v620_v11  ;;  %v1022_v45 = vsel %vm4337_vm11, %v4360_v30, %v4367_v15  ;;  %vm4382_vm7 = vcmp.ne.s32.totalorder %v1243_v52, 0 }
 0x153   :  { %v4923_v33 = vmov 0  ;;  %v447_v60 = vadd.f32 %v436_v54, %v4296_v16  ;;  %v1038_v34 = vsub.f32 0.0, %v1022_v45  ;;  %v1207_v14 = vmul.f32 %v1203_v47, %v1187_v43 }
 0x154   :  { %v4924_v33 = vsel %vm4382_vm7, 4294967295, %v4923_v33  ;;  %v1235_v6 = vmul.f32 %v1231_v26, %v1187_v43  ;;  %v277_v9 = vmul.f32 -0.0001984127, %v273_v17  ;;  %v305_v12 = vmul.f32 -0.0013888889, %v273_v17 }
 0x155   :  { %v329_v24 = vand.u32 1, %v4370_v29  ;;  %v474_v32 = vmul.f32 %v463_v56, %v447_v60  ;;  %v665_v11 = vrot.slane %v4180_v48, %v3781_v40  ;;  %v1042_v63 = vsel %vm4353_vm15, %v1038_v34, %v1022_v45 }
 0x156   :  { %v1211_v52 = vadd.f32 1.0, %v1207_v14  ;;  %v4392_v1 = vadd.f32 1.0, %v1235_v6  ;;  %v281_v27 = vadd.f32 0.008333334, %v277_v9  ;;  %v1074_v19 = vmul.f32 %v1042_v63, %v4268_v51 }
 0x157   :  { %v309_v7 = vadd.f32 0.041666668, %v305_v12  ;;  %v345_v43 = vand.u32 2, %v4370_v29  ;;  %v478_v38 = vmul.f32 0.63661975, %v474_v32  ;;  %v676_v47 = vadd.f32 %v665_v11, %v4296_v16 }
 0x158   :  { %v4397_v21 = vmul.f32 %v1211_v52, %v4335_v0  ;;  %v285_v54 = vmul.f32 %v281_v27, %v273_v17  ;;  %v692_v48 = vrot.slane %v4192_v42, %v3781_v40  ;;  %vm4402_vm15 = vcmp.ne.s32.totalorder %v1259_v41, 0 }
 0x159   :  { %v313_v26 = vmul.f32 %v309_v7, %v273_v17  ;;  %v2930_v56 = vround.rtne.f32 %v478_v38  ;;  %v2940_v45 = vcvt.f32.s32 %v478_v38  ;;  %v4411_v34 = vmul.f32 %v409_v4, %v4327_v58 }
 0x15a   :  { %v1251_v60 = vsel %vm4382_vm7, %v4392_v1, %v4397_v21  ;;  %v289_v0 = vadd.f32 -0.16666667, %v285_v54  ;;  %v703_v14 = vmul.f32 %v692_v48, %v676_v47  ;;  %vm4413_vm11 = vcmp.ne.s32.totalorder %v329_v24, 0 }
 0x15b   :  { %v1267_v6 = vsub.f32 0.0, %v1251_v60  ;;  %v317_v9 = vadd.f32 -0.5, %v313_v26  ;;  %v4927_v42 = vmov 0  ;;  %v486_v41 = vmul.f32 1.5707964, %v2930_v56 }
 0x15c   :  { %v4928_v42 = vsel %vm4413_vm11, 4294967295, %v4927_v42  ;;  %v1078_v12 = vadd.f32 %v1074_v19, %v849_v55  ;;  %v293_v11 = vmul.f32 %v289_v0, %v273_v17  ;;  %vm4417_vm3 = vcmp.ne.s32.totalorder %v345_v43, 0  ;;  %v3275_v26 = vld [vmem:[#allocation7 + $0xc] sm:$0xf] }
 0x15d   :  { %4929 = vst [vmem:[#allocation80_spill] sm:$0xff] %v4928_v42  ;;  %v4421_v52 = vand.u32 3, %v2940_v45  ;;  %v707_v27 = vmul.f32 0.63661975, %v703_v14  ;;  %v1271_v4 = vsel %vm4402_vm15, %v1267_v6, %v1251_v60  ;;  %v321_v7 = vmul.f32 %v317_v9, %v273_v17  ;;  %v3102_v60 = vld [vmem:[#allocation11] ss:$8 sps:$4 sm:$0xff]  }
 0x15e   :  { %v4425_v38 = vsub.f32 %v474_v32, %v486_v41  ;;  %v894_v24 = vrot.slane %v4223_v50, %v3781_v40  ;;  %v1303_v54 = vmul.f32 %v1271_v4, %v4294_v31  ;;  %v297_v55 = vadd.f32 1.0, %v293_v11 }
 0x15f   :  { %4932 = vst [vmem:[#allocation81_spill] sm:$0xff] %v4421_v52  ;;  %v638_v19 = vrot.slane %v4215_v13, %v3781_v40  ;;  %v2946_v43 = vround.rtne.f32 %v707_v27  ;;  %v4432_v47 = vadd.f32 1.0, %v321_v7  ;;  %v2956_v23 = vcvt.f32.s32 %v707_v27  ;;  %v3110_v27 = vld [vmem:[#allocation11 + $0x14] ss:$8 sps:$4 sm:$0xff]  }
 0x160   :  { %v502_v48 = vmul.f32 %v4425_v38, %v4425_v38  ;;  %v867_v17 = vrot.slane %v3275_v26, %v3781_v40  ;;  %v1307_v32 = vadd.f32 %v1303_v54, %v1078_v12  ;;  %v4438_v56 = vmul.f32 %v297_v55, %v4363_v49 }
 0x161   :  { %v558_v50 = vand.u32 1, %v4421_v52  ;;  %v715_v45 = vmul.f32 1.5707964, %v2946_v43  ;;  %v4441_v6 = vand.u32 3, %v2956_v23  ;;  %v905_v9 = vadd.f32 %v894_v24, %v4296_v16 }
 0x162   :  { %4933 = vst [vmem:[#allocation82_spill] sm:$0xff] %v4438_v56  ;;  %v506_v0 = vmul.f32 -0.0001984127, %v502_v48  ;;  %v534_v13 = vmul.f32 -0.0013888889, %v502_v48  ;;  %v1379_v41 = vpack.c.bf16 %v1307_v32, %v1307_v32  ;;  %v337_v11 = vsel %vm4413_vm11, %v4432_v47, %v4438_v56 }
 0x163   :  { %4934 = vst [vmem:[#allocation83_spill] sm:$0xff] %v4441_v6  ;;  %v4448_v12 = vsub.f32 %v703_v14, %v715_v45  ;;  %v921_v49 = vrot.slane %v4237_v36, %v3781_v40  ;;  %v353_v4 = vsub.f32 0.0, %v337_v11  ;;  %v574_v55 = vand.u32 2, %v4421_v52  ;;  %v4467_v52 = vld [vmem:[#allocation7 + $0x10] sm:$0xf] }
 0x164   :  { %v510_v7 = vadd.f32 0.008333334, %v506_v0  ;;  %v538_v54 = vadd.f32 0.041666668, %v534_v13  ;;  %1800 = vmatmul.mubr.bf16.vlgmr.msra.gmra.mrb[0].mxu0 %v1379_v41  ;;  %v4454_v24 = vmul.f32 %v638_v19, %v4327_v58  ;;  %v4459_v23 = vmul.f32 %v867_v17, %v4327_v58  ;;  %v3108_v0 = vld [vmem:[#allocation11 + $0x10] ss:$8 sps:$4 sm:$0xff]  }
 0x165   :  { %v731_v43 = vmul.f32 %v4448_v12, %v4448_v12  ;;  %v932_v14 = vmul.f32 %v921_v49, %v905_v9  ;;  %vm4461_vm15 = vcmp.ne.s32.totalorder %v558_v50, 0  ;;  %v4935_v36 = vmov 0  ;;  %2170 = vmatpush1.bf16.msra.mxu0 %v3102_v60  ;;  %v3116_v13 = vld [vmem:[#allocation11 + $0x24] ss:$8 sps:$4 sm:$0xff]  }
 0x166   :  { %v514_v26 = vmul.f32 %v510_v7, %v502_v48  ;;  %v542_v32 = vmul.f32 %v538_v54, %v502_v48  ;;  %v4936_v36 = vsel %vm4461_vm15, 4294967295, %v4935_v36  ;;  %v787_v45 = vand.u32 1, %v4441_v6  ;;  %2171 = vmatprep.subr.bf16.mxu0 %v3110_v27  ;;  %v3143_v7 = vld [vmem:[#allocation11 + $0x164] ss:$8 sps:$4 sm:$0xff]  }
 0x167   :  { %v735_v19 = vmul.f32 -0.0001984127, %v731_v43  ;;  %v763_v41 = vmul.f32 -0.0013888889, %v731_v43  ;;  %v803_v31 = vand.u32 2, %v4441_v6  ;;  %v357_v50 = vsel %vm4417_vm3, %v353_v4, %v337_v11 }
 0x168   :  { %v518_v9 = vadd.f32 -0.16666667, %v514_v26  ;;  %v546_v49 = vadd.f32 -0.5, %v542_v32  ;;  %vm4473_vm11 = vcmp.ne.s32.totalorder %v574_v55, 0  ;;  %v936_v60 = vmul.f32 0.63661975, %v932_v14 }
 0x169   :  { %v739_v54 = vadd.f32 0.008333334, %v735_v19  ;;  %v767_v51 = vadd.f32 0.041666668, %v763_v41  ;;  %v1123_v6 = vrot.slane %v4275_v25, %v3781_v40  ;;  %v1150_v29 = vrot.slane %v4284_v5, %v3781_v40  ;;  %2172 = vmatpush1.bf16.msra.mxu0 %v3108_v0  ;;  %v3114_v55 = vld [vmem:[#allocation11 + $0x20] ss:$8 sps:$4 sm:$0xff]  }
 0x16a   :  { %v522_v17 = vmul.f32 %v518_v9, %v502_v48  ;;  %v550_v27 = vmul.f32 %v546_v49, %v502_v48  ;;  %vm4481_vm7 = vcmp.ne.s32.totalorder %v787_v45, 0  ;;  %v2962_v11 = vround.rtne.f32 %v936_v60  ;;  %2173 = vmatprep.subr.bf16.mxu0 %v3116_v13  ;;  %v3122_v25 = vld [vmem:[#allocation11 + $0x34] ss:$8 sps:$4 sm:$0xff]  }
 0x16b   :  { %v2972_v4 = vcvt.f32.s32 %v936_v60  ;;  %v389_v26 = vmul.f32 %v357_v50, %v4342_v62  ;;  %v743_v32 = vmul.f32 %v739_v54, %v731_v43  ;;  %v771_v19 = vmul.f32 %v767_v51, %v731_v43 }
 0x16c   :  { %v1134_v41 = vadd.f32 %v1123_v6, %v4296_v16  ;;  %v526_v42 = vadd.f32 1.0, %v522_v17  ;;  %v4487_v5 = vadd.f32 1.0, %v550_v27  ;;  %v944_v48 = vmul.f32 1.5707964, %v2962_v11  ;;  %v3120_v6 = vld [vmem:[#allocation11 + $0x30] ss:$8 sps:$4 sm:$0xff]  }
 0x16d   :  { %v4489_v45 = vand.u32 3, %v2972_v4  ;;  %v747_v9 = vadd.f32 -0.16666667, %v743_v32  ;;  %v775_v49 = vadd.f32 -0.5, %v771_v19  ;;  %v360_v0 = vadd.s32 1, %v3783_v44  ;;  %2174 = vmatpush1.bf16.msra.mxu0 %v3114_v55 }
 0x16e   :  { %v1161_v56 = vmul.f32 %v1150_v29, %v1134_v41  ;;  %v4493_v60 = vmul.f32 %v526_v42, %v4425_v38  ;;  %vm4495_vm3 = vcmp.ne.s32.totalorder %v803_v31, 0  ;;  %v4499_v16 = vsub.f32 %v932_v14, %v944_v48  ;;  %2175 = vmatprep.subr.bf16.mxu0 %v3122_v25  ;;  %v3128_v44 = vld [vmem:[#allocation11 + $0x44] ss:$8 sps:$4 sm:$0xff]   ;;  %v3126_v27 = vld [vmem:[#allocation11 + $0x40] ss:$8 sps:$4 sm:$0xff]  }
 0x16f   :  { %v340_v13 = vsel %vm3822_vm0, %v3852_v46, %v3847_v37  ;;  %v751_v17 = vmul.f32 %v747_v9, %v731_v43  ;;  %v779_v29 = vmul.f32 %v775_v49, %v731_v43  ;;  %v364_v42 = vand.u32 2, %v360_v0  ;;  %v3134_v48 = vld [vmem:[#allocation11 + $0x54] ss:$8 sps:$4 sm:$0xff]  }
 0x170   :  { %v1165_v50 = vmul.f32 0.63661975, %v1161_v56  ;;  %v566_v31 = vsel %vm4461_vm15, %v4487_v5, %v4493_v60  ;;  %v960_v38 = vmul.f32 %v4499_v16, %v4499_v16  ;;  %v1016_v14 = vand.u32 1, %v4489_v45 }
 0x171   :  { %v1032_v54 = vand.u32 2, %v4489_v45  ;;  %v582_v28 = vsub.f32 0.0, %v566_v31  ;;  %v755_v37 = vadd.f32 1.0, %v751_v17  ;;  %v4513_v46 = vadd.f32 1.0, %v779_v29  ;;  %2176 = vmatpush1.bf16.msra.mxu0 %v3120_v6 }
 0x172   :  { %v2978_v43 = vround.rtne.f32 %v1165_v50  ;;  %v964_v11 = vmul.f32 -0.0001984127, %v960_v38  ;;  %v992_v4 = vmul.f32 -0.0013888889, %v960_v38  ;;  %v2988_v55 = vcvt.f32.s32 %v1165_v50  ;;  %2177 = vmatprep.subr.bf16.mxu0 %v3128_v44 }
 0x173   :  { %vm4515_vm0 = vcmp.ne.s32.totalorder %v364_v42, 0  ;;  %v586_v19 = vsel %vm4473_vm11, %v582_v28, %v566_v31  ;;  %v4522_v41 = vmul.f32 %v755_v37, %v4448_v12  ;;  %v372_v9 = vsub.f32 0.0, %v340_v13  ;;  %v3132_v37 = vld [vmem:[#allocation11 + $0x50] ss:$8 sps:$4 sm:$0xff]  }
 0x174   :  { %v1173_v25 = vmul.f32 1.5707964, %v2978_v43  ;;  %v618_v49 = vmul.f32 %v586_v19, %v4411_v34  ;;  %v968_v0 = vadd.f32 0.008333334, %v964_v11  ;;  %v996_v17 = vadd.f32 0.041666668, %v992_v4 }
 0x175   :  { %v4525_v29 = vand.u32 3, %v2988_v55  ;;  %v795_v6 = vsel %vm4481_vm7, %v4513_v46, %v4522_v41  ;;  %vm4531_vm15 = vcmp.ne.s32.totalorder %v1016_v14, 0  ;;  %v4947_v12 = vrot.slane %v4467_v52, %v3781_v40  ;;  %2178 = vmatpush1.bf16.msra.mxu0 %v3126_v27  ;;  %v3140_v40 = vld [vmem:[#allocation11 + $0x64] ss:$8 sps:$4 sm:$0xff]  }
 0x176   :  { %v4541_v44 = vsub.f32 %v1161_v56, %v1173_v25  ;;  %v811_v42 = vsub.f32 0.0, %v795_v6  ;;  %v972_v31 = vmul.f32 %v968_v0, %v960_v38  ;;  %v1000_v28 = vmul.f32 %v996_v17, %v960_v38  ;;  %2179 = vmatprep.subr.bf16.mxu0 %v3134_v48 }
 0x177   :  { %v4539_v50 = vmul.f32 %v4947_v12, %v4327_v58  ;;  %v376_v43 = vsel %vm4515_vm0, %v372_v9, %v340_v13  ;;  %v622_v14 = vadd.f32 %v618_v49, %v389_v26  ;;  %v1245_v4 = vand.u32 1, %v4525_v29  ;;  %v3149_v12 = vld [vmem:[#allocation11 + $0x174] ss:$8 sps:$4 sm:$0xff]  }
 0x178   :  { %v1189_v11 = vmul.f32 %v4541_v44, %v4541_v44  ;;  %v569_v58 = vsel %vm3827_vm1, %v3859_v59, %v3849_v3  ;;  %v815_v52 = vsel %vm4495_vm3, %v811_v42, %v795_v6  ;;  %v976_v56 = vadd.f32 -0.16666667, %v972_v31  ;;  %v3138_v3 = vld [vmem:[#allocation11 + $0x60] ss:$8 sps:$4 sm:$0xff]   ;;  %v3146_v59 = vld [vmem:[#allocation11 + $0x74] ss:$8 sps:$4 sm:$0xff]  }
 0x179   :  { %v1004_v27 = vadd.f32 -0.5, %v1000_v28  ;;  %vm4554_vm11 = vcmp.ne.s32.totalorder %v1032_v54, 0  ;;  %v589_v26 = vadd.s32 1, %v3789_v53  ;;  %v847_v55 = vmul.f32 %v815_v52, %v4454_v24  ;;  %2180 = vmatpush1.bf16.msra.mxu0 %v3132_v37  ;;  %v4952_v28 = vld [vmem:[#allocation26_spill] sm:$0xff] }
 0x17a   :  { %v1193_v32 = vmul.f32 -0.0001984127, %v1189_v11  ;;  %v1221_v19 = vmul.f32 -0.0013888889, %v1189_v11  ;;  %v1261_v25 = vand.u32 2, %v4525_v29  ;;  %v980_v48 = vmul.f32 %v976_v56, %v960_v38  ;;  %2181 = vmatprep.subr.bf16.mxu0 %v3140_v40  ;;  %v4953_v40 = vld [vmem:[#allocation28_spill] sm:$0xff] }
 0x17b   :  { %v1008_v39 = vmul.f32 %v1004_v27, %v960_v38  ;;  %v380_v51 = vmul.f32 %v376_v43, %v3796_v57  ;;  %v593_v9 = vand.u32 2, %v589_v26  ;;  %v851_v54 = vadd.f32 %v847_v55, %v622_v14  ;;  %v3144_v14 = vld [vmem:[#allocation11 + $0x70] ss:$8 sps:$4 sm:$0xff]   ;;  %v4954_v27 = vld [vmem:[#allocation31_spill] sm:$0xff]  ;;  %v4955_v26 = vld [vmem:[#allocation32_spill] sm:$0xff] }
 0x17c   :  { %v1197_v49 = vadd.f32 0.008333334, %v1193_v32  ;;  %v1225_v0 = vadd.f32 0.041666668, %v1221_v19  ;;  %v601_v17 = vsub.f32 0.0, %v569_v58  ;;  %v984_v53 = vadd.f32 1.0, %v980_v48 }
 0x17d   :  { %v4562_v6 = vadd.f32 1.0, %v1008_v39  ;;  %vm4564_vm1 = vcmp.ne.s32.totalorder %v1245_v4, 0  ;;  %vm597_vm3 = vcmp.ne.s32.totalorder %v593_v9, 0  ;;  %v798_v38 = vsel %vm3854_vm4, %v3876_v18, %v3868_v20  ;;  %2182 = vmatpush1.bf16.msra.mxu0 %v3138_v3  ;;  %v3152_v4 = vld [vmem:[#allocation11 + $0x84] ss:$8 sps:$4 sm:$0xff]  }
 0x17e   :  { %v1201_v57 = vmul.f32 %v1197_v49, %v1189_v11  ;;  %v1229_v42 = vmul.f32 %v1225_v0, %v1189_v11  ;;  %v605_v31 = vsel %vm597_vm3, %v601_v17, %v569_v58  ;;  %v818_v37 = vadd.s32 1, %v4952_v28  ;;  %2183 = vmatprep.subr.bf16.mxu0 %v3146_v59  ;;  %v4959_v32 = vld [vmem:[#allocation27_spill] sm:$0xff] }
 0x17f   :  { %v4574_v43 = vmul.f32 %v984_v53, %v4499_v16  ;;  %v609_v52 = vmul.f32 %v605_v31, %v4953_v40  ;;  %v830_v56 = vsub.f32 0.0, %v798_v38  ;;  %v1027_v8 = vsel %vm3900_vm6, %v4955_v26, %v4954_v27  ;;  %v3150_v59 = vld [vmem:[#allocation11 + $0x80] ss:$8 sps:$4 sm:$0xff]   ;;  %v4963_v27 = vld [vmem:[#allocation42_spill] sm:$0xff] }
 0x180   :  { %v1205_v20 = vadd.f32 -0.16666667, %v1201_v57  ;;  %v1233_v18 = vadd.f32 -0.5, %v1229_v42  ;;  %vm4581_vm4 = vcmp.ne.s32.totalorder %v1261_v25, 0  ;;  %v822_v16 = vand.u32 2, %v818_v37  ;;  %v4961_v42 = vld [vmem:[#allocation33_spill] sm:$0xff] }
 0x181   :  { %v1047_v19 = vadd.s32 1, %v4959_v32  ;;  %v1024_v48 = vsel %vm4531_vm15, %v4562_v6, %v4574_v43  ;;  %v613_v39 = vadd.f32 %v609_v52, %v380_v51  ;;  %v1059_v3 = vsub.f32 0.0, %v1027_v8  ;;  %2184 = vmatpush1.bf16.msra.mxu0 %v3144_v14  ;;  %v3158_v52 = vld [vmem:[#allocation11 + $0x94] ss:$8 sps:$4 sm:$0xff]   ;;  %v3156_v32 = vld [vmem:[#allocation11 + $0x90] ss:$8 sps:$4 sm:$0xff]  }
 0x182   :  { %v1256_v49 = vsel %vm3978_vm8, %v4005_v35, %v3998_v2  ;;  %v1040_v25 = vsub.f32 0.0, %v1024_v48  ;;  %v1209_v0 = vmul.f32 %v1205_v20, %v1189_v11  ;;  %v1237_v17 = vmul.f32 %v1233_v18, %v1189_v11  ;;  %2185 = vmatprep.subr.bf16.mxu0 %v3152_v4  ;;  %v4962_v2 = vld [vmem:[#allocation30_spill] sm:$0xff]  ;;  %v4966_v18 = vld [vmem:[#allocation39_spill] sm:$0xff] }
 0x183   :  { %vm826_vm6 = vcmp.ne.s32.totalorder %v822_v16, 0  ;;  %v1051_v57 = vand.u32 2, %v1047_v19  ;;  %v1276_v31 = vadd.s32 1, %v4961_v42  ;;  %v1288_v28 = vsub.f32 0.0, %v1256_v49  ;;  %v4967_v19 = vld [vmem:[#allocation34_spill] sm:$0xff] }
 0x184   :  { %v834_v53 = vsel %vm826_vm6, %v830_v56, %v798_v38  ;;  %v1044_v51 = vsel %vm4554_vm11, %v1040_v25, %v1024_v48  ;;  %v1213_v37 = vadd.f32 1.0, %v1209_v0  ;;  %v4597_v40 = vadd.f32 1.0, %v1237_v17  ;;  %v4964_v38 = vld [vmem:[#allocation43_spill] sm:$0xff] }
 0x185   :  { %v838_v35 = vmul.f32 %v834_v53, %v4962_v2  ;;  %v1076_v11 = vmul.f32 %v1044_v51, %v4459_v23  ;;  %vm1055_vm8 = vcmp.ne.s32.totalorder %v1051_v57, 0  ;;  %v1280_v14 = vand.u32 2, %v1276_v31  ;;  %2186 = vmatpush1.bf16.msra.mxu0 %v3150_v59  ;;  %v3164_v0 = vld [vmem:[#allocation11 + $0xa4] ss:$8 sps:$4 sm:$0xff]  }
 0x186   :  { %v342_v26 = vsel %vm4015_vm10, %v4964_v38, %v4963_v27  ;;  %v4606_v55 = vmul.f32 %v1213_v37, %v4541_v44  ;;  %v1063_v20 = vsel %vm1055_vm8, %v1059_v3, %v1027_v8  ;;  %v362_v16 = vadd.s32 1, %v4966_v18  ;;  %2187 = vmatprep.subr.bf16.mxu0 %v3158_v52  ;;  %v4969_v8 = vld [vmem:[#allocation47_spill] sm:$0xff]  ;;  %v4972_v31 = vld [vmem:[#allocation40_spill] sm:$0xff]  ;;  %v3170_v18 = vld [vmem:[#allocation11 + $0xb4] ss:$8 sps:$4 sm:$0xff]  }
 0x187   :  { %v842_v13 = vadd.f32 %v838_v35, %v613_v39  ;;  %v1080_v4 = vadd.f32 %v1076_v11, %v851_v54  ;;  %v1067_v48 = vmul.f32 %v1063_v20, %v4967_v19  ;;  %vm1284_vm0 = vcmp.ne.s32.totalorder %v1280_v14, 0  ;;  %v4968_v39 = vld [vmem:[#allocation45_spill] sm:$0xff]  ;;  %v4971_v57 = vld [vmem:[#allocation35_spill] sm:$0xff] }
 0x188   :  { %v374_v9 = vsub.f32 0.0, %v342_v26  ;;  %v1253_v25 = vsel %vm4564_vm1, %v4597_v40, %v4606_v55  ;;  %v1292_v44 = vsel %vm1284_vm0, %v1288_v28, %v1256_v49  ;;  %v366_v17 = vand.u32 2, %v362_v16  ;;  %v4973_v2 = vld [vmem:[#allocation51_spill] sm:$0xff]  ;;  %v4974_v35 = vld [vmem:[#allocation53_spill] sm:$0xff]  ;;  %v4976_v49 = vld [vmem:[#allocation48_spill] sm:$0xff] }
 0x189   :  { %v571_v54 = vsel %vm4041_vm12, %v4969_v8, %v4968_v39  ;;  %v1269_v59 = vsub.f32 0.0, %v1253_v25  ;;  %v1071_v53 = vadd.f32 %v1067_v48, %v842_v13  ;;  %v1296_v42 = vmul.f32 %v1292_v44, %v4971_v57  ;;  %2188 = vmatpush1.bf16.msra.mxu0 %v3156_v32  ;;  %v3162_v27 = vld [vmem:[#allocation11 + $0xa0] ss:$8 sps:$4 sm:$0xff]   ;;  %v4979_v8 = vld [vmem:[#allocation61_spill] sm:$0xff]  ;;  %v4981_v32 = vld [vmem:[#allocation50_spill] sm:$0xff] }
 0x18a   :  { %v591_v51 = vadd.s32 1, %v4972_v31  ;;  %vm370_vm10 = vcmp.ne.s32.totalorder %v366_v17, 0  ;;  %v603_v37 = vsub.f32 0.0, %v571_v54  ;;  %v800_v52 = vsel %vm4097_vm14, %v4974_v35, %v4973_v2  ;;  %2189 = vmatprep.subr.bf16.mxu0 %v3164_v0  ;;  %v4977_v16 = vld [vmem:[#allocation36_spill] sm:$0xff]  ;;  %v4978_v39 = vld [vmem:[#allocation59_spill] sm:$0xff]  ;;  %v4982_v57 = vld [vmem:[#allocation37_spill] sm:$0xff] }
 0x18b   :  { %v820_v28 = vadd.s32 1, %v4976_v49  ;;  %v1273_v14 = vsel %vm4581_vm4, %v1269_v59, %v1253_v25  ;;  %v1300_v38 = vadd.f32 %v1296_v42, %v1071_v53  ;;  %v378_v56 = vsel %vm370_vm10, %v374_v9, %v342_v26  ;;  %v3105_v53 = vld [vmem:[#allocation11 + $0x100] ss:$8 sps:$4 sm:$0xff]   ;;  %v3168_v0 = vld [vmem:[#allocation11 + $0xb0] ss:$8 sps:$4 sm:$0xff]  }
 0x18c   :  { %v595_v13 = vand.u32 2, %v591_v51  ;;  %v1305_v20 = vmul.f32 %v1273_v14, %v4539_v50  ;;  %v382_v19 = vmul.f32 %v378_v56, %v4977_v16  ;;  %v832_v44 = vsub.f32 0.0, %v800_v52  ;;  %v4983_v2 = vld [vmem:[#allocation62_spill] sm:$0xff]  ;;  %v4984_v35 = vld [vmem:[#allocation63_spill] sm:$0xff] }
 0x18d   :  { %v824_v48 = vand.u32 2, %v820_v28  ;;  %v1312_v17 = vpack.c.bf16 %v1300_v38, %v1300_v38  ;;  %v1029_v58 = vsel %vm4137_vm2, %v4979_v8, %v4978_v39  ;;  %v1049_v25 = vadd.s32 1, %v4981_v32  ;;  %2190 = vmatpush1.bf16.msra.mxu0 %v3162_v27  ;;  %v3113_v14 = vld [vmem:[#allocation11 + $0x114] ss:$8 sps:$4 sm:$0xff]   ;;  %v4989_v16 = vld [vmem:[#allocation67_spill] sm:$0xff]  ;;  %v4992_v32 = vld [vmem:[#allocation72_spill] sm:$0xff] }
 0x18e   :  { %vm599_vm12 = vcmp.ne.s32.totalorder %v595_v13, 0  ;;  %v1309_v59 = vadd.f32 %v1305_v20, %v1080_v4  ;;  %v1061_v9 = vsub.f32 0.0, %v1029_v58  ;;  %v1258_v49 = vsel %vm4158_vm5, %v4984_v35, %v4983_v2  ;;  %2191 = vmatprep.subr.bf16.mxu0 %v3170_v18  ;;  %v3176_v4 = vld [vmem:[#allocation11 + $0xc4] ss:$8 sps:$4 sm:$0xff]   ;;  %v4987_v38 = vld [vmem:[#allocation54_spill] sm:$0xff] }
 0x18f   :  { %v607_v26 = vsel %vm599_vm12, %v603_v37, %v571_v54  ;;  %vm828_vm14 = vcmp.ne.s32.totalorder %v824_v48, 0  ;;  %2201 = vmatprep.mubr.bf16.mxu0 %v1312_v17  ;;  %v1053_v51 = vand.u32 2, %v1049_v25  ;;  %v4986_v54 = vld [vmem:[#allocation46_spill] sm:$0xff]  ;;  %v1278_v56 = vadd.s32 1, %v4987_v38  ;;  %v4996_v35 = vld [vmem:[#allocation64_spill] sm:$0xff] }
 0x190   :  { %v611_v42 = vmul.f32 %v607_v26, %v4982_v57  ;;  %v836_v31 = vsel %vm828_vm14, %v832_v44, %v800_v52  ;;  %v1381_v28 = vpack.c.bf16 %v1309_v59, %v1309_v59  ;;  %v1290_v27 = vsub.f32 0.0, %v1258_v49  ;;  %v4988_v20 = vld [vmem:[#allocation66_spill] sm:$0xff]  ;;  %v4991_v44 = vld [vmem:[#allocation60_spill] sm:$0xff] }
 0x191   :  { %v840_v37 = vmul.f32 %v836_v31, %v4986_v54  ;;  %vm1057_vm2 = vcmp.ne.s32.totalorder %v1053_v51, 0  ;;  %v339_v48 = vsel %vm4209_vm9, %v4989_v16, %v4988_v20  ;;  %v359_v17 = vadd.s32 1, %v4991_v44  ;;  %v3111_v39 = vld [vmem:[#allocation11 + $0x110] ss:$8 sps:$4 sm:$0xff]   ;;  %2192 = vmatpush1.bf16.msra.mxu0 %v3168_v0  ;;  %v3174_v57 = vld [vmem:[#allocation11 + $0xc0] ss:$8 sps:$4 sm:$0xff]  }
 0x192   :  { %v615_v13 = vadd.f32 %v611_v42, %v382_v19  ;;  %1841 = vmatmul.mubr.bf16.vlgmr.msra.gmra.mrb[0].mxu1 %v1381_v28  ;;  %v1065_v8 = vsel %vm1057_vm2, %v1061_v9, %v1029_v58  ;;  %v1282_v3 = vand.u32 2, %v1278_v56  ;;  %v371_v18 = vsub.f32 0.0, %v339_v48  ;;  %v4993_v25 = vld [vmem:[#allocation74_spill] sm:$0xff]  ;;  %v3119_v19 = vld [vmem:[#allocation11 + $0x124] ss:$8 sps:$4 sm:$0xff]   ;;  %v4995_v31 = vld [vmem:[#allocation49_spill] sm:$0xff]  ;;  %2193 = vmatprep.subr.bf16.mxu0 %v3176_v4 }
 0x193   :  { %v568_v26 = vsel %vm4263_vm13, %v4993_v25, %v4992_v32  ;;  %2211 = vmatpush1.bf16.msra.mxu1 %v3105_v53  ;;  %v1069_v51 = vmul.f32 %v1065_v8, %v4995_v31  ;;  %v363_v2 = vand.u32 2, %v359_v17  ;;  %v588_v11 = vadd.s32 1, %v4996_v35  ;;  %v3182_v58 = vld [vmem:[#allocation11 + $0xd4] ss:$8 sps:$4 sm:$0xff]   ;;  %v4999_v38 = vld [vmem:[#allocation76_spill] sm:$0xff] }
 0x194   :  { %v844_v42 = vadd.f32 %v840_v37, %v615_v13  ;;  %2212 = vmatprep.subr.bf16.mxu1 %v3113_v14  ;;  %vm1286_vm5 = vcmp.ne.s32.totalorder %v1282_v3, 0  ;;  %v600_v9 = vsub.f32 0.0, %v568_v26  ;;  %v4997_v28 = vld [vmem:[#allocation77_spill] sm:$0xff]  ;;  %v4998_v54 = vld [vmem:[#allocation78_spill] sm:$0xff]  ;;  %vm5000_vm9 = vnez %v4999_v38  ;;  %v5002_v13 = vld [vmem:[#allocation55_spill] sm:$0xff] }
 0x195   :  { %v797_v56 = vsel %vm5000_vm9, %v4998_v54, %v4997_v28  ;;  %v5001_v53 = vld [vmem:[#allocation69_spill] sm:$0xff]  ;;  %v1294_v16 = vsel %vm1286_vm5, %v1290_v27, %v1258_v49  ;;  %vm367_vm13 = vcmp.ne.s32.totalorder %v363_v2, 0  ;;  %v592_v37 = vand.u32 2, %v588_v11  ;;  %v3117_v4 = vld [vmem:[#allocation11 + $0x120] ss:$8 sps:$4 sm:$0xff]   ;;  %2194 = vmatpush1.bf16.msra.mxu0 %v3174_v57 }
 0x196   :  { %v817_v20 = vadd.s32 1, %v5001_v53  ;;  %v1073_v0 = vadd.f32 %v1069_v51, %v844_v42  ;;  %v1298_v52 = vmul.f32 %v1294_v16, %v5002_v13  ;;  %v375_v44 = vsel %vm367_vm13, %v371_v18, %v339_v48  ;;  %v3180_v8 = vld [vmem:[#allocation11 + $0xd0] ss:$8 sps:$4 sm:$0xff]   ;;  %v5003_v3 = vld [vmem:[#allocation56_spill] sm:$0xff]  ;;  %v5005_v49 = vld [vmem:[#allocation75_spill] sm:$0xff]  ;;  %2195 = vmatprep.subr.bf16.mxu0 %v3182_v58 }
 0x197   :  { %v829_v14 = vsub.f32 0.0, %v797_v56  ;;  %2213 = vmatpush1.bf16.msra.mxu1 %v3111_v39  ;;  %v379_v32 = vmul.f32 %v375_v44, %v5003_v3  ;;  %vm596_vm11 = vcmp.ne.s32.totalorder %v592_v37, 0  ;;  %vm5004_vm3 = vnez %v4919_v22  ;;  %v3125_v59 = vld [vmem:[#allocation11 + $0x134] ss:$8 sps:$4 sm:$0xff]   ;;  %v3188_v48 = vld [vmem:[#allocation11 + $0xe4] ss:$8 sps:$4 sm:$0xff]  }
 0x198   :  { %v821_v17 = vand.u32 2, %v817_v20  ;;  %v1026_v25 = vsel %vm5004_vm3, %v4367_v15, %v4360_v30  ;;  %v1046_v27 = vadd.s32 1, %v5005_v49  ;;  %2214 = vmatprep.subr.bf16.mxu1 %v3119_v19  ;;  %v1302_v18 = vadd.f32 %v1298_v52, %v1073_v0  ;;  %v5006_v57 = vld [vmem:[#allocation68_spill] sm:$0xff]  ;;  %v3123_v11 = vld [vmem:[#allocation11 + $0x130] ss:$8 sps:$4 sm:$0xff]   ;;  %v5011_v38 = vld [vmem:[#allocation79_spill] sm:$0xff] }
 0x199   :  { %v604_v42 = vsel %vm596_vm11, %v600_v9, %v568_v26  ;;  %v1058_v39 = vsub.f32 0.0, %v1026_v25  ;;  %vm5007_vm6 = vnez %v4924_v33  ;;  %v1275_v19 = vadd.s32 1, %v4351_v61  ;;  %2196 = vmatpush1.bf16.msra.mxu0 %v3180_v8  ;;  %v3186_v26 = vld [vmem:[#allocation11 + $0xe0] ss:$8 sps:$4 sm:$0xff]   ;;  %v5008_v9 = vld [vmem:[#allocation82_spill] sm:$0xff] }
 0x19a   :  { %vm825_vm4 = vcmp.ne.s32.totalorder %v821_v17, 0  ;;  %v608_v31 = vmul.f32 %v604_v42, %v5006_v57  ;;  %v1050_v2 = vand.u32 2, %v1046_v27  ;;  %v1255_v22 = vsel %vm5007_vm6, %v4397_v21, %v4392_v1  ;;  %v5009_v28 = vld [vmem:[#allocation80_spill] sm:$0xff]  ;;  %2197 = vmatprep.subr.bf16.mxu0 %v3188_v48  ;;  %v5013_v0 = vld [vmem:[#allocation71_spill] sm:$0xff]  ;;  %v3137_v3 = vld [vmem:[#allocation11 + $0x154] ss:$8 sps:$4 sm:$0xff]  }
 0x19b   :  { %v833_v51 = vsel %vm825_vm4, %v829_v14, %v797_v56  ;;  %v1314_v30 = vpack.c.bf16 %v1302_v18, %v1302_v18  ;;  %v1287_v35 = vsub.f32 0.0, %v1255_v22  ;;  %2215 = vmatpush1.bf16.msra.mxu1 %v3117_v4  ;;  %vm5010_vm0 = vnez %v5009_v28  ;;  %v3131_v1 = vld [vmem:[#allocation11 + $0x144] ss:$8 sps:$4 sm:$0xff]   ;;  %v3129_v4 = vld [vmem:[#allocation11 + $0x140] ss:$8 sps:$4 sm:$0xff]  }
 0x19c   :  { %v837_v15 = vmul.f32 %v833_v51, %v4259_v10  ;;  %v612_v58 = vadd.f32 %v608_v31, %v379_v32  ;;  %vm1054_vm8 = vcmp.ne.s32.totalorder %v1050_v2, 0  ;;  %v341_v54 = vsel %vm5010_vm0, %v5008_v9, %v4432_v47  ;;  %2216 = vmatprep.subr.bf16.mxu1 %v3125_v59  ;;  %v3194_v10 = vld [vmem:[#allocation11 + $0xf4] ss:$8 sps:$4 sm:$0xff]   ;;  %v5015_v17 = vld [vmem:[#allocation83_spill] sm:$0xff]  ;;  %v3159_v28 = vld [vmem:[#allocation11 + $0x190] ss:$8 sps:$4 sm:$0xff]  }
 0x19d   :  { %v361_v33 = vadd.s32 1, %v5011_v38  ;;  %v1062_v21 = vsel %vm1054_vm8, %v1058_v39, %v1026_v25  ;;  %v1279_v61 = vand.u32 2, %v1275_v19  ;;  %v373_v56 = vsub.f32 0.0, %v341_v54  ;;  %2242 = vmatprep.mubr.bf16.mxu1 %v1314_v30  ;;  %v5014_v47 = vld [vmem:[#allocation81_spill] sm:$0xff]  ;;  %2198 = vmatpush1.bf16.msra.mxu0 %v3186_v26 }
 0x19e   :  { %vm5012_vm10 = vnez %v4936_v36  ;;  %v841_v20 = vadd.f32 %v837_v15, %v612_v58  ;;  %v1066_v16 = vmul.f32 %v1062_v21, %v5013_v0  ;;  %v590_v13 = vadd.s32 1, %v5014_v47  ;;  %v3192_v36 = vld [vmem:[#allocation11 + $0xf0] ss:$8 sps:$4 sm:$0xff]   ;;  %2199 = vmatprep.subr.bf16.mxu0 %v3194_v10  ;;  %v3141_v15 = vld [vmem:[#allocation11 + $0x160] ss:$8 sps:$4 sm:$0xff]  }
 0x19f   :  { %v570_v53 = vsel %vm5012_vm10, %v4493_v60, %v4487_v5  ;;  %v365_v37 = vand.u32 2, %v361_v33  ;;  %vm1283_vm12 = vcmp.ne.s32.totalorder %v1279_v61, 0  ;;  %v799_v44 = vsel %vm4481_vm7, %v4522_v41, %v4513_v46  ;;  %2217 = vmatpush1.bf16.msra.mxu1 %v3123_v11  ;;  %v5016_v32 = vld [vmem:[#allocation73_spill] sm:$0xff]  ;;  %v3155_v11 = vld [vmem:[#allocation11 + $0x184] ss:$8 sps:$4 sm:$0xff]  }
 0x1a0   :  { %v602_v52 = vsub.f32 0.0, %v570_v53  ;;  %v819_v14 = vadd.s32 1, %v5015_v17  ;;  %v1070_v5 = vadd.f32 %v1066_v16, %v841_v20  ;;  %v1291_v60 = vsel %vm1283_vm12, %v1287_v35, %v1255_v22  ;;  %2218 = vmatprep.subr.bf16.mxu1 %v3131_v1  ;;  %v3135_v39 = vld [vmem:[#allocation11 + $0x150] ss:$8 sps:$4 sm:$0xff]   ;;  %v3153_v58 = vld [vmem:[#allocation11 + $0x180] ss:$8 sps:$4 sm:$0xff]  }
 0x1a1   :  { %vm369_vm14 = vcmp.ne.s32.totalorder %v365_v37, 0  ;;  %v594_v8 = vand.u32 2, %v590_v13  ;;  %v1295_v25 = vmul.f32 %v1291_v60, %v5016_v32  ;;  %v831_v59 = vsub.f32 0.0, %v799_v44  ;;  %2200 = vmatpush1.bf16.msra.mxu0 %v3192_v36  ;;  %v3161_v9 = vld [vmem:[#allocation11 + $0x194] ss:$8 sps:$4 sm:$0xff]  }
 0x1a2   :  { %v377_v49 = vsel %vm369_vm14, %v373_v56, %v341_v54  ;;  %v823_v27 = vand.u32 2, %v819_v14  ;;  %v1028_v46 = vsel %vm4531_vm15, %v4574_v43, %v4562_v6  ;;  %v1048_v41 = vadd.s32 1, %v4489_v45  ;;  %v3165_v54 = vld [vmem:[#allocation11 + $0x1a0] ss:$8 sps:$4 sm:$0xff]   ;;  %v3173_v38 = vld [vmem:[#allocation11 + $0x1b4] ss:$8 sps:$4 sm:$0xff]  }
 0x1a3   :  { %v381_v63 = vmul.f32 %v377_v49, %v4342_v62  ;;  %vm598_vm7 = vcmp.ne.s32.totalorder %v594_v8, 0  ;;  %v1299_v48 = vadd.f32 %v1295_v25, %v1070_v5  ;;  %v1060_v42 = vsub.f32 0.0, %v1028_v46  ;;  %2219 = vmatpush1.bf16.msra.mxu1 %v3129_v4  ;;  %v3171_v33 = vld [vmem:[#allocation11 + $0x1b0] ss:$8 sps:$4 sm:$0xff]   ;;  %v3177_v1 = vld [vmem:[#allocation11 + $0x1c0] ss:$8 sps:$4 sm:$0xff]  }
 0x1a4   :  { %v606_v18 = vsel %vm598_vm7, %v602_v52, %v570_v53  ;;  %vm827_vm2 = vcmp.ne.s32.totalorder %v823_v27, 0  ;;  %v1052_v51 = vand.u32 2, %v1048_v41  ;;  %v1257_v62 = vsel %vm4564_vm1, %v4606_v55, %v4597_v40  ;;  %2220 = vmatprep.subr.bf16.mxu1 %v3137_v3  ;;  %v3185_v10 = vld [vmem:[#allocation11 + $0x1d4] ss:$8 sps:$4 sm:$0xff]   ;;  %v3183_v21 = vld [vmem:[#allocation11 + $0x1d0] ss:$8 sps:$4 sm:$0xff]  }
 0x1a5   :  { %v610_v57 = vmul.f32 %v606_v18, %v4411_v34  ;;  %v835_v31 = vsel %vm827_vm2, %v831_v59, %v799_v44  ;;  %v1311_v6 = vpack.c.bf16 %v1299_v48, %v1299_v48  ;;  %v1277_v43 = vadd.s32 1, %v4525_v29  ;;  %v3147_v29 = vld [vmem:[#allocation11 + $0x170] ss:$8 sps:$4 sm:$0xff]   ;;  %v3191_v61 = vld [vmem:[#allocation11 + $0x1e4] ss:$8 sps:$4 sm:$0xff]  }
 0x1a6   :  { %v839_v45 = vmul.f32 %v835_v31, %v4454_v24  ;;  %vm1056_vm15 = vcmp.ne.s32.totalorder %v1052_v51, 0  ;;  %v1289_v22 = vsub.f32 0.0, %v1257_v62  ;;  %v3189_v56 = vld [vmem:[#allocation11 + $0x1e0] ss:$8 sps:$4 sm:$0xff]   ;;  %v3197_v53 = vld [vmem:[#allocation11 + $0x1f4] ss:$8 sps:$4 sm:$0xff]  }
 0x1a7   :  { %v614_v2 = vadd.f32 %v610_v57, %v381_v63  ;;  %2202 = vmatmul.mubr.bf16.vlgmr.msra.gmra.mrb[4].mxu0 %v1311_v6  ;;  %v1064_v30 = vsel %vm1056_vm15, %v1060_v42, %v1028_v46  ;;  %v1281_v34 = vand.u32 2, %v1277_v43  ;;  %2221 = vmatpush1.bf16.msra.mxu1 %v3135_v39  ;;  %v3195_v20 = vld [vmem:[#allocation11 + $0x1f0] ss:$8 sps:$4 sm:$0xff]   ;;  %v3198_v16 = vld [vmem:[#allocation14] ss:$8 sps:$4 sm:$0xff]  }
 0x1a8   :  { %v1068_v35 = vmul.f32 %v1064_v30, %v4459_v23  ;;  %2222 = vmatprep.subr.bf16.mxu1 %v3143_v7  ;;  %v3167_v23 = vld [vmem:[#allocation11 + $0x1a4] ss:$8 sps:$4 sm:$0xff]   ;;  %v3203_v47 = vld [vmem:[#allocation14 + $0x14] ss:$8 sps:$4 sm:$0xff]   ;;  %v3201_v13 = vld [vmem:[#allocation14 + $0x10] ss:$8 sps:$4 sm:$0xff]  }
 0x1a9   :  { %v843_v19 = vadd.f32 %v839_v45, %v614_v2  ;;  %vm1285_vm1 = vcmp.ne.s32.totalorder %v1281_v34, 0  ;;  %v3200_v37 = vld [vmem:[#allocation14 + $0x4] ss:$8 sps:$4 sm:$0xff]   ;;  %v3204_v44 = vld [vmem:[#allocation14 + $0x20] ss:$8 sps:$4 sm:$0xff]   ;;  %v3250_v30 = vld [vmem:[#allocation16 + $0x50] sm:$0xff]  }
 0x1aa   :  { %v1293_v55 = vsel %vm1285_vm1, %v1289_v22, %v1257_v62  ;;  %2473 = vmatprep.subr.bf16.mxu0 %v3200_v37  ;;  %v3206_v52 = vld [vmem:[#allocation14 + $0x24] ss:$8 sps:$4 sm:$0xff]   ;;  %v3209_v17 = vld [vmem:[#allocation14 + $0x34] ss:$8 sps:$4 sm:$0xff]   ;;  %v3207_v14 = vld [vmem:[#allocation14 + $0x30] ss:$8 sps:$4 sm:$0xff]  }
 0x1ab   :  { %v1072_v40 = vadd.f32 %v1068_v35, %v843_v19  ;;  %v1297_v24 = vmul.f32 %v1293_v55, %v4539_v50  ;;  %2223 = vmatpush1.bf16.msra.mxu1 %v3141_v15  ;;  %v3179_v50 = vld [vmem:[#allocation11 + $0x1c4] ss:$8 sps:$4 sm:$0xff]   ;;  %2474 = vmatpush1.bf16.msra.mxu0 %v3198_v16  ;;  %v3210_v36 = vld [vmem:[#allocation14 + $0x40] ss:$8 sps:$4 sm:$0xff]   ;;  %v3215_v5 = vld [vmem:[#allocation14 + $0x54] ss:$8 sps:$4 sm:$0xff]  }
 0x1ac   :  { %2224 = vmatprep.subr.bf16.mxu1 %v3149_v12  ;;  %2475 = vmatprep.subr.bf16.mxu0 %v3203_v47  ;;  %v3212_v4 = vld [vmem:[#allocation14 + $0x44] ss:$8 sps:$4 sm:$0xff]   ;;  %v3213_v60 = vld [vmem:[#allocation14 + $0x50] ss:$8 sps:$4 sm:$0xff]   ;;  %v3216_v3 = vld [vmem:[#allocation14 + $0x60] ss:$8 sps:$4 sm:$0xff]  }
 0x1ad   :  { %v1301_v26 = vadd.f32 %v1297_v24, %v1072_v40  ;;  %v3218_v8 = vld [vmem:[#allocation14 + $0x64] ss:$8 sps:$4 sm:$0xff]   ;;  %v3221_v32 = vld [vmem:[#allocation14 + $0x74] ss:$8 sps:$4 sm:$0xff]   ;;  %v3219_v25 = vld [vmem:[#allocation14 + $0x70] ss:$8 sps:$4 sm:$0xff]  }
 0x1ae   :  { %v3224_v49 = vld [vmem:[#allocation14 + $0x84] ss:$8 sps:$4 sm:$0xff]   ;;  %v3222_v27 = vld [vmem:[#allocation14 + $0x80] ss:$8 sps:$4 sm:$0xff]   ;;  %v3227_v59 = vld [vmem:[#allocation14 + $0x94] ss:$8 sps:$4 sm:$0xff]  }
 0x1af   :  { %2225 = vmatpush1.bf16.msra.mxu1 %v3147_v29  ;;  %v1313_v0 = vpack.c.bf16 %v1301_v26, %v1301_v26  ;;  %2476 = vmatpush1.bf16.msra.mxu0 %v3201_v13  ;;  %v3225_v63 = vld [vmem:[#allocation14 + $0x90] ss:$8 sps:$4 sm:$0xff]   ;;  %v3230_v46 = vld [vmem:[#allocation14 + $0xa4] ss:$8 sps:$4 sm:$0xff]   ;;  %v3228_v41 = vld [vmem:[#allocation14 + $0xa0] ss:$8 sps:$4 sm:$0xff]  }
 0x1b0   :  { %2226 = vmatprep.subr.bf16.mxu1 %v3155_v11  ;;  %2477 = vmatprep.subr.bf16.mxu0 %v3206_v52  ;;  %v3233_v48 = vld [vmem:[#allocation14 + $0xb4] ss:$8 sps:$4 sm:$0xff]   ;;  %v3231_v18 = vld [vmem:[#allocation14 + $0xb0] ss:$8 sps:$4 sm:$0xff]   ;;  %v3236_v42 = vld [vmem:[#allocation14 + $0xc4] ss:$8 sps:$4 sm:$0xff]  }
 0x1b1   :  { %v3234_v39 = vld [vmem:[#allocation14 + $0xc0] ss:$8 sps:$4 sm:$0xff]   ;;  %v3239_v57 = vld [vmem:[#allocation14 + $0xd4] ss:$8 sps:$4 sm:$0xff]   ;;  %v3237_v31 = vld [vmem:[#allocation14 + $0xd0] ss:$8 sps:$4 sm:$0xff]  }
 0x1b2   :  { %v3242_v51 = vld [vmem:[#allocation14 + $0xe4] ss:$8 sps:$4 sm:$0xff]   ;;  %v3240_v62 = vld [vmem:[#allocation14 + $0xe0] ss:$8 sps:$4 sm:$0xff]   ;;  %v3245_v7 = vld [vmem:[#allocation14 + $0xf4] ss:$8 sps:$4 sm:$0xff]  }
 0x1b3   :  { %2227 = vmatpush1.bf16.msra.mxu1 %v3153_v58  ;;  %2478 = vmatpush1.bf16.msra.mxu0 %v3204_v44  ;;  %v3243_v6 = vld [vmem:[#allocation14 + $0xf0] ss:$8 sps:$4 sm:$0xff]   ;;  %v3246_v45 = vld [vmem:[#allocation16 + $0x40] sm:$0xff]   ;;  %v3248_v2 = vld [vmem:[#allocation16 + $0x48] sm:$0xff]  }
 0x1b4   :  { %2228 = vmatprep.subr.bf16.mxu1 %v3161_v9  ;;  %2479 = vmatprep.subr.bf16.mxu0 %v3209_v17  ;;  %v3247_v43 = vld [vmem:[#allocation16] sm:$0xff]   ;;  %v3249_v22 = vld [vmem:[#allocation16 + $0x8] sm:$0xff]   ;;  %v3251_v34 = vld [vmem:[#allocation16 + $0x10] sm:$0xff]  }
 0x1b5   :  { %v3252_v15 = vld [vmem:[#allocation16 + $0x58] sm:$0xff]   ;;  %v3254_v24 = vld [vmem:[#allocation16 + $0x60] sm:$0xff]   ;;  %v3256_v11 = vld [vmem:[#allocation16 + $0x68] sm:$0xff]  }
 0x1b6   :  { %v3253_v40 = vld [vmem:[#allocation16 + $0x18] sm:$0xff]   ;;  %v3255_v29 = vld [vmem:[#allocation16 + $0x20] sm:$0xff]   ;;  %v3257_v26 = vld [vmem:[#allocation16 + $0x28] sm:$0xff]  }
 0x1b7   :  { %2229 = vmatpush1.bf16.msra.mxu1 %v3159_v28  ;;  %2480 = vmatpush1.bf16.msra.mxu0 %v3207_v14  ;;  %v5018_v16 = vld [vmem:[#allocation24_spill] sm:$0xff] }
 0x1b8   :  { %2230 = vmatprep.subr.bf16.mxu1 %v3167_v23  ;;  %2481 = vmatprep.subr.bf16.mxu0 %v3212_v4 }
 0x1bb   :  { %2231 = vmatpush1.bf16.msra.mxu1 %v3165_v54  ;;  %2482 = vmatpush1.bf16.msra.mxu0 %v3210_v36 }
 0x1bc   :  { %2232 = vmatprep.subr.bf16.mxu1 %v3173_v38  ;;  %2483 = vmatprep.subr.bf16.mxu0 %v3215_v5 }
 0x1bf   :  { %2233 = vmatpush1.bf16.msra.mxu1 %v3171_v33  ;;  %2484 = vmatpush1.bf16.msra.mxu0 %v3213_v60 }
 0x1c0   :  { %2234 = vmatprep.subr.bf16.mxu1 %v3179_v50  ;;  %2485 = vmatprep.subr.bf16.mxu0 %v3218_v8 }
 0x1c3   :  { %2235 = vmatpush1.bf16.msra.mxu1 %v3177_v1  ;;  %2486 = vmatpush1.bf16.msra.mxu0 %v3216_v3  ;;  %v3258_v3 = vld [vmem:[#allocation16 + $0x70] sm:$0xff]  }
 0x1c4   :  { %2236 = vmatprep.subr.bf16.mxu1 %v3185_v10  ;;  %2487 = vmatprep.subr.bf16.mxu0 %v3221_v32  ;;  %v3259_v32 = vld [vmem:[#allocation16 + $0x30] sm:$0xff]  }
 0x1c7   :  { %2237 = vmatpush1.bf16.msra.mxu1 %v3183_v21  ;;  %2488 = vmatpush1.bf16.msra.mxu0 %v3219_v25  ;;  %v3260_v25 = vld [vmem:[#allocation16 + $0x78] sm:$0xff]  }
 0x1c8   :  { %2238 = vmatprep.subr.bf16.mxu1 %v3191_v61  ;;  %2489 = vmatprep.subr.bf16.mxu0 %v3224_v49  ;;  %v3261_v49 = vld [vmem:[#allocation16 + $0x38] sm:$0xff]  }
 0x1cb   :  { %2239 = vmatpush1.bf16.msra.mxu1 %v3189_v56  ;;  %2490 = vmatpush1.bf16.msra.mxu0 %v3222_v27  ;;  %v2251_v56 = vld [vmem:[%s4735_s7] sm:$0x3] }
 0x1cc   :  { %2240 = vmatprep.subr.bf16.mxu1 %v3197_v53  ;;  %2491 = vmatprep.subr.bf16.mxu0 %v3227_v59  ;;  %v5017_v53 = vld [vmem:[#allocation25_spill] sm:$0xff]  ;;  %v2260_v37 = vrot.slane %v2251_v56, %v5018_v16  ;;  %v2301_v27 = vld [vmem:[%s4737_s9] sm:$0x3]  ;;  %s3522_s9 = smov [#allocation17]  }
 0x1cd   :  { %v2306_v59 = vrot.slane %v2301_v27, %v5017_v53  ;;  %s2700_s21 = sshll.u32 %s3522_s9, 4  ;;  %s2701_s21 = int_to_ptr.vmem [resolvable:$true] %s2700_s21 }
 0x1ce   :  { %s3475_s23 = scalar_lea.vmem %s2701_s21, 128  ;;  %p3480_p3 = scmp.lt.s32.totalorder %s2701_s21, %s2701_s21 }
 0x1cf   :  { %2241 = vmatpush1.bf16.msra.mxu1 %v3195_v20  ;;  %2492 = vmatpush1.bf16.msra.mxu0 %v3225_v63  ;;  %v2256_v20 = vrot.slane %v2251_v56, %v5017_v53  ;;  %v2310_v63 = vrot.slane %v2301_v27, %v5018_v16  ;;  %p3476_p2 = scmp.ne.s32.totalorder %s2701_s21, %s3475_s23  ;;  %p3481_p4 = scmp.lt.s32.totalorder %s3475_s23, %s3475_s23 }
 0x1d0   :  { %2493 = vmatprep.subr.bf16.mxu0 %v3230_v46  ;;  %2890 = vmatprep.subr.bf16.mxu1 %v3246_v45 }
 0x1d1   :  { %p3482_p5 = por %p3481_p4, %p3480_p3 }
 0x1d2   :  { %2243 = vmatmul.mubr.bf16.vlgmr.msra.gmra.mrb[4].mxu1 %v1313_v0 }
 0x1d3   :  { %2494 = vmatpush1.bf16.msra.mxu0 %v3228_v41  ;;  %2891 = vmatpush3.bf16.msra.mxu1 %v3247_v43  ;;  %p3483_p6 = pnand %p3482_p5, %p3476_p2 }
 0x1d4   :  { %2495 = vmatprep.subr.bf16.mxu0 %v3233_v48  ;;  %2892 = vmatprep.subr.bf16.mxu1 %v3248_v2 }
 0x1d7   :  { %2496 = vmatpush1.bf16.msra.mxu0 %v3231_v18  ;;  %2893 = vmatpush3.bf16.msra.mxu1 %v3249_v22 }
 0x1d8   :  { %2497 = vmatprep.subr.bf16.mxu0 %v3236_v42  ;;  %2894 = vmatprep.subr.bf16.mxu1 %v3250_v30 }
 0x1db   :  { %2498 = vmatpush1.bf16.msra.mxu0 %v3234_v39  ;;  %2895 = vmatpush3.bf16.msra.mxu1 %v3251_v34 }
 0x1dc   :  { %2499 = vmatprep.subr.bf16.mxu0 %v3239_v57  ;;  %2896 = vmatprep.subr.bf16.mxu1 %v3252_v15 }
 0x1df   :  { %2500 = vmatpush1.bf16.msra.mxu0 %v3237_v31  ;;  %2897 = vmatpush3.bf16.msra.mxu1 %v3253_v40 }
 0x1e0   :  { %2501 = vmatprep.subr.bf16.mxu0 %v3242_v51  ;;  %2898 = vmatprep.subr.bf16.mxu1 %v3254_v24 }
 0x1e3   :  { %2502 = vmatpush1.bf16.msra.mxu0 %v3240_v62  ;;  %2899 = vmatpush3.bf16.msra.mxu1 %v3255_v29 }
 0x1e4   :  { %2503 = vmatprep.subr.bf16.mxu0 %v3245_v7  ;;  %2900 = vmatprep.subr.bf16.mxu1 %v3256_v11 }
 0x1e7   :  { %2504 = vmatpush1.bf16.msra.mxu0 %v3243_v6  ;;  %2901 = vmatpush3.bf16.msra.mxu1 %v3257_v26  ;;  %v2873_v6 = vld [vmem:[%s4739_s11] ss:$0 sm:$0xff] }
 0x1e8   :  { %2902 = vmatprep.subr.bf16.mxu1 %v3258_v3 }
 0x1eb   :  { %2903 = vmatpush3.bf16.msra.mxu1 %v3259_v32 }
 0x1ec   :  { %2904 = vmatprep.subr.bf16.mxu1 %v3260_v25 }
 0x1ef   :  { %2905 = vmatpush3.bf16.msra.mxu1 %v3261_v49 }
 0x237   :  { %v1801_v19 = vpop.f32.mrb[0].mxu0 }
 0x238   :  { %v1803_v35 = vpop.f32.mrb[1].mxu0 }
 0x239   :  { %v1805_v12 = vpop.f32.mrb[2].mxu0 }
 0x23a   :  { %v1806_v55 = vpop.f32.mrb[3].mxu0 }
 0x265   :  { %v1842_v58 = vpop.f32.mrb[0].mxu1 }
 0x266   :  { %v1843_v9 = vadd.f32 %v1842_v58, %v1801_v19  ;;  %v1844_v28 = vpop.f32.mrb[1].mxu1 }
 0x267   :  { %v1845_v23 = vadd.f32 %v1844_v28, %v1803_v35  ;;  %v1846_v54 = vpop.f32.mrb[2].mxu1 }
 0x268   :  { %v1847_v38 = vpop.f32.mrb[3].mxu1 }
 0x27a   :  { %v2203_v33 = vpop.f32.mrb[4].mxu0 }
 0x27b   :  { %v2204_v50 = vadd.f32 %v2203_v33, %v1843_v9  ;;  %v2205_v1 = vpop.f32.mrb[5].mxu0 }
 0x27c   :  { %v2206_v10 = vadd.f32 %v2205_v1, %v1845_v23  ;;  %v2207_v21 = vpop.f32.mrb[6].mxu0 }
 0x27d   :  { %v2208_v61 = vpop.f32.mrb[7].mxu0 }
 0x2a5   :  { %v2244_v0 = vpop.f32.mrb[4].mxu1 }
 0x2a6   :  { %v2245_v47 = vadd.f32 %v2244_v0, %v2204_v50  ;;  %v2246_v13 = vpop.f32.mrb[5].mxu1 }
 0x2a7   :  { %v2247_v52 = vadd.f32 %v2246_v13, %v2206_v10  ;;  %v2248_v44 = vpop.f32.mrb[6].mxu1 }
 0x2a8   :  { %v2263_v17 = vadd.f32 %v2256_v20, %v2245_v47  ;;  %v2249_v14 = vpop.f32.mrb[7].mxu1 }
 0x2a9   :  { %v2264_v4 = vadd.f32 %v2260_v37, %v2247_v52 }
 0x2aa   :  { %v2265_v36 = vmax.f32 %v2263_v17, 0.0 }
 0x2ab   :  { %v2266_v5 = vmax.f32 %v2264_v4, 0.0 }
 0x2ac   :  { %v2267_v8 = vpack.c.bf16 %v2265_v36, %v2265_v36 }
 0x2ad   :  { %v2268_v60 = vpack.c.bf16 %v2266_v5, %v2266_v5 }
 0x2af   :  { %2505 = vmatprep.mubr.bf16.mxu0 %v2268_v60 }
 0x2b0   :  { %2506 = vmatmul.mubr.bf16.vlgmr.msra.gmra.mrb[8].mxu0 %v2267_v8 }
 0x383   :  { %v2507_v46 = vpop.f32.mrb[8].mxu0 }
 0x384   :  { %v2508_v41 = vadd.f32 %v2507_v46, %v2306_v59  ;;  %v2509_v48 = vpop.f32.mrb[9].mxu0 }
 0x385   :  { %v2510_v18 = vadd.f32 %v2509_v48, %v2310_v63  ;;  %v2511_v42 = vpop.f32.mrb[10].mxu0 }
 0x386   :  { %v2514_v39 = vmax.f32 %v2508_v41, 0.0  ;;  %v2512_v57 = vpop.f32.mrb[11].mxu0 }
 0x387   :  { %v2515_v31 = vmax.f32 %v2510_v18, 0.0 }
 0x388   :  { %v2516_v62 = vpack.c.bf16 %v2514_v39, %v2514_v39 }
 0x389   :  { %v2517_v51 = vpack.c.bf16 %v2515_v31, %v2515_v31 }
 0x38b   :  { %2685 = vmatprep.mubr.bf16.mxu1 %v2517_v51 }
 0x38c   :  { %2686 = vmatmul.mubr.bf16.vlgmr.msra.gmra.mrb[8].mxu1 %v2516_v62 }
 0x45f   :  { %v2906_v7 = vpop.f32.mrb[8].mxu1 }
 0x460   :  { %v2907_v45 = vpop.f32.mrb[9].mxu1 }
 0x461   :  { %v2908_v43 = vadd.f32 %v2907_v45, %v2906_v7  ;;  %v2909_v2 = vpop.f32.mrb[10].mxu1 }
 0x462   :  { %v2910_v22 = vpop.f32.mrb[11].mxu1 }
 0x463   :  { %v2688_v30 = vadd.f32 %v2908_v43, %v2873_v6 }
 0x465   :  { %2693 = vst [vmem:[#allocation17] sm:$0xff] %v2688_v30 }
 0x466   :  { %3486 = shalt.err (!%p3483_p6)
}
 0x467   :  { %s3487_s11 = scalar_lea.hbm %s4740_s12, 128 }
 0x468   :  { %p3488_p7 = scmp.ne.s32.totalorder %s4740_s12, %s3487_s11  ;;  %p3491_p8 = scmp.lt.u32.totalorder %s3487_s11, %s4740_s12 }
 0x46a   :  { %p3493_p9 = pnand %p3491_p8, %p3488_p7 }
 0x46c   :  { %3496 = shalt.err (!%p3493_p9)
}
 0x46d   :  { %2703 = dma.vmem_to_hbm [thread:$0]  %s2701_s21, 128, %s4740_s12, [#allocation4]  }
 0x46e   :  { %3507 = dma.done.wait [#allocation4], 128  }
 0x46f   :  { %3508 = vsyncadd [#allocation4], 4294967168 }
 0x470   :  { %2707 = vsyncpa [#allocation3], 1 }
 0x471   :  { %2708 = vsyncpa [#allocation6], 1 }
 0x472   :  { %2709 = vsyncpa [#allocation9], 1 }
 0x473   :  { %2710 = vsyncpa [#allocation12], 1 }
 0x474   :  { %2711 = vsyncpa [#allocation15], 1 }
 0x475   :  { %2712 = vsyncpa [#allocation4], 1 }

</bundles_post_ra>
